<compile_context>
chip_gen: v7x
topology: tpu7x:2x2x1
jax: 0.10.0
libtpu: 0.0.40
codegen_flags: <defaults>
</compile_context>

<pallas_src>
import jax
import jax.numpy as jnp
from jax.experimental import pallas as pl
from jax.experimental.pallas import tpu as pltpu

# ---- small SiglipVisionConfig-consistent sizes ----
HIDDEN = 32
INTERMEDIATE = 64
NUM_LAYERS = 2
NUM_HEADS = 4
NUM_CHANNELS = 3
IMAGE_SIZE = 16
PATCH_SIZE = 4
EPS = 1e-6
HEAD_DIM = HIDDEN // NUM_HEADS
NUM_PATCHES = (IMAGE_SIZE // PATCH_SIZE) ** 2          # 16
PATCH_DIM = NUM_CHANNELS * PATCH_SIZE * PATCH_SIZE     # 48


# ---------------- math helpers (used both in kernel and reference) -----------
def _layernorm(x, g, b, eps):
    mu = jnp.mean(x, axis=-1, keepdims=True)
    var = jnp.mean((x - mu) ** 2, axis=-1, keepdims=True)
    return (x - mu) * jax.lax.rsqrt(var + eps) * g + b


def _gelu_tanh(x):
    # gelu_pytorch_tanh (SigLIP hidden_act)
    c = 0.7978845608028654  # sqrt(2/pi)
    return 0.5 * x * (1.0 + jnp.tanh(c * (x + 0.044715 * x * x * x)))


# ---------------- fused Pallas kernel -----------------------------------------
def siglip_fused_kernel(patches_ref, pw_ref, posb_ref, mask_ref,
                        ln1g_ref, ln1b_ref,
                        wq_ref, bq_ref, wk_ref, bk_ref, wv_ref, bv_ref,
                        wo_ref, bo_ref,
                        ln2g_ref, ln2b_ref,
                        w1_ref, b1_ref, w2_ref, b2_ref,
                        postg_ref, postb_ref,
                        out_ref):
    # patches: (B*S, K)   pw: (K, D)   posb: (B*S, D)   mask: (B*S, B*S)
    # stacked layer params carry a leading NUM_LAYERS axis; qkv/out-proj
    # weights additionally carry a head axis:  wq/wk/wv: (L, H, D, Dh),
    # bq/bk/bv: (L, H, 1, Dh), wo: (L, H, Dh, D).
    x = jnp.dot(patches_ref[...], pw_ref[...],
                preferred_element_type=jnp.float32) + posb_ref[...]
    mask_bias = mask_ref[...]                               # block-diag 0/-1e30

    for l in range(NUM_LAYERS):                             # static unroll (L=2)
        # ---- self-attention block ----
        resid = x
        h = _layernorm(x, ln1g_ref[l], ln1b_ref[l], EPS)

        attn = None
        for hh in range(NUM_HEADS):                         # static unroll (H=4)
            # per-head projections: plain 2-D matmuls, no lane slicing
            q = jnp.dot(h, wq_ref[l, hh],
                        preferred_element_type=jnp.float32) + bq_ref[l, hh]
            k = jnp.dot(h, wk_ref[l, hh],
                        preferred_element_type=jnp.float32) + bk_ref[l, hh]
            v = jnp.dot(h, wv_ref[l, hh],
                        preferred_element_type=jnp.float32) + bv_ref[l, hh]
            # scores on the folded (B*S, B*S) matrix; mask kills cross-batch
            s = jnp.dot(q, k.T, preferred_element_type=jnp.float32) + mask_bias
            s = s - jnp.max(s, axis=-1, keepdims=True)
            p = jnp.exp(s)
            p = p * pl.reciprocal(jnp.sum(p, axis=-1, keepdims=True),
                                  approx=True)
            ctx = jnp.dot(p, v, preferred_element_type=jnp.float32)
            proj = jnp.dot(ctx, wo_ref[l, hh],
                           preferred_element_type=jnp.float32)
            attn = proj if attn is None else attn + proj
        x = resid + attn + bo_ref[l]

        # ---- MLP block ----
        resid2 = x
        h2 = _layernorm(x, ln2g_ref[l], ln2b_ref[l], EPS)
        m = jnp.dot(h2, w1_ref[l],
                    preferred_element_type=jnp.float32) + b1_ref[l]
        m = _gelu_tanh(m)
        m = jnp.dot(m, w2_ref[l],
                    preferred_element_type=jnp.float32) + b2_ref[l]
        x = resid2 + m

    out_ref[...] = _layernorm(x, postg_ref[...], postb_ref[...], EPS)


# ---------------- wrappers -----------------------------------------------------
_PARAM_ORDER = ("ln1_g", "ln1_b", "wq", "bq", "wk", "bk", "wv", "bv",
                "wo", "bo", "ln2_g", "ln2_b", "w1", "b1", "w2", "b2")


def _full_spec(a):
    nd = a.ndim
    return pl.BlockSpec(a.shape, lambda i, _nd=nd: (0,) * _nd)


def extract_patches(pix):
    # (B, C, H, W) -> (B, N, C*P*P)   (row-major over patch rows then cols,
    # matching Conv2d + flatten(2).transpose(1, 2))
    B, C, H, W = pix.shape
    P = PATCH_SIZE
    x = pix.reshape(B, C, H // P, P, W // P, P)
    x = x.transpose(0, 2, 4, 1, 3, 5)
    return x.reshape(B, (H // P) * (W // P), C * P * P)


def pack_params(params):
    """One-time host-side repack: stack layers, pre-split heads, fold scale."""
    L, D, H, Dh = NUM_LAYERS, HIDDEN, NUM_HEADS, HEAD_DIM
    layers = params["layers"]

    def stack(name):
        return jnp.stack([lp[name] for lp in layers], axis=0)

    def split_cols(w):        # (L, D, D) -> (L, H, D, Dh)  (output cols per head)
        return w.reshape(L, D, H, Dh).transpose(0, 2, 1, 3)

    def split_bias(b):        # (L, 1, D) -> (L, H, 1, Dh)
        return b.reshape(L, 1, H, Dh).transpose(0, 2, 1, 3)

    scale = jnp.float32(HEAD_DIM ** -0.5)
    return {
        "patch_w": params["patch_w"],                      # (K, D)
        "posb": params["pos_emb"] + params["patch_b"],     # (N, D), bias folded
        "ln1_g": stack("ln1_g"), "ln1_b": stack("ln1_b"),
        "wq": split_cols(stack("wq")) * scale,             # 1/sqrt(Dh) folded
        "bq": split_bias(stack("bq")) * scale,
        "wk": split_cols(stack("wk")), "bk": split_bias(stack("bk")),
        "wv": split_cols(stack("wv")), "bv": split_bias(stack("bv")),
        "wo": stack("wo").reshape(L, H, Dh, D),            # input rows per head
        "bo": stack("bo"),
        "ln2_g": stack("ln2_g"), "ln2_b": stack("ln2_b"),
        "w1": stack("w1"), "b1": stack("b1"),
        "w2": stack("w2"), "b2": stack("b2"),
        "post_g": params["post_g"], "post_b": params["post_b"],
    }


def siglip_vision_transformer(pixel_values, packed):
    B = pixel_values.shape[0]
    BN = B * NUM_PATCHES
    patches = extract_patches(pixel_values).reshape(BN, PATCH_DIM)
    posb = jnp.tile(packed["posb"], (B, 1))                          # (BN, D)
    ids = jnp.arange(BN, dtype=jnp.int32) // NUM_PATCHES
    mask_bias = jnp.where(ids[:, None] == ids[None, :],
                          0.0, -1e30).astype(jnp.float32)            # (BN, BN)

    args = [patches, packed["patch_w"], posb, mask_bias]
    args += [packed[n] for n in _PARAM_ORDER]
    args += [packed["post_g"], packed["post_b"]]

    out = pl.pallas_call(
        siglip_fused_kernel,
        out_shape=jax.ShapeDtypeStruct((BN, HIDDEN), jnp.float32),
        grid=(1,),
        in_specs=[_full_spec(a) for a in args],
        out_specs=pl.BlockSpec((BN, HIDDEN), lambda i: (0, 0)),
        compiler_params=pltpu.CompilerParams(
            dimension_semantics=("arbitrary",)),
    )(*args)
    return out.reshape(B, NUM_PATCHES, HIDDEN)


# ---------------- deterministic parameter init ---------------------------------
def init_params(key):
    keys = iter(jax.random.split(key, 64))

    def nrm(shape, scale=0.02):
        return (scale * jax.random.normal(next(keys), shape)).astype(jnp.float32)

    params = {
        # conv weight (D, C, P, P) flattened to (C*P*P, D)
        "patch_w": nrm((PATCH_DIM, HIDDEN)),
        "patch_b": nrm((1, HIDDEN)),
        "pos_emb": nrm((NUM_PATCHES, HIDDEN)),
        "post_g": jnp.ones((1, HIDDEN), jnp.float32),
        "post_b": jnp.zeros((1, HIDDEN), jnp.float32),
        "layers": [],
    }
    for _ in range(NUM_LAYERS):
        params["layers"].append({
            "ln1_g": jnp.ones((1, HIDDEN), jnp.float32),
            "ln1_b": jnp.zeros((1, HIDDEN), jnp.float32),
            "wq": nrm((HIDDEN, HIDDEN)), "bq": nrm((1, HIDDEN)),
            "wk": nrm((HIDDEN, HIDDEN)), "bk": nrm((1, HIDDEN)),
            "wv": nrm((HIDDEN, HIDDEN)), "bv": nrm((1, HIDDEN)),
            "wo": nrm((HIDDEN, HIDDEN)), "bo": nrm((1, HIDDEN)),
            "ln2_g": jnp.ones((1, HIDDEN), jnp.float32),
            "ln2_b": jnp.zeros((1, HIDDEN), jnp.float32),
            "w1": nrm((HIDDEN, INTERMEDIATE)), "b1": nrm((1, INTERMEDIATE)),
            "w2": nrm((INTERMEDIATE, HIDDEN)), "b2": nrm((1, HIDDEN)),
        })
    return params


# ---------------- pure-JAX reference (for correctness check) -------------------
def reference(pixel_values, params):
    patches = extract_patches(pixel_values)
    x = patches @ params["patch_w"] + params["patch_b"] + params["pos_emb"]
    B, S, D = x.shape
    for lp in params["layers"]:
        r = x
        h = _layernorm(x, lp["ln1_g"], lp["ln1_b"], EPS)
        q = h @ lp["wq"] + lp["bq"]
        k = h @ lp["wk"] + lp["bk"]
        v = h @ lp["wv"] + lp["bv"]

        def split(t):
            return t.reshape(B, S, NUM_HEADS, HEAD_DIM).transpose(0, 2, 1, 3)

        qh, kh, vh = split(q), split(k), split(v)
        s = jnp.einsum("bhqd,bhkd->bhqk", qh, kh) * (HEAD_DIM ** -0.5)
        p = jax.nn.softmax(s, axis=-1)
        o = jnp.einsum("bhqk,bhkd->bhqd", p, vh)
        o = o.transpose(0, 2, 1, 3).reshape(B, S, D)
        x = r + (o @ lp["wo"] + lp["bo"])

        r2 = x
        h2 = _layernorm(x, lp["ln2_g"], lp["ln2_b"], EPS)
        m = _gelu_tanh(h2 @ lp["w1"] + lp["b1"]) @ lp["w2"] + lp["b2"]
        x = r2 + m
    return _layernorm(x, params["post_g"], params["post_b"], EPS)


if __name__ == "__main__":
    key = jax.random.PRNGKey(0)
    kp, kx = jax.random.split(key)
    params = init_params(kp)
    packed = pack_params(params)   # one-time host-side repack (not in hot path)

    # pixel_values: NCHW like PyTorch
    pixel_values = jax.random.normal(
        kx, (2, NUM_CHANNELS, IMAGE_SIZE, IMAGE_SIZE), dtype=jnp.float32)

    fwd = jax.jit(siglip_vision_transformer)
    out = fwd(pixel_values, packed)
    out = jax.block_until_ready(out)

    assert out.shape == (2, NUM_PATCHES, HIDDEN), out.shape
    ref = reference(pixel_values, params)
    max_err = float(jnp.max(jnp.abs(out - ref)))
    assert jnp.allclose(out, ref, rtol=5e-3, atol=5e-3), max_err

    # NOTE: attention_dropout=0.0 / eval mode, so dropout is a no-op.
    print("KERNEL_OK")
</pallas_src>

<mosaic_0001>
module attributes {stable_mosaic.version = 11 : i64} {
  func.func @siglip_fused_kernel(%arg0: i32, %arg1: memref<32x48xf32, #tpu.memory_space<vmem>>, %arg2: memref<48x32xf32, #tpu.memory_space<vmem>>, %arg3: memref<32x32xf32, #tpu.memory_space<vmem>>, %arg4: memref<32x32xf32, #tpu.memory_space<vmem>>, %arg5: memref<2x1x32xf32, #tpu.memory_space<vmem>>, %arg6: memref<2x1x32xf32, #tpu.memory_space<vmem>>, %arg7: memref<2x4x32x8xf32, #tpu.memory_space<vmem>>, %arg8: memref<2x4x1x8xf32, #tpu.memory_space<vmem>>, %arg9: memref<2x4x32x8xf32, #tpu.memory_space<vmem>>, %arg10: memref<2x4x1x8xf32, #tpu.memory_space<vmem>>, %arg11: memref<2x4x32x8xf32, #tpu.memory_space<vmem>>, %arg12: memref<2x4x1x8xf32, #tpu.memory_space<vmem>>, %arg13: memref<2x4x8x32xf32, #tpu.memory_space<vmem>>, %arg14: memref<2x1x32xf32, #tpu.memory_space<vmem>>, %arg15: memref<2x1x32xf32, #tpu.memory_space<vmem>>, %arg16: memref<2x1x32xf32, #tpu.memory_space<vmem>>, %arg17: memref<2x32x64xf32, #tpu.memory_space<vmem>>, %arg18: memref<2x1x64xf32, #tpu.memory_space<vmem>>, %arg19: memref<2x64x32xf32, #tpu.memory_space<vmem>>, %arg20: memref<2x1x32xf32, #tpu.memory_space<vmem>>, %arg21: memref<1x32xf32, #tpu.memory_space<vmem>>, %arg22: memref<1x32xf32, #tpu.memory_space<vmem>>, %arg23: memref<32x32xf32, #tpu.memory_space<vmem>>) attributes {dimension_semantics = [#tpu.dimension_semantics<arbitrary>], iteration_bounds = array<i64: 1>, scalar_prefetch = 0 : i64, scratch_operands = 0 : i64, tpu.core_type = #tpu.core_type<tc>, window_params = [{pipeline_mode = #tpu.pipeline_mode<synchronous>, transform_indices = @transform_0, window_bounds = array<i64: 32, 48>}, {pipeline_mode = #tpu.pipeline_mode<synchronous>, transform_indices = @transform_1, window_bounds = array<i64: 48, 32>}, {pipeline_mode = #tpu.pipeline_mode<synchronous>, transform_indices = @transform_2, window_bounds = array<i64: 32, 32>}, {pipeline_mode = #tpu.pipeline_mode<synchronous>, transform_indices = @transform_3, window_bounds = array<i64: 32, 32>}, {pipeline_mode = #tpu.pipeline_mode<synchronous>, transform_indices = @transform_4, window_bounds = array<i64: 2, 1, 32>}, {pipeline_mode = #tpu.pipeline_mode<synchronous>, transform_indices = @transform_5, window_bounds = array<i64: 2, 1, 32>}, {pipeline_mode = #tpu.pipeline_mode<synchronous>, transform_indices = @transform_6, window_bounds = array<i64: 2, 4, 32, 8>}, {pipeline_mode = #tpu.pipeline_mode<synchronous>, transform_indices = @transform_7, window_bounds = array<i64: 2, 4, 1, 8>}, {pipeline_mode = #tpu.pipeline_mode<synchronous>, transform_indices = @transform_8, window_bounds = array<i64: 2, 4, 32, 8>}, {pipeline_mode = #tpu.pipeline_mode<synchronous>, transform_indices = @transform_9, window_bounds = array<i64: 2, 4, 1, 8>}, {pipeline_mode = #tpu.pipeline_mode<synchronous>, transform_indices = @transform_10, window_bounds = array<i64: 2, 4, 32, 8>}, {pipeline_mode = #tpu.pipeline_mode<synchronous>, transform_indices = @transform_11, window_bounds = array<i64: 2, 4, 1, 8>}, {pipeline_mode = #tpu.pipeline_mode<synchronous>, transform_indices = @transform_12, window_bounds = array<i64: 2, 4, 8, 32>}, {pipeline_mode = #tpu.pipeline_mode<synchronous>, transform_indices = @transform_13, window_bounds = array<i64: 2, 1, 32>}, {pipeline_mode = #tpu.pipeline_mode<synchronous>, transform_indices = @transform_14, window_bounds = array<i64: 2, 1, 32>}, {pipeline_mode = #tpu.pipeline_mode<synchronous>, transform_indices = @transform_15, window_bounds = array<i64: 2, 1, 32>}, {pipeline_mode = #tpu.pipeline_mode<synchronous>, transform_indices = @transform_16, window_bounds = array<i64: 2, 32, 64>}, {pipeline_mode = #tpu.pipeline_mode<synchronous>, transform_indices = @transform_17, window_bounds = array<i64: 2, 1, 64>}, {pipeline_mode = #tpu.pipeline_mode<synchronous>, transform_indices = @transform_18, window_bounds = array<i64: 2, 64, 32>}, {pipeline_mode = #tpu.pipeline_mode<synchronous>, transform_indices = @transform_19, window_bounds = array<i64: 2, 1, 32>}, {pipeline_mode = #tpu.pipeline_mode<synchronous>, transform_indices = @transform_20, window_bounds = array<i64: 1, 32>}, {pipeline_mode = #tpu.pipeline_mode<synchronous>, transform_indices = @transform_21, window_bounds = array<i64: 1, 32>}, {pipeline_mode = #tpu.pipeline_mode<synchronous>, transform_indices = @transform_22, window_bounds = array<i64: 32, 32>}]} {
    %c0 = arith.constant 0 : index
    %c0_0 = arith.constant 0 : index
    %0 = vector.load %arg1[%c0, %c0_0] : memref<32x48xf32, #tpu.memory_space<vmem>>, vector<32x48xf32>
    %c0_1 = arith.constant 0 : index
    %c0_2 = arith.constant 0 : index
    %1 = vector.load %arg2[%c0_1, %c0_2] : memref<48x32xf32, #tpu.memory_space<vmem>>, vector<48x32xf32>
    %cst = arith.constant dense<0.000000e+00> : vector<32x32xf32>
    %2 = tpu.matmul %0, %1, %cst {dimension_numbers = #tpu.dot_dimension_numbers<[1], [0], [0], [1], [0, 0, 1, 1], [], []>} : vector<32x48xf32>, vector<48x32xf32>, vector<32x32xf32> -> vector<32x32xf32>
    %c0_3 = arith.constant 0 : index
    %c0_4 = arith.constant 0 : index
    %3 = vector.load %arg3[%c0_3, %c0_4] : memref<32x32xf32, #tpu.memory_space<vmem>>, vector<32x32xf32>
    %4 = arith.addf %2, %3 : vector<32x32xf32>
    %c0_5 = arith.constant 0 : index
    %c0_6 = arith.constant 0 : index
    %5 = vector.load %arg4[%c0_5, %c0_6] : memref<32x32xf32, #tpu.memory_space<vmem>>, vector<32x32xf32>
    %c0_7 = arith.constant 0 : index
    %c0_8 = arith.constant 0 : index
    %c0_9 = arith.constant 0 : index
    %6 = vector.load %arg5[%c0_7, %c0_8, %c0_9] : memref<2x1x32xf32, #tpu.memory_space<vmem>>, vector<1x1x32xf32>
    %7 = vector.shape_cast %6 : vector<1x1x32xf32> to vector<1x32xf32>
    %c0_10 = arith.constant 0 : index
    %c0_11 = arith.constant 0 : index
    %c0_12 = arith.constant 0 : index
    %8 = vector.load %arg6[%c0_10, %c0_11, %c0_12] : memref<2x1x32xf32, #tpu.memory_space<vmem>>, vector<1x1x32xf32>
    %9 = vector.shape_cast %8 : vector<1x1x32xf32> to vector<1x32xf32>
    %cst_13 = arith.constant dense<0.000000e+00> : vector<32xf32>
    %10 = vector.multi_reduction <add>, %4, %cst_13 [1] : vector<32x32xf32> to vector<32xf32>
    %11 = vector.shape_cast %10 : vector<32xf32> to vector<32x1xf32>
    %cst_14 = arith.constant 3.200000e+01 : f32
    %12 = vector.broadcast %cst_14 : f32 to vector<32x1xf32>
    %13 = arith.divf %11, %12 : vector<32x1xf32>
    %14 = vector.broadcast %13 : vector<32x1xf32> to vector<32x32xf32>
    %15 = arith.subf %4, %14 : vector<32x32xf32>
    %16 = arith.mulf %15, %15 : vector<32x32xf32>
    %cst_15 = arith.constant dense<0.000000e+00> : vector<32xf32>
    %17 = vector.multi_reduction <add>, %16, %cst_15 [1] : vector<32x32xf32> to vector<32xf32>
    %18 = vector.shape_cast %17 : vector<32xf32> to vector<32x1xf32>
    %cst_16 = arith.constant 3.200000e+01 : f32
    %19 = vector.broadcast %cst_16 : f32 to vector<32x1xf32>
    %20 = arith.divf %18, %19 : vector<32x1xf32>
    %21 = vector.broadcast %13 : vector<32x1xf32> to vector<32x32xf32>
    %22 = arith.subf %4, %21 : vector<32x32xf32>
    %cst_17 = arith.constant 9.99999997E-7 : f32
    %23 = vector.broadcast %cst_17 : f32 to vector<32x1xf32>
    %24 = arith.addf %20, %23 : vector<32x1xf32>
    %25 = math.rsqrt %24 : vector<32x1xf32>
    %26 = vector.broadcast %25 : vector<32x1xf32> to vector<32x32xf32>
    %27 = arith.mulf %22, %26 : vector<32x32xf32>
    %28 = vector.broadcast %7 : vector<1x32xf32> to vector<32x32xf32>
    %29 = arith.mulf %27, %28 : vector<32x32xf32>
    %30 = vector.broadcast %9 : vector<1x32xf32> to vector<32x32xf32>
    %31 = arith.addf %29, %30 : vector<32x32xf32>
    %c0_18 = arith.constant 0 : index
    %c0_19 = arith.constant 0 : index
    %c0_20 = arith.constant 0 : index
    %c0_21 = arith.constant 0 : index
    %32 = vector.load %arg7[%c0_18, %c0_19, %c0_20, %c0_21] : memref<2x4x32x8xf32, #tpu.memory_space<vmem>>, vector<1x1x32x8xf32>
    %33 = vector.shape_cast %32 : vector<1x1x32x8xf32> to vector<32x8xf32>
    %cst_22 = arith.constant dense<0.000000e+00> : vector<32x8xf32>
    %34 = tpu.matmul %31, %33, %cst_22 {dimension_numbers = #tpu.dot_dimension_numbers<[1], [0], [0], [1], [0, 0, 1, 1], [], []>} : vector<32x32xf32>, vector<32x8xf32>, vector<32x8xf32> -> vector<32x8xf32>
    %c0_23 = arith.constant 0 : index
    %c0_24 = arith.constant 0 : index
    %c0_25 = arith.constant 0 : index
    %c0_26 = arith.constant 0 : index
    %35 = vector.load %arg8[%c0_23, %c0_24, %c0_25, %c0_26] : memref<2x4x1x8xf32, #tpu.memory_space<vmem>>, vector<1x1x1x8xf32>
    %36 = vector.shape_cast %35 : vector<1x1x1x8xf32> to vector<1x8xf32>
    %37 = vector.broadcast %36 : vector<1x8xf32> to vector<32x8xf32>
    %38 = arith.addf %34, %37 : vector<32x8xf32>
    %c0_27 = arith.constant 0 : index
    %c0_28 = arith.constant 0 : index
    %c0_29 = arith.constant 0 : index
    %c0_30 = arith.constant 0 : index
    %39 = vector.load %arg9[%c0_27, %c0_28, %c0_29, %c0_30] : memref<2x4x32x8xf32, #tpu.memory_space<vmem>>, vector<1x1x32x8xf32>
    %40 = vector.shape_cast %39 : vector<1x1x32x8xf32> to vector<32x8xf32>
    %cst_31 = arith.constant dense<0.000000e+00> : vector<32x8xf32>
    %41 = tpu.matmul %31, %40, %cst_31 {dimension_numbers = #tpu.dot_dimension_numbers<[1], [0], [0], [1], [0, 0, 1, 1], [], []>} : vector<32x32xf32>, vector<32x8xf32>, vector<32x8xf32> -> vector<32x8xf32>
    %c0_32 = arith.constant 0 : index
    %c0_33 = arith.constant 0 : index
    %c0_34 = arith.constant 0 : index
    %c0_35 = arith.constant 0 : index
    %42 = vector.load %arg10[%c0_32, %c0_33, %c0_34, %c0_35] : memref<2x4x1x8xf32, #tpu.memory_space<vmem>>, vector<1x1x1x8xf32>
    %43 = vector.shape_cast %42 : vector<1x1x1x8xf32> to vector<1x8xf32>
    %44 = vector.broadcast %43 : vector<1x8xf32> to vector<32x8xf32>
    %45 = arith.addf %41, %44 : vector<32x8xf32>
    %c0_36 = arith.constant 0 : index
    %c0_37 = arith.constant 0 : index
    %c0_38 = arith.constant 0 : index
    %c0_39 = arith.constant 0 : index
    %46 = vector.load %arg11[%c0_36, %c0_37, %c0_38, %c0_39] : memref<2x4x32x8xf32, #tpu.memory_space<vmem>>, vector<1x1x32x8xf32>
    %47 = vector.shape_cast %46 : vector<1x1x32x8xf32> to vector<32x8xf32>
    %cst_40 = arith.constant dense<0.000000e+00> : vector<32x8xf32>
    %48 = tpu.matmul %31, %47, %cst_40 {dimension_numbers = #tpu.dot_dimension_numbers<[1], [0], [0], [1], [0, 0, 1, 1], [], []>} : vector<32x32xf32>, vector<32x8xf32>, vector<32x8xf32> -> vector<32x8xf32>
    %c0_41 = arith.constant 0 : index
    %c0_42 = arith.constant 0 : index
    %c0_43 = arith.constant 0 : index
    %c0_44 = arith.constant 0 : index
    %49 = vector.load %arg12[%c0_41, %c0_42, %c0_43, %c0_44] : memref<2x4x1x8xf32, #tpu.memory_space<vmem>>, vector<1x1x1x8xf32>
    %50 = vector.shape_cast %49 : vector<1x1x1x8xf32> to vector<1x8xf32>
    %51 = vector.broadcast %50 : vector<1x8xf32> to vector<32x8xf32>
    %52 = arith.addf %48, %51 : vector<32x8xf32>
    %53 = tpu.transpose %45, [1, 0] : vector<32x8xf32> -> vector<8x32xf32>
    %cst_45 = arith.constant dense<0.000000e+00> : vector<32x32xf32>
    %54 = tpu.matmul %38, %53, %cst_45 {dimension_numbers = #tpu.dot_dimension_numbers<[1], [0], [0], [1], [0, 0, 1, 1], [], []>} : vector<32x8xf32>, vector<8x32xf32>, vector<32x32xf32> -> vector<32x32xf32>
    %55 = arith.addf %54, %5 : vector<32x32xf32>
    %cst_46 = arith.constant dense<0xFF800000> : vector<32xf32>
    %56 = vector.multi_reduction <maximumf>, %55, %cst_46 [1] : vector<32x32xf32> to vector<32xf32>
    %57 = vector.shape_cast %56 : vector<32xf32> to vector<32x1xf32>
    %58 = vector.broadcast %57 : vector<32x1xf32> to vector<32x32xf32>
    %59 = arith.subf %55, %58 : vector<32x32xf32>
    %60 = math.exp %59 : vector<32x32xf32>
    %cst_47 = arith.constant dense<0.000000e+00> : vector<32xf32>
    %61 = vector.multi_reduction <add>, %60, %cst_47 [1] : vector<32x32xf32> to vector<32xf32>
    %62 = vector.shape_cast %61 : vector<32xf32> to vector<32x1xf32>
    %63 = tpu.reciprocal %62 {approx = true} : vector<32x1xf32> -> vector<32x1xf32>
    %64 = vector.broadcast %63 : vector<32x1xf32> to vector<32x32xf32>
    %65 = arith.mulf %60, %64 : vector<32x32xf32>
    %cst_48 = arith.constant dense<0.000000e+00> : vector<32x8xf32>
    %66 = tpu.matmul %65, %52, %cst_48 {dimension_numbers = #tpu.dot_dimension_numbers<[1], [0], [0], [1], [0, 0, 1, 1], [], []>} : vector<32x32xf32>, vector<32x8xf32>, vector<32x8xf32> -> vector<32x8xf32>
    %c0_49 = arith.constant 0 : index
    %c0_50 = arith.constant 0 : index
    %c0_51 = arith.constant 0 : index
    %c0_52 = arith.constant 0 : index
    %67 = vector.load %arg13[%c0_49, %c0_50, %c0_51, %c0_52] : memref<2x4x8x32xf32, #tpu.memory_space<vmem>>, vector<1x1x8x32xf32>
    %68 = vector.shape_cast %67 : vector<1x1x8x32xf32> to vector<8x32xf32>
    %cst_53 = arith.constant dense<0.000000e+00> : vector<32x32xf32>
    %69 = tpu.matmul %66, %68, %cst_53 {dimension_numbers = #tpu.dot_dimension_numbers<[1], [0], [0], [1], [0, 0, 1, 1], [], []>} : vector<32x8xf32>, vector<8x32xf32>, vector<32x32xf32> -> vector<32x32xf32>
    %c0_54 = arith.constant 0 : index
    %c1 = arith.constant 1 : index
    %c0_55 = arith.constant 0 : index
    %c0_56 = arith.constant 0 : index
    %70 = vector.load %arg7[%c0_54, %c1, %c0_55, %c0_56] : memref<2x4x32x8xf32, #tpu.memory_space<vmem>>, vector<1x1x32x8xf32>
    %71 = vector.shape_cast %70 : vector<1x1x32x8xf32> to vector<32x8xf32>
    %cst_57 = arith.constant dense<0.000000e+00> : vector<32x8xf32>
    %72 = tpu.matmul %31, %71, %cst_57 {dimension_numbers = #tpu.dot_dimension_numbers<[1], [0], [0], [1], [0, 0, 1, 1], [], []>} : vector<32x32xf32>, vector<32x8xf32>, vector<32x8xf32> -> vector<32x8xf32>
    %c0_58 = arith.constant 0 : index
    %c1_59 = arith.constant 1 : index
    %c0_60 = arith.constant 0 : index
    %c0_61 = arith.constant 0 : index
    %73 = vector.load %arg8[%c0_58, %c1_59, %c0_60, %c0_61] : memref<2x4x1x8xf32, #tpu.memory_space<vmem>>, vector<1x1x1x8xf32>
    %74 = vector.shape_cast %73 : vector<1x1x1x8xf32> to vector<1x8xf32>
    %75 = vector.broadcast %74 : vector<1x8xf32> to vector<32x8xf32>
    %76 = arith.addf %72, %75 : vector<32x8xf32>
    %c0_62 = arith.constant 0 : index
    %c1_63 = arith.constant 1 : index
    %c0_64 = arith.constant 0 : index
    %c0_65 = arith.constant 0 : index
    %77 = vector.load %arg9[%c0_62, %c1_63, %c0_64, %c0_65] : memref<2x4x32x8xf32, #tpu.memory_space<vmem>>, vector<1x1x32x8xf32>
    %78 = vector.shape_cast %77 : vector<1x1x32x8xf32> to vector<32x8xf32>
    %cst_66 = arith.constant dense<0.000000e+00> : vector<32x8xf32>
    %79 = tpu.matmul %31, %78, %cst_66 {dimension_numbers = #tpu.dot_dimension_numbers<[1], [0], [0], [1], [0, 0, 1, 1], [], []>} : vector<32x32xf32>, vector<32x8xf32>, vector<32x8xf32> -> vector<32x8xf32>
    %c0_67 = arith.constant 0 : index
    %c1_68 = arith.constant 1 : index
    %c0_69 = arith.constant 0 : index
    %c0_70 = arith.constant 0 : index
    %80 = vector.load %arg10[%c0_67, %c1_68, %c0_69, %c0_70] : memref<2x4x1x8xf32, #tpu.memory_space<vmem>>, vector<1x1x1x8xf32>
    %81 = vector.shape_cast %80 : vector<1x1x1x8xf32> to vector<1x8xf32>
    %82 = vector.broadcast %81 : vector<1x8xf32> to vector<32x8xf32>
    %83 = arith.addf %79, %82 : vector<32x8xf32>
    %c0_71 = arith.constant 0 : index
    %c1_72 = arith.constant 1 : index
    %c0_73 = arith.constant 0 : index
    %c0_74 = arith.constant 0 : index
    %84 = vector.load %arg11[%c0_71, %c1_72, %c0_73, %c0_74] : memref<2x4x32x8xf32, #tpu.memory_space<vmem>>, vector<1x1x32x8xf32>
    %85 = vector.shape_cast %84 : vector<1x1x32x8xf32> to vector<32x8xf32>
    %cst_75 = arith.constant dense<0.000000e+00> : vector<32x8xf32>
    %86 = tpu.matmul %31, %85, %cst_75 {dimension_numbers = #tpu.dot_dimension_numbers<[1], [0], [0], [1], [0, 0, 1, 1], [], []>} : vector<32x32xf32>, vector<32x8xf32>, vector<32x8xf32> -> vector<32x8xf32>
    %c0_76 = arith.constant 0 : index
    %c1_77 = arith.constant 1 : index
    %c0_78 = arith.constant 0 : index
    %c0_79 = arith.constant 0 : index
    %87 = vector.load %arg12[%c0_76, %c1_77, %c0_78, %c0_79] : memref<2x4x1x8xf32, #tpu.memory_space<vmem>>, vector<1x1x1x8xf32>
    %88 = vector.shape_cast %87 : vector<1x1x1x8xf32> to vector<1x8xf32>
    %89 = vector.broadcast %88 : vector<1x8xf32> to vector<32x8xf32>
    %90 = arith.addf %86, %89 : vector<32x8xf32>
    %91 = tpu.transpose %83, [1, 0] : vector<32x8xf32> -> vector<8x32xf32>
    %cst_80 = arith.constant dense<0.000000e+00> : vector<32x32xf32>
    %92 = tpu.matmul %76, %91, %cst_80 {dimension_numbers = #tpu.dot_dimension_numbers<[1], [0], [0], [1], [0, 0, 1, 1], [], []>} : vector<32x8xf32>, vector<8x32xf32>, vector<32x32xf32> -> vector<32x32xf32>
    %93 = arith.addf %92, %5 : vector<32x32xf32>
    %cst_81 = arith.constant dense<0xFF800000> : vector<32xf32>
    %94 = vector.multi_reduction <maximumf>, %93, %cst_81 [1] : vector<32x32xf32> to vector<32xf32>
    %95 = vector.shape_cast %94 : vector<32xf32> to vector<32x1xf32>
    %96 = vector.broadcast %95 : vector<32x1xf32> to vector<32x32xf32>
    %97 = arith.subf %93, %96 : vector<32x32xf32>
    %98 = math.exp %97 : vector<32x32xf32>
    %cst_82 = arith.constant dense<0.000000e+00> : vector<32xf32>
    %99 = vector.multi_reduction <add>, %98, %cst_82 [1] : vector<32x32xf32> to vector<32xf32>
    %100 = vector.shape_cast %99 : vector<32xf32> to vector<32x1xf32>
    %101 = tpu.reciprocal %100 {approx = true} : vector<32x1xf32> -> vector<32x1xf32>
    %102 = vector.broadcast %101 : vector<32x1xf32> to vector<32x32xf32>
    %103 = arith.mulf %98, %102 : vector<32x32xf32>
    %cst_83 = arith.constant dense<0.000000e+00> : vector<32x8xf32>
    %104 = tpu.matmul %103, %90, %cst_83 {dimension_numbers = #tpu.dot_dimension_numbers<[1], [0], [0], [1], [0, 0, 1, 1], [], []>} : vector<32x32xf32>, vector<32x8xf32>, vector<32x8xf32> -> vector<32x8xf32>
    %c0_84 = arith.constant 0 : index
    %c1_85 = arith.constant 1 : index
    %c0_86 = arith.constant 0 : index
    %c0_87 = arith.constant 0 : index
    %105 = vector.load %arg13[%c0_84, %c1_85, %c0_86, %c0_87] : memref<2x4x8x32xf32, #tpu.memory_space<vmem>>, vector<1x1x8x32xf32>
    %106 = vector.shape_cast %105 : vector<1x1x8x32xf32> to vector<8x32xf32>
    %cst_88 = arith.constant dense<0.000000e+00> : vector<32x32xf32>
    %107 = tpu.matmul %104, %106, %cst_88 {dimension_numbers = #tpu.dot_dimension_numbers<[1], [0], [0], [1], [0, 0, 1, 1], [], []>} : vector<32x8xf32>, vector<8x32xf32>, vector<32x32xf32> -> vector<32x32xf32>
    %108 = arith.addf %69, %107 : vector<32x32xf32>
    %c0_89 = arith.constant 0 : index
    %c2 = arith.constant 2 : index
    %c0_90 = arith.constant 0 : index
    %c0_91 = arith.constant 0 : index
    %109 = vector.load %arg7[%c0_89, %c2, %c0_90, %c0_91] : memref<2x4x32x8xf32, #tpu.memory_space<vmem>>, vector<1x1x32x8xf32>
    %110 = vector.shape_cast %109 : vector<1x1x32x8xf32> to vector<32x8xf32>
    %cst_92 = arith.constant dense<0.000000e+00> : vector<32x8xf32>
    %111 = tpu.matmul %31, %110, %cst_92 {dimension_numbers = #tpu.dot_dimension_numbers<[1], [0], [0], [1], [0, 0, 1, 1], [], []>} : vector<32x32xf32>, vector<32x8xf32>, vector<32x8xf32> -> vector<32x8xf32>
    %c0_93 = arith.constant 0 : index
    %c2_94 = arith.constant 2 : index
    %c0_95 = arith.constant 0 : index
    %c0_96 = arith.constant 0 : index
    %112 = vector.load %arg8[%c0_93, %c2_94, %c0_95, %c0_96] : memref<2x4x1x8xf32, #tpu.memory_space<vmem>>, vector<1x1x1x8xf32>
    %113 = vector.shape_cast %112 : vector<1x1x1x8xf32> to vector<1x8xf32>
    %114 = vector.broadcast %113 : vector<1x8xf32> to vector<32x8xf32>
    %115 = arith.addf %111, %114 : vector<32x8xf32>
    %c0_97 = arith.constant 0 : index
    %c2_98 = arith.constant 2 : index
    %c0_99 = arith.constant 0 : index
    %c0_100 = arith.constant 0 : index
    %116 = vector.load %arg9[%c0_97, %c2_98, %c0_99, %c0_100] : memref<2x4x32x8xf32, #tpu.memory_space<vmem>>, vector<1x1x32x8xf32>
    %117 = vector.shape_cast %116 : vector<1x1x32x8xf32> to vector<32x8xf32>
    %cst_101 = arith.constant dense<0.000000e+00> : vector<32x8xf32>
    %118 = tpu.matmul %31, %117, %cst_101 {dimension_numbers = #tpu.dot_dimension_numbers<[1], [0], [0], [1], [0, 0, 1, 1], [], []>} : vector<32x32xf32>, vector<32x8xf32>, vector<32x8xf32> -> vector<32x8xf32>
    %c0_102 = arith.constant 0 : index
    %c2_103 = arith.constant 2 : index
    %c0_104 = arith.constant 0 : index
    %c0_105 = arith.constant 0 : index
    %119 = vector.load %arg10[%c0_102, %c2_103, %c0_104, %c0_105] : memref<2x4x1x8xf32, #tpu.memory_space<vmem>>, vector<1x1x1x8xf32>
    %120 = vector.shape_cast %119 : vector<1x1x1x8xf32> to vector<1x8xf32>
    %121 = vector.broadcast %120 : vector<1x8xf32> to vector<32x8xf32>
    %122 = arith.addf %118, %121 : vector<32x8xf32>
    %c0_106 = arith.constant 0 : index
    %c2_107 = arith.constant 2 : index
    %c0_108 = arith.constant 0 : index
    %c0_109 = arith.constant 0 : index
    %123 = vector.load %arg11[%c0_106, %c2_107, %c0_108, %c0_109] : memref<2x4x32x8xf32, #tpu.memory_space<vmem>>, vector<1x1x32x8xf32>
    %124 = vector.shape_cast %123 : vector<1x1x32x8xf32> to vector<32x8xf32>
    %cst_110 = arith.constant dense<0.000000e+00> : vector<32x8xf32>
    %125 = tpu.matmul %31, %124, %cst_110 {dimension_numbers = #tpu.dot_dimension_numbers<[1], [0], [0], [1], [0, 0, 1, 1], [], []>} : vector<32x32xf32>, vector<32x8xf32>, vector<32x8xf32> -> vector<32x8xf32>
    %c0_111 = arith.constant 0 : index
    %c2_112 = arith.constant 2 : index
    %c0_113 = arith.constant 0 : index
    %c0_114 = arith.constant 0 : index
    %126 = vector.load %arg12[%c0_111, %c2_112, %c0_113, %c0_114] : memref<2x4x1x8xf32, #tpu.memory_space<vmem>>, vector<1x1x1x8xf32>
    %127 = vector.shape_cast %126 : vector<1x1x1x8xf32> to vector<1x8xf32>
    %128 = vector.broadcast %127 : vector<1x8xf32> to vector<32x8xf32>
    %129 = arith.addf %125, %128 : vector<32x8xf32>
    %130 = tpu.transpose %122, [1, 0] : vector<32x8xf32> -> vector<8x32xf32>
    %cst_115 = arith.constant dense<0.000000e+00> : vector<32x32xf32>
    %131 = tpu.matmul %115, %130, %cst_115 {dimension_numbers = #tpu.dot_dimension_numbers<[1], [0], [0], [1], [0, 0, 1, 1], [], []>} : vector<32x8xf32>, vector<8x32xf32>, vector<32x32xf32> -> vector<32x32xf32>
    %132 = arith.addf %131, %5 : vector<32x32xf32>
    %cst_116 = arith.constant dense<0xFF800000> : vector<32xf32>
    %133 = vector.multi_reduction <maximumf>, %132, %cst_116 [1] : vector<32x32xf32> to vector<32xf32>
    %134 = vector.shape_cast %133 : vector<32xf32> to vector<32x1xf32>
    %135 = vector.broadcast %134 : vector<32x1xf32> to vector<32x32xf32>
    %136 = arith.subf %132, %135 : vector<32x32xf32>
    %137 = math.exp %136 : vector<32x32xf32>
    %cst_117 = arith.constant dense<0.000000e+00> : vector<32xf32>
    %138 = vector.multi_reduction <add>, %137, %cst_117 [1] : vector<32x32xf32> to vector<32xf32>
    %139 = vector.shape_cast %138 : vector<32xf32> to vector<32x1xf32>
    %140 = tpu.reciprocal %139 {approx = true} : vector<32x1xf32> -> vector<32x1xf32>
    %141 = vector.broadcast %140 : vector<32x1xf32> to vector<32x32xf32>
    %142 = arith.mulf %137, %141 : vector<32x32xf32>
    %cst_118 = arith.constant dense<0.000000e+00> : vector<32x8xf32>
    %143 = tpu.matmul %142, %129, %cst_118 {dimension_numbers = #tpu.dot_dimension_numbers<[1], [0], [0], [1], [0, 0, 1, 1], [], []>} : vector<32x32xf32>, vector<32x8xf32>, vector<32x8xf32> -> vector<32x8xf32>
    %c0_119 = arith.constant 0 : index
    %c2_120 = arith.constant 2 : index
    %c0_121 = arith.constant 0 : index
    %c0_122 = arith.constant 0 : index
    %144 = vector.load %arg13[%c0_119, %c2_120, %c0_121, %c0_122] : memref<2x4x8x32xf32, #tpu.memory_space<vmem>>, vector<1x1x8x32xf32>
    %145 = vector.shape_cast %144 : vector<1x1x8x32xf32> to vector<8x32xf32>
    %cst_123 = arith.constant dense<0.000000e+00> : vector<32x32xf32>
    %146 = tpu.matmul %143, %145, %cst_123 {dimension_numbers = #tpu.dot_dimension_numbers<[1], [0], [0], [1], [0, 0, 1, 1], [], []>} : vector<32x8xf32>, vector<8x32xf32>, vector<32x32xf32> -> vector<32x32xf32>
    %147 = arith.addf %108, %146 : vector<32x32xf32>
    %c0_124 = arith.constant 0 : index
    %c3 = arith.constant 3 : index
    %c0_125 = arith.constant 0 : index
    %c0_126 = arith.constant 0 : index
    %148 = vector.load %arg7[%c0_124, %c3, %c0_125, %c0_126] : memref<2x4x32x8xf32, #tpu.memory_space<vmem>>, vector<1x1x32x8xf32>
    %149 = vector.shape_cast %148 : vector<1x1x32x8xf32> to vector<32x8xf32>
    %cst_127 = arith.constant dense<0.000000e+00> : vector<32x8xf32>
    %150 = tpu.matmul %31, %149, %cst_127 {dimension_numbers = #tpu.dot_dimension_numbers<[1], [0], [0], [1], [0, 0, 1, 1], [], []>} : vector<32x32xf32>, vector<32x8xf32>, vector<32x8xf32> -> vector<32x8xf32>
    %c0_128 = arith.constant 0 : index
    %c3_129 = arith.constant 3 : index
    %c0_130 = arith.constant 0 : index
    %c0_131 = arith.constant 0 : index
    %151 = vector.load %arg8[%c0_128, %c3_129, %c0_130, %c0_131] : memref<2x4x1x8xf32, #tpu.memory_space<vmem>>, vector<1x1x1x8xf32>
    %152 = vector.shape_cast %151 : vector<1x1x1x8xf32> to vector<1x8xf32>
    %153 = vector.broadcast %152 : vector<1x8xf32> to vector<32x8xf32>
    %154 = arith.addf %150, %153 : vector<32x8xf32>
    %c0_132 = arith.constant 0 : index
    %c3_133 = arith.constant 3 : index
    %c0_134 = arith.constant 0 : index
    %c0_135 = arith.constant 0 : index
    %155 = vector.load %arg9[%c0_132, %c3_133, %c0_134, %c0_135] : memref<2x4x32x8xf32, #tpu.memory_space<vmem>>, vector<1x1x32x8xf32>
    %156 = vector.shape_cast %155 : vector<1x1x32x8xf32> to vector<32x8xf32>
    %cst_136 = arith.constant dense<0.000000e+00> : vector<32x8xf32>
    %157 = tpu.matmul %31, %156, %cst_136 {dimension_numbers = #tpu.dot_dimension_numbers<[1], [0], [0], [1], [0, 0, 1, 1], [], []>} : vector<32x32xf32>, vector<32x8xf32>, vector<32x8xf32> -> vector<32x8xf32>
    %c0_137 = arith.constant 0 : index
    %c3_138 = arith.constant 3 : index
    %c0_139 = arith.constant 0 : index
    %c0_140 = arith.constant 0 : index
    %158 = vector.load %arg10[%c0_137, %c3_138, %c0_139, %c0_140] : memref<2x4x1x8xf32, #tpu.memory_space<vmem>>, vector<1x1x1x8xf32>
    %159 = vector.shape_cast %158 : vector<1x1x1x8xf32> to vector<1x8xf32>
    %160 = vector.broadcast %159 : vector<1x8xf32> to vector<32x8xf32>
    %161 = arith.addf %157, %160 : vector<32x8xf32>
    %c0_141 = arith.constant 0 : index
    %c3_142 = arith.constant 3 : index
    %c0_143 = arith.constant 0 : index
    %c0_144 = arith.constant 0 : index
    %162 = vector.load %arg11[%c0_141, %c3_142, %c0_143, %c0_144] : memref<2x4x32x8xf32, #tpu.memory_space<vmem>>, vector<1x1x32x8xf32>
    %163 = vector.shape_cast %162 : vector<1x1x32x8xf32> to vector<32x8xf32>
    %cst_145 = arith.constant dense<0.000000e+00> : vector<32x8xf32>
    %164 = tpu.matmul %31, %163, %cst_145 {dimension_numbers = #tpu.dot_dimension_numbers<[1], [0], [0], [1], [0, 0, 1, 1], [], []>} : vector<32x32xf32>, vector<32x8xf32>, vector<32x8xf32> -> vector<32x8xf32>
    %c0_146 = arith.constant 0 : index
    %c3_147 = arith.constant 3 : index
    %c0_148 = arith.constant 0 : index
    %c0_149 = arith.constant 0 : index
    %165 = vector.load %arg12[%c0_146, %c3_147, %c0_148, %c0_149] : memref<2x4x1x8xf32, #tpu.memory_space<vmem>>, vector<1x1x1x8xf32>
    %166 = vector.shape_cast %165 : vector<1x1x1x8xf32> to vector<1x8xf32>
    %167 = vector.broadcast %166 : vector<1x8xf32> to vector<32x8xf32>
    %168 = arith.addf %164, %167 : vector<32x8xf32>
    %169 = tpu.transpose %161, [1, 0] : vector<32x8xf32> -> vector<8x32xf32>
    %cst_150 = arith.constant dense<0.000000e+00> : vector<32x32xf32>
    %170 = tpu.matmul %154, %169, %cst_150 {dimension_numbers = #tpu.dot_dimension_numbers<[1], [0], [0], [1], [0, 0, 1, 1], [], []>} : vector<32x8xf32>, vector<8x32xf32>, vector<32x32xf32> -> vector<32x32xf32>
    %171 = arith.addf %170, %5 : vector<32x32xf32>
    %cst_151 = arith.constant dense<0xFF800000> : vector<32xf32>
    %172 = vector.multi_reduction <maximumf>, %171, %cst_151 [1] : vector<32x32xf32> to vector<32xf32>
    %173 = vector.shape_cast %172 : vector<32xf32> to vector<32x1xf32>
    %174 = vector.broadcast %173 : vector<32x1xf32> to vector<32x32xf32>
    %175 = arith.subf %171, %174 : vector<32x32xf32>
    %176 = math.exp %175 : vector<32x32xf32>
    %cst_152 = arith.constant dense<0.000000e+00> : vector<32xf32>
    %177 = vector.multi_reduction <add>, %176, %cst_152 [1] : vector<32x32xf32> to vector<32xf32>
    %178 = vector.shape_cast %177 : vector<32xf32> to vector<32x1xf32>
    %179 = tpu.reciprocal %178 {approx = true} : vector<32x1xf32> -> vector<32x1xf32>
    %180 = vector.broadcast %179 : vector<32x1xf32> to vector<32x32xf32>
    %181 = arith.mulf %176, %180 : vector<32x32xf32>
    %cst_153 = arith.constant dense<0.000000e+00> : vector<32x8xf32>
    %182 = tpu.matmul %181, %168, %cst_153 {dimension_numbers = #tpu.dot_dimension_numbers<[1], [0], [0], [1], [0, 0, 1, 1], [], []>} : vector<32x32xf32>, vector<32x8xf32>, vector<32x8xf32> -> vector<32x8xf32>
    %c0_154 = arith.constant 0 : index
    %c3_155 = arith.constant 3 : index
    %c0_156 = arith.constant 0 : index
    %c0_157 = arith.constant 0 : index
    %183 = vector.load %arg13[%c0_154, %c3_155, %c0_156, %c0_157] : memref<2x4x8x32xf32, #tpu.memory_space<vmem>>, vector<1x1x8x32xf32>
    %184 = vector.shape_cast %183 : vector<1x1x8x32xf32> to vector<8x32xf32>
    %cst_158 = arith.constant dense<0.000000e+00> : vector<32x32xf32>
    %185 = tpu.matmul %182, %184, %cst_158 {dimension_numbers = #tpu.dot_dimension_numbers<[1], [0], [0], [1], [0, 0, 1, 1], [], []>} : vector<32x8xf32>, vector<8x32xf32>, vector<32x32xf32> -> vector<32x32xf32>
    %186 = arith.addf %147, %185 : vector<32x32xf32>
    %187 = arith.addf %4, %186 : vector<32x32xf32>
    %c0_159 = arith.constant 0 : index
    %c0_160 = arith.constant 0 : index
    %c0_161 = arith.constant 0 : index
    %188 = vector.load %arg14[%c0_159, %c0_160, %c0_161] : memref<2x1x32xf32, #tpu.memory_space<vmem>>, vector<1x1x32xf32>
    %189 = vector.shape_cast %188 : vector<1x1x32xf32> to vector<1x32xf32>
    %190 = vector.broadcast %189 : vector<1x32xf32> to vector<32x32xf32>
    %191 = arith.addf %187, %190 : vector<32x32xf32>
    %c0_162 = arith.constant 0 : index
    %c0_163 = arith.constant 0 : index
    %c0_164 = arith.constant 0 : index
    %192 = vector.load %arg15[%c0_162, %c0_163, %c0_164] : memref<2x1x32xf32, #tpu.memory_space<vmem>>, vector<1x1x32xf32>
    %193 = vector.shape_cast %192 : vector<1x1x32xf32> to vector<1x32xf32>
    %c0_165 = arith.constant 0 : index
    %c0_166 = arith.constant 0 : index
    %c0_167 = arith.constant 0 : index
    %194 = vector.load %arg16[%c0_165, %c0_166, %c0_167] : memref<2x1x32xf32, #tpu.memory_space<vmem>>, vector<1x1x32xf32>
    %195 = vector.shape_cast %194 : vector<1x1x32xf32> to vector<1x32xf32>
    %cst_168 = arith.constant dense<0.000000e+00> : vector<32xf32>
    %196 = vector.multi_reduction <add>, %191, %cst_168 [1] : vector<32x32xf32> to vector<32xf32>
    %197 = vector.shape_cast %196 : vector<32xf32> to vector<32x1xf32>
    %cst_169 = arith.constant 3.200000e+01 : f32
    %198 = vector.broadcast %cst_169 : f32 to vector<32x1xf32>
    %199 = arith.divf %197, %198 : vector<32x1xf32>
    %200 = vector.broadcast %199 : vector<32x1xf32> to vector<32x32xf32>
    %201 = arith.subf %191, %200 : vector<32x32xf32>
    %202 = arith.mulf %201, %201 : vector<32x32xf32>
    %cst_170 = arith.constant dense<0.000000e+00> : vector<32xf32>
    %203 = vector.multi_reduction <add>, %202, %cst_170 [1] : vector<32x32xf32> to vector<32xf32>
    %204 = vector.shape_cast %203 : vector<32xf32> to vector<32x1xf32>
    %cst_171 = arith.constant 3.200000e+01 : f32
    %205 = vector.broadcast %cst_171 : f32 to vector<32x1xf32>
    %206 = arith.divf %204, %205 : vector<32x1xf32>
    %207 = vector.broadcast %199 : vector<32x1xf32> to vector<32x32xf32>
    %208 = arith.subf %191, %207 : vector<32x32xf32>
    %cst_172 = arith.constant 9.99999997E-7 : f32
    %209 = vector.broadcast %cst_172 : f32 to vector<32x1xf32>
    %210 = arith.addf %206, %209 : vector<32x1xf32>
    %211 = math.rsqrt %210 : vector<32x1xf32>
    %212 = vector.broadcast %211 : vector<32x1xf32> to vector<32x32xf32>
    %213 = arith.mulf %208, %212 : vector<32x32xf32>
    %214 = vector.broadcast %193 : vector<1x32xf32> to vector<32x32xf32>
    %215 = arith.mulf %213, %214 : vector<32x32xf32>
    %216 = vector.broadcast %195 : vector<1x32xf32> to vector<32x32xf32>
    %217 = arith.addf %215, %216 : vector<32x32xf32>
    %c0_173 = arith.constant 0 : index
    %c0_174 = arith.constant 0 : index
    %c0_175 = arith.constant 0 : index
    %218 = vector.load %arg17[%c0_173, %c0_174, %c0_175] : memref<2x32x64xf32, #tpu.memory_space<vmem>>, vector<1x32x64xf32>
    %219 = vector.shape_cast %218 : vector<1x32x64xf32> to vector<32x64xf32>
    %cst_176 = arith.constant dense<0.000000e+00> : vector<32x64xf32>
    %220 = tpu.matmul %217, %219, %cst_176 {dimension_numbers = #tpu.dot_dimension_numbers<[1], [0], [0], [1], [0, 0, 1, 1], [], []>} : vector<32x32xf32>, vector<32x64xf32>, vector<32x64xf32> -> vector<32x64xf32>
    %c0_177 = arith.constant 0 : index
    %c0_178 = arith.constant 0 : index
    %c0_179 = arith.constant 0 : index
    %221 = vector.load %arg18[%c0_177, %c0_178, %c0_179] : memref<2x1x64xf32, #tpu.memory_space<vmem>>, vector<1x1x64xf32>
    %222 = vector.shape_cast %221 : vector<1x1x64xf32> to vector<1x64xf32>
    %223 = vector.broadcast %222 : vector<1x64xf32> to vector<32x64xf32>
    %224 = arith.addf %220, %223 : vector<32x64xf32>
    %cst_180 = arith.constant 5.000000e-01 : f32
    %225 = vector.broadcast %cst_180 : f32 to vector<32x64xf32>
    %226 = arith.mulf %225, %224 : vector<32x64xf32>
    %cst_181 = arith.constant 4.471500e-02 : f32
    %227 = vector.broadcast %cst_181 : f32 to vector<32x64xf32>
    %228 = arith.mulf %227, %224 : vector<32x64xf32>
    %229 = arith.mulf %228, %224 : vector<32x64xf32>
    %230 = arith.mulf %229, %224 : vector<32x64xf32>
    %231 = arith.addf %224, %230 : vector<32x64xf32>
    %cst_182 = arith.constant 0.797884583 : f32
    %232 = vector.broadcast %cst_182 : f32 to vector<32x64xf32>
    %233 = arith.mulf %232, %231 : vector<32x64xf32>
    %234 = math.tanh %233 : vector<32x64xf32>
    %cst_183 = arith.constant 1.000000e+00 : f32
    %235 = vector.broadcast %cst_183 : f32 to vector<32x64xf32>
    %236 = arith.addf %235, %234 : vector<32x64xf32>
    %237 = arith.mulf %226, %236 : vector<32x64xf32>
    %c0_184 = arith.constant 0 : index
    %c0_185 = arith.constant 0 : index
    %c0_186 = arith.constant 0 : index
    %238 = vector.load %arg19[%c0_184, %c0_185, %c0_186] : memref<2x64x32xf32, #tpu.memory_space<vmem>>, vector<1x64x32xf32>
    %239 = vector.shape_cast %238 : vector<1x64x32xf32> to vector<64x32xf32>
    %cst_187 = arith.constant dense<0.000000e+00> : vector<32x32xf32>
    %240 = tpu.matmul %237, %239, %cst_187 {dimension_numbers = #tpu.dot_dimension_numbers<[1], [0], [0], [1], [0, 0, 1, 1], [], []>} : vector<32x64xf32>, vector<64x32xf32>, vector<32x32xf32> -> vector<32x32xf32>
    %c0_188 = arith.constant 0 : index
    %c0_189 = arith.constant 0 : index
    %c0_190 = arith.constant 0 : index
    %241 = vector.load %arg20[%c0_188, %c0_189, %c0_190] : memref<2x1x32xf32, #tpu.memory_space<vmem>>, vector<1x1x32xf32>
    %242 = vector.shape_cast %241 : vector<1x1x32xf32> to vector<1x32xf32>
    %243 = vector.broadcast %242 : vector<1x32xf32> to vector<32x32xf32>
    %244 = arith.addf %240, %243 : vector<32x32xf32>
    %245 = arith.addf %191, %244 : vector<32x32xf32>
    %c1_191 = arith.constant 1 : index
    %c0_192 = arith.constant 0 : index
    %c0_193 = arith.constant 0 : index
    %246 = vector.load %arg5[%c1_191, %c0_192, %c0_193] : memref<2x1x32xf32, #tpu.memory_space<vmem>>, vector<1x1x32xf32>
    %247 = vector.shape_cast %246 : vector<1x1x32xf32> to vector<1x32xf32>
    %c1_194 = arith.constant 1 : index
    %c0_195 = arith.constant 0 : index
    %c0_196 = arith.constant 0 : index
    %248 = vector.load %arg6[%c1_194, %c0_195, %c0_196] : memref<2x1x32xf32, #tpu.memory_space<vmem>>, vector<1x1x32xf32>
    %249 = vector.shape_cast %248 : vector<1x1x32xf32> to vector<1x32xf32>
    %cst_197 = arith.constant dense<0.000000e+00> : vector<32xf32>
    %250 = vector.multi_reduction <add>, %245, %cst_197 [1] : vector<32x32xf32> to vector<32xf32>
    %251 = vector.shape_cast %250 : vector<32xf32> to vector<32x1xf32>
    %cst_198 = arith.constant 3.200000e+01 : f32
    %252 = vector.broadcast %cst_198 : f32 to vector<32x1xf32>
    %253 = arith.divf %251, %252 : vector<32x1xf32>
    %254 = vector.broadcast %253 : vector<32x1xf32> to vector<32x32xf32>
    %255 = arith.subf %245, %254 : vector<32x32xf32>
    %256 = arith.mulf %255, %255 : vector<32x32xf32>
    %cst_199 = arith.constant dense<0.000000e+00> : vector<32xf32>
    %257 = vector.multi_reduction <add>, %256, %cst_199 [1] : vector<32x32xf32> to vector<32xf32>
    %258 = vector.shape_cast %257 : vector<32xf32> to vector<32x1xf32>
    %cst_200 = arith.constant 3.200000e+01 : f32
    %259 = vector.broadcast %cst_200 : f32 to vector<32x1xf32>
    %260 = arith.divf %258, %259 : vector<32x1xf32>
    %261 = vector.broadcast %253 : vector<32x1xf32> to vector<32x32xf32>
    %262 = arith.subf %245, %261 : vector<32x32xf32>
    %cst_201 = arith.constant 9.99999997E-7 : f32
    %263 = vector.broadcast %cst_201 : f32 to vector<32x1xf32>
    %264 = arith.addf %260, %263 : vector<32x1xf32>
    %265 = math.rsqrt %264 : vector<32x1xf32>
    %266 = vector.broadcast %265 : vector<32x1xf32> to vector<32x32xf32>
    %267 = arith.mulf %262, %266 : vector<32x32xf32>
    %268 = vector.broadcast %247 : vector<1x32xf32> to vector<32x32xf32>
    %269 = arith.mulf %267, %268 : vector<32x32xf32>
    %270 = vector.broadcast %249 : vector<1x32xf32> to vector<32x32xf32>
    %271 = arith.addf %269, %270 : vector<32x32xf32>
    %c1_202 = arith.constant 1 : index
    %c0_203 = arith.constant 0 : index
    %c0_204 = arith.constant 0 : index
    %c0_205 = arith.constant 0 : index
    %272 = vector.load %arg7[%c1_202, %c0_203, %c0_204, %c0_205] : memref<2x4x32x8xf32, #tpu.memory_space<vmem>>, vector<1x1x32x8xf32>
    %273 = vector.shape_cast %272 : vector<1x1x32x8xf32> to vector<32x8xf32>
    %cst_206 = arith.constant dense<0.000000e+00> : vector<32x8xf32>
    %274 = tpu.matmul %271, %273, %cst_206 {dimension_numbers = #tpu.dot_dimension_numbers<[1], [0], [0], [1], [0, 0, 1, 1], [], []>} : vector<32x32xf32>, vector<32x8xf32>, vector<32x8xf32> -> vector<32x8xf32>
    %c1_207 = arith.constant 1 : index
    %c0_208 = arith.constant 0 : index
    %c0_209 = arith.constant 0 : index
    %c0_210 = arith.constant 0 : index
    %275 = vector.load %arg8[%c1_207, %c0_208, %c0_209, %c0_210] : memref<2x4x1x8xf32, #tpu.memory_space<vmem>>, vector<1x1x1x8xf32>
    %276 = vector.shape_cast %275 : vector<1x1x1x8xf32> to vector<1x8xf32>
    %277 = vector.broadcast %276 : vector<1x8xf32> to vector<32x8xf32>
    %278 = arith.addf %274, %277 : vector<32x8xf32>
    %c1_211 = arith.constant 1 : index
    %c0_212 = arith.constant 0 : index
    %c0_213 = arith.constant 0 : index
    %c0_214 = arith.constant 0 : index
    %279 = vector.load %arg9[%c1_211, %c0_212, %c0_213, %c0_214] : memref<2x4x32x8xf32, #tpu.memory_space<vmem>>, vector<1x1x32x8xf32>
    %280 = vector.shape_cast %279 : vector<1x1x32x8xf32> to vector<32x8xf32>
    %cst_215 = arith.constant dense<0.000000e+00> : vector<32x8xf32>
    %281 = tpu.matmul %271, %280, %cst_215 {dimension_numbers = #tpu.dot_dimension_numbers<[1], [0], [0], [1], [0, 0, 1, 1], [], []>} : vector<32x32xf32>, vector<32x8xf32>, vector<32x8xf32> -> vector<32x8xf32>
    %c1_216 = arith.constant 1 : index
    %c0_217 = arith.constant 0 : index
    %c0_218 = arith.constant 0 : index
    %c0_219 = arith.constant 0 : index
    %282 = vector.load %arg10[%c1_216, %c0_217, %c0_218, %c0_219] : memref<2x4x1x8xf32, #tpu.memory_space<vmem>>, vector<1x1x1x8xf32>
    %283 = vector.shape_cast %282 : vector<1x1x1x8xf32> to vector<1x8xf32>
    %284 = vector.broadcast %283 : vector<1x8xf32> to vector<32x8xf32>
    %285 = arith.addf %281, %284 : vector<32x8xf32>
    %c1_220 = arith.constant 1 : index
    %c0_221 = arith.constant 0 : index
    %c0_222 = arith.constant 0 : index
    %c0_223 = arith.constant 0 : index
    %286 = vector.load %arg11[%c1_220, %c0_221, %c0_222, %c0_223] : memref<2x4x32x8xf32, #tpu.memory_space<vmem>>, vector<1x1x32x8xf32>
    %287 = vector.shape_cast %286 : vector<1x1x32x8xf32> to vector<32x8xf32>
    %cst_224 = arith.constant dense<0.000000e+00> : vector<32x8xf32>
    %288 = tpu.matmul %271, %287, %cst_224 {dimension_numbers = #tpu.dot_dimension_numbers<[1], [0], [0], [1], [0, 0, 1, 1], [], []>} : vector<32x32xf32>, vector<32x8xf32>, vector<32x8xf32> -> vector<32x8xf32>
    %c1_225 = arith.constant 1 : index
    %c0_226 = arith.constant 0 : index
    %c0_227 = arith.constant 0 : index
    %c0_228 = arith.constant 0 : index
    %289 = vector.load %arg12[%c1_225, %c0_226, %c0_227, %c0_228] : memref<2x4x1x8xf32, #tpu.memory_space<vmem>>, vector<1x1x1x8xf32>
    %290 = vector.shape_cast %289 : vector<1x1x1x8xf32> to vector<1x8xf32>
    %291 = vector.broadcast %290 : vector<1x8xf32> to vector<32x8xf32>
    %292 = arith.addf %288, %291 : vector<32x8xf32>
    %293 = tpu.transpose %285, [1, 0] : vector<32x8xf32> -> vector<8x32xf32>
    %cst_229 = arith.constant dense<0.000000e+00> : vector<32x32xf32>
    %294 = tpu.matmul %278, %293, %cst_229 {dimension_numbers = #tpu.dot_dimension_numbers<[1], [0], [0], [1], [0, 0, 1, 1], [], []>} : vector<32x8xf32>, vector<8x32xf32>, vector<32x32xf32> -> vector<32x32xf32>
    %295 = arith.addf %294, %5 : vector<32x32xf32>
    %cst_230 = arith.constant dense<0xFF800000> : vector<32xf32>
    %296 = vector.multi_reduction <maximumf>, %295, %cst_230 [1] : vector<32x32xf32> to vector<32xf32>
    %297 = vector.shape_cast %296 : vector<32xf32> to vector<32x1xf32>
    %298 = vector.broadcast %297 : vector<32x1xf32> to vector<32x32xf32>
    %299 = arith.subf %295, %298 : vector<32x32xf32>
    %300 = math.exp %299 : vector<32x32xf32>
    %cst_231 = arith.constant dense<0.000000e+00> : vector<32xf32>
    %301 = vector.multi_reduction <add>, %300, %cst_231 [1] : vector<32x32xf32> to vector<32xf32>
    %302 = vector.shape_cast %301 : vector<32xf32> to vector<32x1xf32>
    %303 = tpu.reciprocal %302 {approx = true} : vector<32x1xf32> -> vector<32x1xf32>
    %304 = vector.broadcast %303 : vector<32x1xf32> to vector<32x32xf32>
    %305 = arith.mulf %300, %304 : vector<32x32xf32>
    %cst_232 = arith.constant dense<0.000000e+00> : vector<32x8xf32>
    %306 = tpu.matmul %305, %292, %cst_232 {dimension_numbers = #tpu.dot_dimension_numbers<[1], [0], [0], [1], [0, 0, 1, 1], [], []>} : vector<32x32xf32>, vector<32x8xf32>, vector<32x8xf32> -> vector<32x8xf32>
    %c1_233 = arith.constant 1 : index
    %c0_234 = arith.constant 0 : index
    %c0_235 = arith.constant 0 : index
    %c0_236 = arith.constant 0 : index
    %307 = vector.load %arg13[%c1_233, %c0_234, %c0_235, %c0_236] : memref<2x4x8x32xf32, #tpu.memory_space<vmem>>, vector<1x1x8x32xf32>
    %308 = vector.shape_cast %307 : vector<1x1x8x32xf32> to vector<8x32xf32>
    %cst_237 = arith.constant dense<0.000000e+00> : vector<32x32xf32>
    %309 = tpu.matmul %306, %308, %cst_237 {dimension_numbers = #tpu.dot_dimension_numbers<[1], [0], [0], [1], [0, 0, 1, 1], [], []>} : vector<32x8xf32>, vector<8x32xf32>, vector<32x32xf32> -> vector<32x32xf32>
    %c1_238 = arith.constant 1 : index
    %c1_239 = arith.constant 1 : index
    %c0_240 = arith.constant 0 : index
    %c0_241 = arith.constant 0 : index
    %310 = vector.load %arg7[%c1_238, %c1_239, %c0_240, %c0_241] : memref<2x4x32x8xf32, #tpu.memory_space<vmem>>, vector<1x1x32x8xf32>
    %311 = vector.shape_cast %310 : vector<1x1x32x8xf32> to vector<32x8xf32>
    %cst_242 = arith.constant dense<0.000000e+00> : vector<32x8xf32>
    %312 = tpu.matmul %271, %311, %cst_242 {dimension_numbers = #tpu.dot_dimension_numbers<[1], [0], [0], [1], [0, 0, 1, 1], [], []>} : vector<32x32xf32>, vector<32x8xf32>, vector<32x8xf32> -> vector<32x8xf32>
    %c1_243 = arith.constant 1 : index
    %c1_244 = arith.constant 1 : index
    %c0_245 = arith.constant 0 : index
    %c0_246 = arith.constant 0 : index
    %313 = vector.load %arg8[%c1_243, %c1_244, %c0_245, %c0_246] : memref<2x4x1x8xf32, #tpu.memory_space<vmem>>, vector<1x1x1x8xf32>
    %314 = vector.shape_cast %313 : vector<1x1x1x8xf32> to vector<1x8xf32>
    %315 = vector.broadcast %314 : vector<1x8xf32> to vector<32x8xf32>
    %316 = arith.addf %312, %315 : vector<32x8xf32>
    %c1_247 = arith.constant 1 : index
    %c1_248 = arith.constant 1 : index
    %c0_249 = arith.constant 0 : index
    %c0_250 = arith.constant 0 : index
    %317 = vector.load %arg9[%c1_247, %c1_248, %c0_249, %c0_250] : memref<2x4x32x8xf32, #tpu.memory_space<vmem>>, vector<1x1x32x8xf32>
    %318 = vector.shape_cast %317 : vector<1x1x32x8xf32> to vector<32x8xf32>
    %cst_251 = arith.constant dense<0.000000e+00> : vector<32x8xf32>
    %319 = tpu.matmul %271, %318, %cst_251 {dimension_numbers = #tpu.dot_dimension_numbers<[1], [0], [0], [1], [0, 0, 1, 1], [], []>} : vector<32x32xf32>, vector<32x8xf32>, vector<32x8xf32> -> vector<32x8xf32>
    %c1_252 = arith.constant 1 : index
    %c1_253 = arith.constant 1 : index
    %c0_254 = arith.constant 0 : index
    %c0_255 = arith.constant 0 : index
    %320 = vector.load %arg10[%c1_252, %c1_253, %c0_254, %c0_255] : memref<2x4x1x8xf32, #tpu.memory_space<vmem>>, vector<1x1x1x8xf32>
    %321 = vector.shape_cast %320 : vector<1x1x1x8xf32> to vector<1x8xf32>
    %322 = vector.broadcast %321 : vector<1x8xf32> to vector<32x8xf32>
    %323 = arith.addf %319, %322 : vector<32x8xf32>
    %c1_256 = arith.constant 1 : index
    %c1_257 = arith.constant 1 : index
    %c0_258 = arith.constant 0 : index
    %c0_259 = arith.constant 0 : index
    %324 = vector.load %arg11[%c1_256, %c1_257, %c0_258, %c0_259] : memref<2x4x32x8xf32, #tpu.memory_space<vmem>>, vector<1x1x32x8xf32>
    %325 = vector.shape_cast %324 : vector<1x1x32x8xf32> to vector<32x8xf32>
    %cst_260 = arith.constant dense<0.000000e+00> : vector<32x8xf32>
    %326 = tpu.matmul %271, %325, %cst_260 {dimension_numbers = #tpu.dot_dimension_numbers<[1], [0], [0], [1], [0, 0, 1, 1], [], []>} : vector<32x32xf32>, vector<32x8xf32>, vector<32x8xf32> -> vector<32x8xf32>
    %c1_261 = arith.constant 1 : index
    %c1_262 = arith.constant 1 : index
    %c0_263 = arith.constant 0 : index
    %c0_264 = arith.constant 0 : index
    %327 = vector.load %arg12[%c1_261, %c1_262, %c0_263, %c0_264] : memref<2x4x1x8xf32, #tpu.memory_space<vmem>>, vector<1x1x1x8xf32>
    %328 = vector.shape_cast %327 : vector<1x1x1x8xf32> to vector<1x8xf32>
    %329 = vector.broadcast %328 : vector<1x8xf32> to vector<32x8xf32>
    %330 = arith.addf %326, %329 : vector<32x8xf32>
    %331 = tpu.transpose %323, [1, 0] : vector<32x8xf32> -> vector<8x32xf32>
    %cst_265 = arith.constant dense<0.000000e+00> : vector<32x32xf32>
    %332 = tpu.matmul %316, %331, %cst_265 {dimension_numbers = #tpu.dot_dimension_numbers<[1], [0], [0], [1], [0, 0, 1, 1], [], []>} : vector<32x8xf32>, vector<8x32xf32>, vector<32x32xf32> -> vector<32x32xf32>
    %333 = arith.addf %332, %5 : vector<32x32xf32>
    %cst_266 = arith.constant dense<0xFF800000> : vector<32xf32>
    %334 = vector.multi_reduction <maximumf>, %333, %cst_266 [1] : vector<32x32xf32> to vector<32xf32>
    %335 = vector.shape_cast %334 : vector<32xf32> to vector<32x1xf32>
    %336 = vector.broadcast %335 : vector<32x1xf32> to vector<32x32xf32>
    %337 = arith.subf %333, %336 : vector<32x32xf32>
    %338 = math.exp %337 : vector<32x32xf32>
    %cst_267 = arith.constant dense<0.000000e+00> : vector<32xf32>
    %339 = vector.multi_reduction <add>, %338, %cst_267 [1] : vector<32x32xf32> to vector<32xf32>
    %340 = vector.shape_cast %339 : vector<32xf32> to vector<32x1xf32>
    %341 = tpu.reciprocal %340 {approx = true} : vector<32x1xf32> -> vector<32x1xf32>
    %342 = vector.broadcast %341 : vector<32x1xf32> to vector<32x32xf32>
    %343 = arith.mulf %338, %342 : vector<32x32xf32>
    %cst_268 = arith.constant dense<0.000000e+00> : vector<32x8xf32>
    %344 = tpu.matmul %343, %330, %cst_268 {dimension_numbers = #tpu.dot_dimension_numbers<[1], [0], [0], [1], [0, 0, 1, 1], [], []>} : vector<32x32xf32>, vector<32x8xf32>, vector<32x8xf32> -> vector<32x8xf32>
    %c1_269 = arith.constant 1 : index
    %c1_270 = arith.constant 1 : index
    %c0_271 = arith.constant 0 : index
    %c0_272 = arith.constant 0 : index
    %345 = vector.load %arg13[%c1_269, %c1_270, %c0_271, %c0_272] : memref<2x4x8x32xf32, #tpu.memory_space<vmem>>, vector<1x1x8x32xf32>
    %346 = vector.shape_cast %345 : vector<1x1x8x32xf32> to vector<8x32xf32>
    %cst_273 = arith.constant dense<0.000000e+00> : vector<32x32xf32>
    %347 = tpu.matmul %344, %346, %cst_273 {dimension_numbers = #tpu.dot_dimension_numbers<[1], [0], [0], [1], [0, 0, 1, 1], [], []>} : vector<32x8xf32>, vector<8x32xf32>, vector<32x32xf32> -> vector<32x32xf32>
    %348 = arith.addf %309, %347 : vector<32x32xf32>
    %c1_274 = arith.constant 1 : index
    %c2_275 = arith.constant 2 : index
    %c0_276 = arith.constant 0 : index
    %c0_277 = arith.constant 0 : index
    %349 = vector.load %arg7[%c1_274, %c2_275, %c0_276, %c0_277] : memref<2x4x32x8xf32, #tpu.memory_space<vmem>>, vector<1x1x32x8xf32>
    %350 = vector.shape_cast %349 : vector<1x1x32x8xf32> to vector<32x8xf32>
    %cst_278 = arith.constant dense<0.000000e+00> : vector<32x8xf32>
    %351 = tpu.matmul %271, %350, %cst_278 {dimension_numbers = #tpu.dot_dimension_numbers<[1], [0], [0], [1], [0, 0, 1, 1], [], []>} : vector<32x32xf32>, vector<32x8xf32>, vector<32x8xf32> -> vector<32x8xf32>
    %c1_279 = arith.constant 1 : index
    %c2_280 = arith.constant 2 : index
    %c0_281 = arith.constant 0 : index
    %c0_282 = arith.constant 0 : index
    %352 = vector.load %arg8[%c1_279, %c2_280, %c0_281, %c0_282] : memref<2x4x1x8xf32, #tpu.memory_space<vmem>>, vector<1x1x1x8xf32>
    %353 = vector.shape_cast %352 : vector<1x1x1x8xf32> to vector<1x8xf32>
    %354 = vector.broadcast %353 : vector<1x8xf32> to vector<32x8xf32>
    %355 = arith.addf %351, %354 : vector<32x8xf32>
    %c1_283 = arith.constant 1 : index
    %c2_284 = arith.constant 2 : index
    %c0_285 = arith.constant 0 : index
    %c0_286 = arith.constant 0 : index
    %356 = vector.load %arg9[%c1_283, %c2_284, %c0_285, %c0_286] : memref<2x4x32x8xf32, #tpu.memory_space<vmem>>, vector<1x1x32x8xf32>
    %357 = vector.shape_cast %356 : vector<1x1x32x8xf32> to vector<32x8xf32>
    %cst_287 = arith.constant dense<0.000000e+00> : vector<32x8xf32>
    %358 = tpu.matmul %271, %357, %cst_287 {dimension_numbers = #tpu.dot_dimension_numbers<[1], [0], [0], [1], [0, 0, 1, 1], [], []>} : vector<32x32xf32>, vector<32x8xf32>, vector<32x8xf32> -> vector<32x8xf32>
    %c1_288 = arith.constant 1 : index
    %c2_289 = arith.constant 2 : index
    %c0_290 = arith.constant 0 : index
    %c0_291 = arith.constant 0 : index
    %359 = vector.load %arg10[%c1_288, %c2_289, %c0_290, %c0_291] : memref<2x4x1x8xf32, #tpu.memory_space<vmem>>, vector<1x1x1x8xf32>
    %360 = vector.shape_cast %359 : vector<1x1x1x8xf32> to vector<1x8xf32>
    %361 = vector.broadcast %360 : vector<1x8xf32> to vector<32x8xf32>
    %362 = arith.addf %358, %361 : vector<32x8xf32>
    %c1_292 = arith.constant 1 : index
    %c2_293 = arith.constant 2 : index
    %c0_294 = arith.constant 0 : index
    %c0_295 = arith.constant 0 : index
    %363 = vector.load %arg11[%c1_292, %c2_293, %c0_294, %c0_295] : memref<2x4x32x8xf32, #tpu.memory_space<vmem>>, vector<1x1x32x8xf32>
    %364 = vector.shape_cast %363 : vector<1x1x32x8xf32> to vector<32x8xf32>
    %cst_296 = arith.constant dense<0.000000e+00> : vector<32x8xf32>
    %365 = tpu.matmul %271, %364, %cst_296 {dimension_numbers = #tpu.dot_dimension_numbers<[1], [0], [0], [1], [0, 0, 1, 1], [], []>} : vector<32x32xf32>, vector<32x8xf32>, vector<32x8xf32> -> vector<32x8xf32>
    %c1_297 = arith.constant 1 : index
    %c2_298 = arith.constant 2 : index
    %c0_299 = arith.constant 0 : index
    %c0_300 = arith.constant 0 : index
    %366 = vector.load %arg12[%c1_297, %c2_298, %c0_299, %c0_300] : memref<2x4x1x8xf32, #tpu.memory_space<vmem>>, vector<1x1x1x8xf32>
    %367 = vector.shape_cast %366 : vector<1x1x1x8xf32> to vector<1x8xf32>
    %368 = vector.broadcast %367 : vector<1x8xf32> to vector<32x8xf32>
    %369 = arith.addf %365, %368 : vector<32x8xf32>
    %370 = tpu.transpose %362, [1, 0] : vector<32x8xf32> -> vector<8x32xf32>
    %cst_301 = arith.constant dense<0.000000e+00> : vector<32x32xf32>
    %371 = tpu.matmul %355, %370, %cst_301 {dimension_numbers = #tpu.dot_dimension_numbers<[1], [0], [0], [1], [0, 0, 1, 1], [], []>} : vector<32x8xf32>, vector<8x32xf32>, vector<32x32xf32> -> vector<32x32xf32>
    %372 = arith.addf %371, %5 : vector<32x32xf32>
    %cst_302 = arith.constant dense<0xFF800000> : vector<32xf32>
    %373 = vector.multi_reduction <maximumf>, %372, %cst_302 [1] : vector<32x32xf32> to vector<32xf32>
    %374 = vector.shape_cast %373 : vector<32xf32> to vector<32x1xf32>
    %375 = vector.broadcast %374 : vector<32x1xf32> to vector<32x32xf32>
    %376 = arith.subf %372, %375 : vector<32x32xf32>
    %377 = math.exp %376 : vector<32x32xf32>
    %cst_303 = arith.constant dense<0.000000e+00> : vector<32xf32>
    %378 = vector.multi_reduction <add>, %377, %cst_303 [1] : vector<32x32xf32> to vector<32xf32>
    %379 = vector.shape_cast %378 : vector<32xf32> to vector<32x1xf32>
    %380 = tpu.reciprocal %379 {approx = true} : vector<32x1xf32> -> vector<32x1xf32>
    %381 = vector.broadcast %380 : vector<32x1xf32> to vector<32x32xf32>
    %382 = arith.mulf %377, %381 : vector<32x32xf32>
    %cst_304 = arith.constant dense<0.000000e+00> : vector<32x8xf32>
    %383 = tpu.matmul %382, %369, %cst_304 {dimension_numbers = #tpu.dot_dimension_numbers<[1], [0], [0], [1], [0, 0, 1, 1], [], []>} : vector<32x32xf32>, vector<32x8xf32>, vector<32x8xf32> -> vector<32x8xf32>
    %c1_305 = arith.constant 1 : index
    %c2_306 = arith.constant 2 : index
    %c0_307 = arith.constant 0 : index
    %c0_308 = arith.constant 0 : index
    %384 = vector.load %arg13[%c1_305, %c2_306, %c0_307, %c0_308] : memref<2x4x8x32xf32, #tpu.memory_space<vmem>>, vector<1x1x8x32xf32>
    %385 = vector.shape_cast %384 : vector<1x1x8x32xf32> to vector<8x32xf32>
    %cst_309 = arith.constant dense<0.000000e+00> : vector<32x32xf32>
    %386 = tpu.matmul %383, %385, %cst_309 {dimension_numbers = #tpu.dot_dimension_numbers<[1], [0], [0], [1], [0, 0, 1, 1], [], []>} : vector<32x8xf32>, vector<8x32xf32>, vector<32x32xf32> -> vector<32x32xf32>
    %387 = arith.addf %348, %386 : vector<32x32xf32>
    %c1_310 = arith.constant 1 : index
    %c3_311 = arith.constant 3 : index
    %c0_312 = arith.constant 0 : index
    %c0_313 = arith.constant 0 : index
    %388 = vector.load %arg7[%c1_310, %c3_311, %c0_312, %c0_313] : memref<2x4x32x8xf32, #tpu.memory_space<vmem>>, vector<1x1x32x8xf32>
    %389 = vector.shape_cast %388 : vector<1x1x32x8xf32> to vector<32x8xf32>
    %cst_314 = arith.constant dense<0.000000e+00> : vector<32x8xf32>
    %390 = tpu.matmul %271, %389, %cst_314 {dimension_numbers = #tpu.dot_dimension_numbers<[1], [0], [0], [1], [0, 0, 1, 1], [], []>} : vector<32x32xf32>, vector<32x8xf32>, vector<32x8xf32> -> vector<32x8xf32>
    %c1_315 = arith.constant 1 : index
    %c3_316 = arith.constant 3 : index
    %c0_317 = arith.constant 0 : index
    %c0_318 = arith.constant 0 : index
    %391 = vector.load %arg8[%c1_315, %c3_316, %c0_317, %c0_318] : memref<2x4x1x8xf32, #tpu.memory_space<vmem>>, vector<1x1x1x8xf32>
    %392 = vector.shape_cast %391 : vector<1x1x1x8xf32> to vector<1x8xf32>
    %393 = vector.broadcast %392 : vector<1x8xf32> to vector<32x8xf32>
    %394 = arith.addf %390, %393 : vector<32x8xf32>
    %c1_319 = arith.constant 1 : index
    %c3_320 = arith.constant 3 : index
    %c0_321 = arith.constant 0 : index
    %c0_322 = arith.constant 0 : index
    %395 = vector.load %arg9[%c1_319, %c3_320, %c0_321, %c0_322] : memref<2x4x32x8xf32, #tpu.memory_space<vmem>>, vector<1x1x32x8xf32>
    %396 = vector.shape_cast %395 : vector<1x1x32x8xf32> to vector<32x8xf32>
    %cst_323 = arith.constant dense<0.000000e+00> : vector<32x8xf32>
    %397 = tpu.matmul %271, %396, %cst_323 {dimension_numbers = #tpu.dot_dimension_numbers<[1], [0], [0], [1], [0, 0, 1, 1], [], []>} : vector<32x32xf32>, vector<32x8xf32>, vector<32x8xf32> -> vector<32x8xf32>
    %c1_324 = arith.constant 1 : index
    %c3_325 = arith.constant 3 : index
    %c0_326 = arith.constant 0 : index
    %c0_327 = arith.constant 0 : index
    %398 = vector.load %arg10[%c1_324, %c3_325, %c0_326, %c0_327] : memref<2x4x1x8xf32, #tpu.memory_space<vmem>>, vector<1x1x1x8xf32>
    %399 = vector.shape_cast %398 : vector<1x1x1x8xf32> to vector<1x8xf32>
    %400 = vector.broadcast %399 : vector<1x8xf32> to vector<32x8xf32>
    %401 = arith.addf %397, %400 : vector<32x8xf32>
    %c1_328 = arith.constant 1 : index
    %c3_329 = arith.constant 3 : index
    %c0_330 = arith.constant 0 : index
    %c0_331 = arith.constant 0 : index
    %402 = vector.load %arg11[%c1_328, %c3_329, %c0_330, %c0_331] : memref<2x4x32x8xf32, #tpu.memory_space<vmem>>, vector<1x1x32x8xf32>
    %403 = vector.shape_cast %402 : vector<1x1x32x8xf32> to vector<32x8xf32>
    %cst_332 = arith.constant dense<0.000000e+00> : vector<32x8xf32>
    %404 = tpu.matmul %271, %403, %cst_332 {dimension_numbers = #tpu.dot_dimension_numbers<[1], [0], [0], [1], [0, 0, 1, 1], [], []>} : vector<32x32xf32>, vector<32x8xf32>, vector<32x8xf32> -> vector<32x8xf32>
    %c1_333 = arith.constant 1 : index
    %c3_334 = arith.constant 3 : index
    %c0_335 = arith.constant 0 : index
    %c0_336 = arith.constant 0 : index
    %405 = vector.load %arg12[%c1_333, %c3_334, %c0_335, %c0_336] : memref<2x4x1x8xf32, #tpu.memory_space<vmem>>, vector<1x1x1x8xf32>
    %406 = vector.shape_cast %405 : vector<1x1x1x8xf32> to vector<1x8xf32>
    %407 = vector.broadcast %406 : vector<1x8xf32> to vector<32x8xf32>
    %408 = arith.addf %404, %407 : vector<32x8xf32>
    %409 = tpu.transpose %401, [1, 0] : vector<32x8xf32> -> vector<8x32xf32>
    %cst_337 = arith.constant dense<0.000000e+00> : vector<32x32xf32>
    %410 = tpu.matmul %394, %409, %cst_337 {dimension_numbers = #tpu.dot_dimension_numbers<[1], [0], [0], [1], [0, 0, 1, 1], [], []>} : vector<32x8xf32>, vector<8x32xf32>, vector<32x32xf32> -> vector<32x32xf32>
    %411 = arith.addf %410, %5 : vector<32x32xf32>
    %cst_338 = arith.constant dense<0xFF800000> : vector<32xf32>
    %412 = vector.multi_reduction <maximumf>, %411, %cst_338 [1] : vector<32x32xf32> to vector<32xf32>
    %413 = vector.shape_cast %412 : vector<32xf32> to vector<32x1xf32>
    %414 = vector.broadcast %413 : vector<32x1xf32> to vector<32x32xf32>
    %415 = arith.subf %411, %414 : vector<32x32xf32>
    %416 = math.exp %415 : vector<32x32xf32>
    %cst_339 = arith.constant dense<0.000000e+00> : vector<32xf32>
    %417 = vector.multi_reduction <add>, %416, %cst_339 [1] : vector<32x32xf32> to vector<32xf32>
    %418 = vector.shape_cast %417 : vector<32xf32> to vector<32x1xf32>
    %419 = tpu.reciprocal %418 {approx = true} : vector<32x1xf32> -> vector<32x1xf32>
    %420 = vector.broadcast %419 : vector<32x1xf32> to vector<32x32xf32>
    %421 = arith.mulf %416, %420 : vector<32x32xf32>
    %cst_340 = arith.constant dense<0.000000e+00> : vector<32x8xf32>
    %422 = tpu.matmul %421, %408, %cst_340 {dimension_numbers = #tpu.dot_dimension_numbers<[1], [0], [0], [1], [0, 0, 1, 1], [], []>} : vector<32x32xf32>, vector<32x8xf32>, vector<32x8xf32> -> vector<32x8xf32>
    %c1_341 = arith.constant 1 : index
    %c3_342 = arith.constant 3 : index
    %c0_343 = arith.constant 0 : index
    %c0_344 = arith.constant 0 : index
    %423 = vector.load %arg13[%c1_341, %c3_342, %c0_343, %c0_344] : memref<2x4x8x32xf32, #tpu.memory_space<vmem>>, vector<1x1x8x32xf32>
    %424 = vector.shape_cast %423 : vector<1x1x8x32xf32> to vector<8x32xf32>
    %cst_345 = arith.constant dense<0.000000e+00> : vector<32x32xf32>
    %425 = tpu.matmul %422, %424, %cst_345 {dimension_numbers = #tpu.dot_dimension_numbers<[1], [0], [0], [1], [0, 0, 1, 1], [], []>} : vector<32x8xf32>, vector<8x32xf32>, vector<32x32xf32> -> vector<32x32xf32>
    %426 = arith.addf %387, %425 : vector<32x32xf32>
    %427 = arith.addf %245, %426 : vector<32x32xf32>
    %c1_346 = arith.constant 1 : index
    %c0_347 = arith.constant 0 : index
    %c0_348 = arith.constant 0 : index
    %428 = vector.load %arg14[%c1_346, %c0_347, %c0_348] : memref<2x1x32xf32, #tpu.memory_space<vmem>>, vector<1x1x32xf32>
    %429 = vector.shape_cast %428 : vector<1x1x32xf32> to vector<1x32xf32>
    %430 = vector.broadcast %429 : vector<1x32xf32> to vector<32x32xf32>
    %431 = arith.addf %427, %430 : vector<32x32xf32>
    %c1_349 = arith.constant 1 : index
    %c0_350 = arith.constant 0 : index
    %c0_351 = arith.constant 0 : index
    %432 = vector.load %arg15[%c1_349, %c0_350, %c0_351] : memref<2x1x32xf32, #tpu.memory_space<vmem>>, vector<1x1x32xf32>
    %433 = vector.shape_cast %432 : vector<1x1x32xf32> to vector<1x32xf32>
    %c1_352 = arith.constant 1 : index
    %c0_353 = arith.constant 0 : index
    %c0_354 = arith.constant 0 : index
    %434 = vector.load %arg16[%c1_352, %c0_353, %c0_354] : memref<2x1x32xf32, #tpu.memory_space<vmem>>, vector<1x1x32xf32>
    %435 = vector.shape_cast %434 : vector<1x1x32xf32> to vector<1x32xf32>
    %cst_355 = arith.constant dense<0.000000e+00> : vector<32xf32>
    %436 = vector.multi_reduction <add>, %431, %cst_355 [1] : vector<32x32xf32> to vector<32xf32>
    %437 = vector.shape_cast %436 : vector<32xf32> to vector<32x1xf32>
    %cst_356 = arith.constant 3.200000e+01 : f32
    %438 = vector.broadcast %cst_356 : f32 to vector<32x1xf32>
    %439 = arith.divf %437, %438 : vector<32x1xf32>
    %440 = vector.broadcast %439 : vector<32x1xf32> to vector<32x32xf32>
    %441 = arith.subf %431, %440 : vector<32x32xf32>
    %442 = arith.mulf %441, %441 : vector<32x32xf32>
    %cst_357 = arith.constant dense<0.000000e+00> : vector<32xf32>
    %443 = vector.multi_reduction <add>, %442, %cst_357 [1] : vector<32x32xf32> to vector<32xf32>
    %444 = vector.shape_cast %443 : vector<32xf32> to vector<32x1xf32>
    %cst_358 = arith.constant 3.200000e+01 : f32
    %445 = vector.broadcast %cst_358 : f32 to vector<32x1xf32>
    %446 = arith.divf %444, %445 : vector<32x1xf32>
    %447 = vector.broadcast %439 : vector<32x1xf32> to vector<32x32xf32>
    %448 = arith.subf %431, %447 : vector<32x32xf32>
    %cst_359 = arith.constant 9.99999997E-7 : f32
    %449 = vector.broadcast %cst_359 : f32 to vector<32x1xf32>
    %450 = arith.addf %446, %449 : vector<32x1xf32>
    %451 = math.rsqrt %450 : vector<32x1xf32>
    %452 = vector.broadcast %451 : vector<32x1xf32> to vector<32x32xf32>
    %453 = arith.mulf %448, %452 : vector<32x32xf32>
    %454 = vector.broadcast %433 : vector<1x32xf32> to vector<32x32xf32>
    %455 = arith.mulf %453, %454 : vector<32x32xf32>
    %456 = vector.broadcast %435 : vector<1x32xf32> to vector<32x32xf32>
    %457 = arith.addf %455, %456 : vector<32x32xf32>
    %c1_360 = arith.constant 1 : index
    %c0_361 = arith.constant 0 : index
    %c0_362 = arith.constant 0 : index
    %458 = vector.load %arg17[%c1_360, %c0_361, %c0_362] : memref<2x32x64xf32, #tpu.memory_space<vmem>>, vector<1x32x64xf32>
    %459 = vector.shape_cast %458 : vector<1x32x64xf32> to vector<32x64xf32>
    %cst_363 = arith.constant dense<0.000000e+00> : vector<32x64xf32>
    %460 = tpu.matmul %457, %459, %cst_363 {dimension_numbers = #tpu.dot_dimension_numbers<[1], [0], [0], [1], [0, 0, 1, 1], [], []>} : vector<32x32xf32>, vector<32x64xf32>, vector<32x64xf32> -> vector<32x64xf32>
    %c1_364 = arith.constant 1 : index
    %c0_365 = arith.constant 0 : index
    %c0_366 = arith.constant 0 : index
    %461 = vector.load %arg18[%c1_364, %c0_365, %c0_366] : memref<2x1x64xf32, #tpu.memory_space<vmem>>, vector<1x1x64xf32>
    %462 = vector.shape_cast %461 : vector<1x1x64xf32> to vector<1x64xf32>
    %463 = vector.broadcast %462 : vector<1x64xf32> to vector<32x64xf32>
    %464 = arith.addf %460, %463 : vector<32x64xf32>
    %cst_367 = arith.constant 5.000000e-01 : f32
    %465 = vector.broadcast %cst_367 : f32 to vector<32x64xf32>
    %466 = arith.mulf %465, %464 : vector<32x64xf32>
    %cst_368 = arith.constant 4.471500e-02 : f32
    %467 = vector.broadcast %cst_368 : f32 to vector<32x64xf32>
    %468 = arith.mulf %467, %464 : vector<32x64xf32>
    %469 = arith.mulf %468, %464 : vector<32x64xf32>
    %470 = arith.mulf %469, %464 : vector<32x64xf32>
    %471 = arith.addf %464, %470 : vector<32x64xf32>
    %cst_369 = arith.constant 0.797884583 : f32
    %472 = vector.broadcast %cst_369 : f32 to vector<32x64xf32>
    %473 = arith.mulf %472, %471 : vector<32x64xf32>
    %474 = math.tanh %473 : vector<32x64xf32>
    %cst_370 = arith.constant 1.000000e+00 : f32
    %475 = vector.broadcast %cst_370 : f32 to vector<32x64xf32>
    %476 = arith.addf %475, %474 : vector<32x64xf32>
    %477 = arith.mulf %466, %476 : vector<32x64xf32>
    %c1_371 = arith.constant 1 : index
    %c0_372 = arith.constant 0 : index
    %c0_373 = arith.constant 0 : index
    %478 = vector.load %arg19[%c1_371, %c0_372, %c0_373] : memref<2x64x32xf32, #tpu.memory_space<vmem>>, vector<1x64x32xf32>
    %479 = vector.shape_cast %478 : vector<1x64x32xf32> to vector<64x32xf32>
    %cst_374 = arith.constant dense<0.000000e+00> : vector<32x32xf32>
    %480 = tpu.matmul %477, %479, %cst_374 {dimension_numbers = #tpu.dot_dimension_numbers<[1], [0], [0], [1], [0, 0, 1, 1], [], []>} : vector<32x64xf32>, vector<64x32xf32>, vector<32x32xf32> -> vector<32x32xf32>
    %c1_375 = arith.constant 1 : index
    %c0_376 = arith.constant 0 : index
    %c0_377 = arith.constant 0 : index
    %481 = vector.load %arg20[%c1_375, %c0_376, %c0_377] : memref<2x1x32xf32, #tpu.memory_space<vmem>>, vector<1x1x32xf32>
    %482 = vector.shape_cast %481 : vector<1x1x32xf32> to vector<1x32xf32>
    %483 = vector.broadcast %482 : vector<1x32xf32> to vector<32x32xf32>
    %484 = arith.addf %480, %483 : vector<32x32xf32>
    %485 = arith.addf %431, %484 : vector<32x32xf32>
    %c0_378 = arith.constant 0 : index
    %c0_379 = arith.constant 0 : index
    %486 = vector.load %arg21[%c0_378, %c0_379] : memref<1x32xf32, #tpu.memory_space<vmem>>, vector<1x32xf32>
    %c0_380 = arith.constant 0 : index
    %c0_381 = arith.constant 0 : index
    %487 = vector.load %arg22[%c0_380, %c0_381] : memref<1x32xf32, #tpu.memory_space<vmem>>, vector<1x32xf32>
    %cst_382 = arith.constant dense<0.000000e+00> : vector<32xf32>
    %488 = vector.multi_reduction <add>, %485, %cst_382 [1] : vector<32x32xf32> to vector<32xf32>
    %489 = vector.shape_cast %488 : vector<32xf32> to vector<32x1xf32>
    %cst_383 = arith.constant 3.200000e+01 : f32
    %490 = vector.broadcast %cst_383 : f32 to vector<32x1xf32>
    %491 = arith.divf %489, %490 : vector<32x1xf32>
    %492 = vector.broadcast %491 : vector<32x1xf32> to vector<32x32xf32>
    %493 = arith.subf %485, %492 : vector<32x32xf32>
    %494 = arith.mulf %493, %493 : vector<32x32xf32>
    %cst_384 = arith.constant dense<0.000000e+00> : vector<32xf32>
    %495 = vector.multi_reduction <add>, %494, %cst_384 [1] : vector<32x32xf32> to vector<32xf32>
    %496 = vector.shape_cast %495 : vector<32xf32> to vector<32x1xf32>
    %cst_385 = arith.constant 3.200000e+01 : f32
    %497 = vector.broadcast %cst_385 : f32 to vector<32x1xf32>
    %498 = arith.divf %496, %497 : vector<32x1xf32>
    %499 = vector.broadcast %491 : vector<32x1xf32> to vector<32x32xf32>
    %500 = arith.subf %485, %499 : vector<32x32xf32>
    %cst_386 = arith.constant 9.99999997E-7 : f32
    %501 = vector.broadcast %cst_386 : f32 to vector<32x1xf32>
    %502 = arith.addf %498, %501 : vector<32x1xf32>
    %503 = math.rsqrt %502 : vector<32x1xf32>
    %504 = vector.broadcast %503 : vector<32x1xf32> to vector<32x32xf32>
    %505 = arith.mulf %500, %504 : vector<32x32xf32>
    %506 = vector.broadcast %486 : vector<1x32xf32> to vector<32x32xf32>
    %507 = arith.mulf %505, %506 : vector<32x32xf32>
    %508 = vector.broadcast %487 : vector<1x32xf32> to vector<32x32xf32>
    %509 = arith.addf %507, %508 : vector<32x32xf32>
    %c0_387 = arith.constant 0 : index
    %c0_388 = arith.constant 0 : index
    %510 = vector.load %arg23[%c0_387, %c0_388] : memref<32x32xf32, #tpu.memory_space<vmem>>, vector<32x32xf32>
    tpu.vector_store %arg23[%c0_387, %c0_388], %509 {strides = array<i32>} : memref<32x32xf32, #tpu.memory_space<vmem>>, vector<32x32xf32>,
    return
  }
  func.func @transform_0(%arg0: i32) -> (i32, i32) {
    %c0_i32 = arith.constant 0 : i32
    %c0_i32_0 = arith.constant 0 : i32
    %c0_i32_1 = arith.constant 0 : i32
    return %c0_i32, %c0_i32_0 : i32, i32
  }
  func.func @transform_1(%arg0: i32) -> (i32, i32) {
    %c0_i32 = arith.constant 0 : i32
    %c0_i32_0 = arith.constant 0 : i32
    %c0_i32_1 = arith.constant 0 : i32
    return %c0_i32, %c0_i32_0 : i32, i32
  }
  func.func @transform_2(%arg0: i32) -> (i32, i32) {
    %c0_i32 = arith.constant 0 : i32
    %c0_i32_0 = arith.constant 0 : i32
    %c0_i32_1 = arith.constant 0 : i32
    return %c0_i32, %c0_i32_0 : i32, i32
  }
  func.func @transform_3(%arg0: i32) -> (i32, i32) {
    %c0_i32 = arith.constant 0 : i32
    %c0_i32_0 = arith.constant 0 : i32
    %c0_i32_1 = arith.constant 0 : i32
    return %c0_i32, %c0_i32_0 : i32, i32
  }
  func.func @transform_4(%arg0: i32) -> (i32, i32, i32) {
    %c0_i32 = arith.constant 0 : i32
    %c0_i32_0 = arith.constant 0 : i32
    %c0_i32_1 = arith.constant 0 : i32
    %c0_i32_2 = arith.constant 0 : i32
    return %c0_i32, %c0_i32_0, %c0_i32_1 : i32, i32, i32
  }
  func.func @transform_5(%arg0: i32) -> (i32, i32, i32) {
    %c0_i32 = arith.constant 0 : i32
    %c0_i32_0 = arith.constant 0 : i32
    %c0_i32_1 = arith.constant 0 : i32
    %c0_i32_2 = arith.constant 0 : i32
    return %c0_i32, %c0_i32_0, %c0_i32_1 : i32, i32, i32
  }
  func.func @transform_6(%arg0: i32) -> (i32, i32, i32, i32) {
    %c0_i32 = arith.constant 0 : i32
    %c0_i32_0 = arith.constant 0 : i32
    %c0_i32_1 = arith.constant 0 : i32
    %c0_i32_2 = arith.constant 0 : i32
    %c0_i32_3 = arith.constant 0 : i32
    return %c0_i32, %c0_i32_0, %c0_i32_1, %c0_i32_2 : i32, i32, i32, i32
  }
  func.func @transform_7(%arg0: i32) -> (i32, i32, i32, i32) {
    %c0_i32 = arith.constant 0 : i32
    %c0_i32_0 = arith.constant 0 : i32
    %c0_i32_1 = arith.constant 0 : i32
    %c0_i32_2 = arith.constant 0 : i32
    %c0_i32_3 = arith.constant 0 : i32
    return %c0_i32, %c0_i32_0, %c0_i32_1, %c0_i32_2 : i32, i32, i32, i32
  }
  func.func @transform_8(%arg0: i32) -> (i32, i32, i32, i32) {
    %c0_i32 = arith.constant 0 : i32
    %c0_i32_0 = arith.constant 0 : i32
    %c0_i32_1 = arith.constant 0 : i32
    %c0_i32_2 = arith.constant 0 : i32
    %c0_i32_3 = arith.constant 0 : i32
    return %c0_i32, %c0_i32_0, %c0_i32_1, %c0_i32_2 : i32, i32, i32, i32
  }
  func.func @transform_9(%arg0: i32) -> (i32, i32, i32, i32) {
    %c0_i32 = arith.constant 0 : i32
    %c0_i32_0 = arith.constant 0 : i32
    %c0_i32_1 = arith.constant 0 : i32
    %c0_i32_2 = arith.constant 0 : i32
    %c0_i32_3 = arith.constant 0 : i32
    return %c0_i32, %c0_i32_0, %c0_i32_1, %c0_i32_2 : i32, i32, i32, i32
  }
  func.func @transform_10(%arg0: i32) -> (i32, i32, i32, i32) {
    %c0_i32 = arith.constant 0 : i32
    %c0_i32_0 = arith.constant 0 : i32
    %c0_i32_1 = arith.constant 0 : i32
    %c0_i32_2 = arith.constant 0 : i32
    %c0_i32_3 = arith.constant 0 : i32
    return %c0_i32, %c0_i32_0, %c0_i32_1, %c0_i32_2 : i32, i32, i32, i32
  }
  func.func @transform_11(%arg0: i32) -> (i32, i32, i32, i32) {
    %c0_i32 = arith.constant 0 : i32
    %c0_i32_0 = arith.constant 0 : i32
    %c0_i32_1 = arith.constant 0 : i32
    %c0_i32_2 = arith.constant 0 : i32
    %c0_i32_3 = arith.constant 0 : i32
    return %c0_i32, %c0_i32_0, %c0_i32_1, %c0_i32_2 : i32, i32, i32, i32
  }
  func.func @transform_12(%arg0: i32) -> (i32, i32, i32, i32) {
    %c0_i32 = arith.constant 0 : i32
    %c0_i32_0 = arith.constant 0 : i32
    %c0_i32_1 = arith.constant 0 : i32
    %c0_i32_2 = arith.constant 0 : i32
    %c0_i32_3 = arith.constant 0 : i32
    return %c0_i32, %c0_i32_0, %c0_i32_1, %c0_i32_2 : i32, i32, i32, i32
  }
  func.func @transform_13(%arg0: i32) -> (i32, i32, i32) {
    %c0_i32 = arith.constant 0 : i32
    %c0_i32_0 = arith.constant 0 : i32
    %c0_i32_1 = arith.constant 0 : i32
    %c0_i32_2 = arith.constant 0 : i32
    return %c0_i32, %c0_i32_0, %c0_i32_1 : i32, i32, i32
  }
  func.func @transform_14(%arg0: i32) -> (i32, i32, i32) {
    %c0_i32 = arith.constant 0 : i32
    %c0_i32_0 = arith.constant 0 : i32
    %c0_i32_1 = arith.constant 0 : i32
    %c0_i32_2 = arith.constant 0 : i32
    return %c0_i32, %c0_i32_0, %c0_i32_1 : i32, i32, i32
  }
  func.func @transform_15(%arg0: i32) -> (i32, i32, i32) {
    %c0_i32 = arith.constant 0 : i32
    %c0_i32_0 = arith.constant 0 : i32
    %c0_i32_1 = arith.constant 0 : i32
    %c0_i32_2 = arith.constant 0 : i32
    return %c0_i32, %c0_i32_0, %c0_i32_1 : i32, i32, i32
  }
  func.func @transform_16(%arg0: i32) -> (i32, i32, i32) {
    %c0_i32 = arith.constant 0 : i32
    %c0_i32_0 = arith.constant 0 : i32
    %c0_i32_1 = arith.constant 0 : i32
    %c0_i32_2 = arith.constant 0 : i32
    return %c0_i32, %c0_i32_0, %c0_i32_1 : i32, i32, i32
  }
  func.func @transform_17(%arg0: i32) -> (i32, i32, i32) {
    %c0_i32 = arith.constant 0 : i32
    %c0_i32_0 = arith.constant 0 : i32
    %c0_i32_1 = arith.constant 0 : i32
    %c0_i32_2 = arith.constant 0 : i32
    return %c0_i32, %c0_i32_0, %c0_i32_1 : i32, i32, i32
  }
  func.func @transform_18(%arg0: i32) -> (i32, i32, i32) {
    %c0_i32 = arith.constant 0 : i32
    %c0_i32_0 = arith.constant 0 : i32
    %c0_i32_1 = arith.constant 0 : i32
    %c0_i32_2 = arith.constant 0 : i32
    return %c0_i32, %c0_i32_0, %c0_i32_1 : i32, i32, i32
  }
  func.func @transform_19(%arg0: i32) -> (i32, i32, i32) {
    %c0_i32 = arith.constant 0 : i32
    %c0_i32_0 = arith.constant 0 : i32
    %c0_i32_1 = arith.constant 0 : i32
    %c0_i32_2 = arith.constant 0 : i32
    return %c0_i32, %c0_i32_0, %c0_i32_1 : i32, i32, i32
  }
  func.func @transform_20(%arg0: i32) -> (i32, i32) {
    %c0_i32 = arith.constant 0 : i32
    %c0_i32_0 = arith.constant 0 : i32
    %c0_i32_1 = arith.constant 0 : i32
    return %c0_i32, %c0_i32_0 : i32, i32
  }
  func.func @transform_21(%arg0: i32) -> (i32, i32) {
    %c0_i32 = arith.constant 0 : i32
    %c0_i32_0 = arith.constant 0 : i32
    %c0_i32_1 = arith.constant 0 : i32
    return %c0_i32, %c0_i32_0 : i32, i32
  }
  func.func @transform_22(%arg0: i32) -> (i32, i32) {
    %c0_i32 = arith.constant 0 : i32
    %c0_i32_0 = arith.constant 0 : i32
    %c0_i32_1 = arith.constant 0 : i32
    return %c0_i32, %c0_i32_0 : i32, i32
  }
}

</mosaic_0001>

<bundles_post_ra>
// kernel: siglip_vision_transformer.1
= control target key start
LH: loop header
LB: loop body
LE: loop exit
PB: predicated region body
PF: predicated region fallthrough
CT: control target
= control target key end

     0   :  { %s10022_s0 = inlined_call_operand.vmem [shape: f32[32,48], index: 0, kind: input, shape index: {}]   ;;  %s10023_s1 = inlined_call_operand.vmem [shape: f32[48,32], index: 1, kind: input, shape index: {}]   ;;  %s10024_s2 = inlined_call_operand.vmem [shape: f32[32,32], index: 2, kind: input, shape index: {}]   ;;  %s10025_s3 = inlined_call_operand.vmem [shape: f32[32,32], index: 3, kind: input, shape index: {}]   ;;  %s10026_s4 = inlined_call_operand.vmem [shape: f32[2,1,32], index: 4, kind: input, shape index: {}]   ;;  %s10027_s5 = inlined_call_operand.vmem [shape: f32[2,1,32], index: 5, kind: input, shape index: {}]   ;;  %s10028_s6 = inlined_call_operand.vmem [shape: f32[2,4,32,8], index: 6, kind: input, shape index: {}]   ;;  %s10029_s7 = inlined_call_operand.vmem [shape: f32[2,4,1,8], index: 7, kind: input, shape index: {}]   ;;  %s10030_s8 = inlined_call_operand.vmem [shape: f32[2,4,32,8], index: 8, kind: input, shape index: {}]   ;;  %s10031_s9 = inlined_call_operand.vmem [shape: f32[2,4,1,8], index: 9, kind: input, shape index: {}]   ;;  %s10032_s10 = inlined_call_operand.vmem [shape: f32[2,4,32,8], index: 10, kind: input, shape index: {}]   ;;  %s10033_s11 = inlined_call_operand.vmem [shape: f32[2,4,1,8], index: 11, kind: input, shape index: {}]   ;;  %s10034_s12 = inlined_call_operand.vmem [shape: f32[2,4,8,32], index: 12, kind: input, shape index: {}]   ;;  %s10035_s13 = inlined_call_operand.vmem [shape: f32[2,1,32], index: 13, kind: input, shape index: {}]   ;;  %s10036_s14 = inlined_call_operand.vmem [shape: f32[2,1,32], index: 14, kind: input, shape index: {}]   ;;  %s10037_s15 = inlined_call_operand.vmem [shape: f32[2,1,32], index: 15, kind: input, shape index: {}]   ;;  %s10038_s16 = inlined_call_operand.vmem [shape: f32[2,32,64], index: 16, kind: input, shape index: {}]   ;;  %s10039_s17 = inlined_call_operand.vmem [shape: f32[2,1,64], index: 17, kind: input, shape index: {}]   ;;  %s10040_s18 = inlined_call_operand.vmem [shape: f32[2,64,32], index: 18, kind: input, shape index: {}]   ;;  %s10041_s19 = inlined_call_operand.vmem [shape: f32[2,1,32], index: 19, kind: input, shape index: {}]   ;;  %s10042_s20 = inlined_call_operand.vmem [shape: f32[1,32], index: 20, kind: input, shape index: {}]   ;;  %s10043_s21 = inlined_call_operand.vmem [shape: f32[1,32], index: 21, kind: input, shape index: {}]   ;;  %s10044_s22 = inlined_call_operand.hbm [shape: f32[32,32], index: 22, kind: output, shape index: {}]  }
   0x1   :  { %10052 = sst [smem:[#allocation5_spill]] %s10022_s0 }
   0x2   :  { %10053 = sst [smem:[#allocation6_spill]] %s10023_s1 }
   0x3   :  { %10054 = sst [smem:[#allocation7_spill]] %s10024_s2 }
   0x4   :  { %10055 = sst [smem:[#allocation8_spill]] %s10025_s3 }
   0x5   :  { %10056 = sst [smem:[#allocation9_spill]] %s10026_s4 }
   0x6   :  { %10057 = sst [smem:[#allocation10_spill]] %s10027_s5 }
   0x7   :  { %10058 = sst [smem:[#allocation11_spill]] %s10028_s6 }
   0x8   :  { %s10059_s29 = sld [smem:[#allocation6_spill]]  ;;  %vm86_vm0 = vcmask 392192   ;;  %s10060_s3 = sld [smem:[#allocation5_spill]] }
   0xe   :  { %v76_v0 = vld [vmem:[%s10059_s29] sm:$0xff]  ;;  %v77_v1 = vld [vmem:[%s10059_s29 + $0x8] sm:$0xff]  ;;  %v78_v2 = vld [vmem:[%s10059_s29 + $0x10] sm:$0xff] }
   0xf   :  { %v7857_v3 = vpack.c.bf16 %v77_v1, %v76_v0  ;;  %v79_v4 = vld [vmem:[%s10059_s29 + $0x18] sm:$0xff]  ;;  %v80_v6 = vld [vmem:[%s10059_s29 + $0x20] sm:$0xff]  ;;  %v81_v7 = vld [vmem:[%s10059_s29 + $0x28] sm:$0xff] }
  0x10   :  { %v7861_v5 = vpack.c.bf16 %v79_v4, %v78_v2  ;;  %v72_v8 = vld [vmem:[%s10060_s3] sm:$0xff] }
  0x11   :  { %7858 = vmatprep.subr.bf16.mxu0 %v7857_v3  ;;  %7155 = vmatprep.mubr.msk.f32.mxu0 %vm86_vm0, %v72_v8 }
  0x12   :  { %27 = vsyncpa [#allocation3], 0  ;;  %7860 = vmatpush3.bf16.msra.mxu0 %v7857_v3  ;;  %v7865_v9 = vpack.c.bf16 %v81_v7, %v80_v6  ;;  %v73_v10 = vld [vmem:[%s10060_s3 + $0x8] sm:$0xff]  ;;  %v74_v11 = vld [vmem:[%s10060_s3 + $0x10] sm:$0xff]  ;;  %s10061_s24 = sld [smem:[#allocation7_spill]]  ;;  %vm190_vm1 = vcmask 261120  }
  0x13   :  { %7862 = vmatprep.subr.bf16.mxu0 %v7861_v5  ;;  %v75_v12 = vld [vmem:[%s10060_s3 + $0x18] sm:$0xff]  ;;  %s10062_s4 = sld [smem:[#allocation11_spill]]  ;;  %v372_v55 = vld [vmem:[%s10030_s8] sm:$0xff]  ;;  %v373_v56 = vld [vmem:[%s10030_s8 + $0x8] sm:$0xff]  ;;  %s10063_s28 = sld [smem:[#allocation9_spill]]  ;;  %vm564_vm2 = vcmask 64512  }
  0x14   :  { %v7877_v57 = vpack.c.bf16 %v373_v56, %v372_v55  ;;  %s10064_s0 = sld [smem:[#allocation10_spill]]  ;;  %vm8779_vm3 = vmpackc.low %vm564_vm2, %vm564_vm2  ;;  %s10067_s6 = sld [smem:[#allocation8_spill]]  ;;  %vm3098_vm4 = vcmask 523264  }
  0x16   :  { %7864 = vmatpush3.bf16.msra.mxu0 %v7861_v5 }
  0x17   :  { %7866 = vmatprep.subr.bf16.mxu0 %v7865_v9 }
  0x18   :  { %v82_v13 = vld [vmem:[%s10061_s24] sm:$0xff]  ;;  %v83_v15 = vld [vmem:[%s10061_s24 + $0x8] sm:$0xff]  ;;  %v84_v18 = vld [vmem:[%s10061_s24 + $0x10] sm:$0xff] }
  0x19   :  { %v85_v22 = vld [vmem:[%s10061_s24 + $0x18] sm:$0xff]  ;;  %v264_v49 = vld [vmem:[%s10062_s4] sm:$0xff]  ;;  %v265_v50 = vld [vmem:[%s10062_s4 + $0x8] sm:$0xff] }
  0x1a   :  { %7868 = vmatpush3.bf16.msra.mxu0 %v7865_v9  ;;  %v7869_v51 = vpack.c.bf16 %v265_v50, %v264_v49  ;;  %v266_v52 = vld [vmem:[%s10062_s4 + $0x10] sm:$0xff]  ;;  %v267_v53 = vld [vmem:[%s10062_s4 + $0x18] sm:$0xff]  ;;  %v6322_v7 = vld [vmem:[%s10063_s28] ss:$0 sm:$0xff] }
  0x1b   :  { %v7873_v54 = vpack.c.bf16 %v267_v53, %v266_v52  ;;  %v6323_v9 = vld [vmem:[%s10064_s0] ss:$0 sm:$0xff] }
  0x1c   :  { %7870 = vmatprep.subr.bf16.mxu1 %v7869_v51 }
  0x1d   :  { %7156 = vmatmul.mubr.msk.f32.vlgmr.msra.gmra.mrb[0].mxu0 %vm86_vm0, %v73_v10  ;;  %7872 = vmatpush3.bf16.msra.mxu1 %v7869_v51 }
  0x1e   :  { %7158 = vmatprep.mubr.msk.f32.mxu0 %vm86_vm0, %v74_v11  ;;  %7874 = vmatprep.subr.bf16.mxu1 %v7873_v54 }
  0x21   :  { %7159 = vmatmul.mubr.msk.f32.gmra.mrb[2].mxu0 %vm86_vm0, %v75_v12  ;;  %7876 = vmatpush3.bf16.msra.mxu1 %v7873_v54  ;;  %v6334_v54 = vld [vmem:[%s10033_s11] ss:$0 sm:$0xff] }
  0x22   :  { %7878 = vmatprep.subr.bf16.mxu1 %v7877_v57 }
  0xf0   :  { %v7157_v14 = vpop.f32.mrb[0].mxu0 }
  0xf1   :  { %v165_v16 = vpop.f32.mrb[1].mxu0  ;;  %v8671_v19 = vadd.f32 %v7157_v14, %v83_v15 }
  0xf2   :  { %v8666_v17 = vadd.f32 %v165_v16, %v82_v13  ;;  %v374_v16 = vld [vmem:[%s10030_s8 + $0x10] sm:$0xff] }
  0xf3   :  { %v194_v27 = vsel %vm190_vm1, %v8671_v19, 0.0 }
  0xf4   :  { %v7160_v20 = vpop.f32.mrb[2].mxu0  ;;  %v191_v21 = vsel %vm190_vm1, %v8666_v17, 0.0 }
  0xf5   :  { %v175_v23 = vpop.f32.mrb[3].mxu0  ;;  %192 = vadd.xlane.f32.xlu0 %v191_v21  ;;  %v8680_v25 = vadd.f32 %v7160_v20, %v85_v22 }
  0xf6   :  { %v8678_v24 = vadd.f32 %v175_v23, %v84_v18  ;;  %v375_v18 = vld [vmem:[%s10030_s8 + $0x18] sm:$0xff] }
  0xf7   :  { %v200_v28 = vsel %vm190_vm1, %v8680_v25, 0.0 }
  0xf8   :  { %v197_v26 = vsel %vm190_vm1, %v8678_v24, 0.0 }
  0xf9   :  { %198 = vadd.xlane.f32.xlu1 %v197_v26  ;;  %195 = vadd.xlane.f32.xlu0 %v194_v27  ;;  %v7881_v27 = vpack.c.bf16 %v375_v18, %v374_v16 }
  0xfd   :  { %201 = vadd.xlane.f32.xlu1 %v200_v28 }
 0x182   :  { %v193_v29 = vpop.xlane.xlu0 %192 }
 0x183   :  { %v204_v30 = vmul.f32 0.03125, %v193_v29  ;;  %v468_v29 = vld [vmem:[%s10032_s10] sm:$0xff] }
 0x185   :  { %v208_v31 = vsub.f32 %v8666_v17, %v204_v30  ;;  %v469_v30 = vld [vmem:[%s10032_s10 + $0x8] sm:$0xff] }
 0x186   :  { %v199_v32 = vpop.xlane.xlu1 %198  ;;  %v196_v33 = vpop.xlane.xlu0 %195 }
 0x187   :  { %v206_v34 = vmul.f32 0.03125, %v199_v32  ;;  %v205_v35 = vmul.f32 0.03125, %v196_v33  ;;  %v212_v36 = vmul.f32 %v208_v31, %v208_v31  ;;  %v7885_v33 = vpack.c.bf16 %v469_v30, %v468_v29 }
 0x189   :  { %v210_v37 = vsub.f32 %v8678_v24, %v206_v34  ;;  %v209_v38 = vsub.f32 %v8671_v19, %v205_v35  ;;  %v216_v39 = vsel %vm190_vm1, %v212_v36, 0.0  ;;  %v470_v34 = vld [vmem:[%s10032_s10 + $0x10] sm:$0xff]  ;;  %v471_v35 = vld [vmem:[%s10032_s10 + $0x18] sm:$0xff] }
 0x18a   :  { %v202_v40 = vpop.xlane.xlu1 %201  ;;  %217 = vadd.xlane.f32.xlu0 %v216_v39  ;;  %v7889_v36 = vpack.c.bf16 %v471_v35, %v470_v34 }
 0x18b   :  { %v207_v41 = vmul.f32 0.03125, %v202_v40  ;;  %v214_v42 = vmul.f32 %v210_v37, %v210_v37  ;;  %v213_v43 = vmul.f32 %v209_v38, %v209_v38 }
 0x18d   :  { %v211_v44 = vsub.f32 %v8680_v25, %v207_v41  ;;  %v222_v45 = vsel %vm190_vm1, %v214_v42, 0.0  ;;  %v219_v46 = vsel %vm190_vm1, %v213_v43, 0.0  ;;  %v6329_v43 = vld [vmem:[%s10031_s9] ss:$0 sm:$0xff] }
 0x18e   :  { %223 = vadd.xlane.f32.xlu0 %v222_v45  ;;  %220 = vadd.xlane.f32.xlu1 %v219_v46 }
 0x18f   :  { %v215_v47 = vmul.f32 %v211_v44, %v211_v44 }
 0x191   :  { %v225_v48 = vsel %vm190_vm1, %v215_v47, 0.0 }
 0x192   :  { %226 = vadd.xlane.f32.xlu1 %v225_v48 }
 0x217   :  { %v218_v58 = vpop.xlane.xlu0 %217 }
 0x218   :  { %v228_v59 = vmul.f32 0.03125, %v218_v58 }
 0x21a   :  { %v232_v60 = vadd.f32 1e-06, %v228_v59  ;;  %v6361_v59 = vld [vmem:[%s10030_s8 + $0x20] sm:$0xff] }
 0x21b   :  { %v221_v61 = vpop.xlane.xlu1 %220  ;;  %v224_v62 = vpop.xlane.xlu0 %223 }
 0x21c   :  { %8296 = vrsqrt.f32 %v232_v60  ;;  %v229_v63 = vmul.f32 0.03125, %v221_v61  ;;  %v230_v0 = vmul.f32 0.03125, %v224_v62  ;;  %v6362_v60 = vld [vmem:[%s10030_s8 + $0x28] sm:$0xff] }
 0x21e   :  { %v233_v1 = vadd.f32 1e-06, %v229_v63  ;;  %v234_v2 = vadd.f32 1e-06, %v230_v0  ;;  %v7921_v0 = vpack.c.bf16 %v6362_v60, %v6361_v59 }
 0x21f   :  { %v227_v3 = vpop.xlane.xlu1 %226 }
 0x220   :  { %8298 = vrsqrt.f32 %v233_v1  ;;  %v231_v4 = vmul.f32 0.03125, %v227_v3 }
 0x221   :  { %8300 = vrsqrt.f32 %v234_v2 }
 0x222   :  { %v235_v5 = vadd.f32 1e-06, %v231_v4 }
 0x224   :  { %8302 = vrsqrt.f32 %v235_v5  ;;  %v6363_v5 = vld [vmem:[%s10030_s8 + $0x30] sm:$0xff] }
 0x226   :  { %v8297_v6 = vpop.eup %8296 }
 0x227   :  { %v240_v8 = vmul.f32 %v8297_v6, %v208_v31  ;;  %v6364_v6 = vld [vmem:[%s10030_s8 + $0x38] sm:$0xff] }
 0x229   :  { %v250_v10 = vmul.f32 %v6322_v7, %v240_v8  ;;  %v7925_v8 = vpack.c.bf16 %v6364_v6, %v6363_v5 }
 0x22a   :  { %v8299_v11 = vpop.eup %8298 }
 0x22b   :  { %v8301_v12 = vpop.eup %8300  ;;  %v8720_v13 = vadd.f32 %v6323_v9, %v250_v10  ;;  %v241_v14 = vmul.f32 %v8299_v11, %v209_v38  ;;  %v8820_v11 = vld [vmem:[%s10067_s6 + $0x8] sm:$0xff] }
 0x22c   :  { %v242_v15 = vmul.f32 %v8301_v12, %v210_v37  ;;  %v6324_v37 = vld [vmem:[%s10029_s7] ss:$0 sm:$0xff] }
 0x22d   :  { %v251_v20 = vmul.f32 %v6322_v7, %v241_v14  ;;  %7169 = vmatprep.mubr.msk.f32.mxu1 %vm190_vm1, %v8720_v13  ;;  %v8825_v12 = vld [vmem:[%s10067_s6] sm:$0xff] }
 0x22e   :  { %v8303_v21 = vpop.eup %8302  ;;  %v252_v22 = vmul.f32 %v6322_v7, %v242_v15 }
 0x22f   :  { %v8730_v23 = vadd.f32 %v6323_v9, %v251_v20  ;;  %v243_v26 = vmul.f32 %v8303_v21, %v211_v44  ;;  %v8832_v20 = vld [vmem:[%s10067_s6 + $0x18] sm:$0xff] }
 0x230   :  { %v8732_v28 = vadd.f32 %v6323_v9, %v252_v22  ;;  %v8838_v22 = vld [vmem:[%s10067_s6 + $0x10] sm:$0xff] }
 0x231   :  { %v253_v31 = vmul.f32 %v6322_v7, %v243_v26  ;;  %7170 = vmatmul.mubr.msk.f32.vlgmr.msra.gmra.mrb[0].mxu1 %vm190_vm1, %v8730_v23 }
 0x232   :  { %7172 = vmatprep.mubr.msk.f32.mxu1 %vm190_vm1, %v8732_v28  ;;  %7880 = vmatpush3.bf16.msra.mxu1 %v7877_v57 }
 0x233   :  { %v8744_v32 = vadd.f32 %v6323_v9, %v253_v31  ;;  %7882 = vmatprep.subr.bf16.mxu1 %v7881_v27 }
 0x235   :  { %7173 = vmatmul.mubr.msk.f32.gmra.mrb[2].mxu1 %vm190_vm1, %v8744_v32 }
 0x236   :  { %7884 = vmatpush3.bf16.msra.mxu1 %v7881_v27  ;;  %7183 = vmatprep.mubr.msk.f32.mxu1 %vm190_vm1, %v8720_v13 }
 0x237   :  { %7886 = vmatprep.subr.bf16.mxu1 %v7885_v33 }
 0x239   :  { %7184 = vmatmul.mubr.msk.f32.vlgmr.msra.gmra.mrb[4].mxu1 %vm190_vm1, %v8730_v23 }
 0x23a   :  { %7186 = vmatprep.mubr.msk.f32.mxu1 %vm190_vm1, %v8732_v28  ;;  %7888 = vmatpush3.bf16.msra.mxu1 %v7885_v33  ;;  %v6366_v33 = vld [vmem:[%s10031_s9 + $0x1] ss:$0 sm:$0xff] }
 0x23b   :  { %7890 = vmatprep.subr.bf16.mxu1 %v7889_v36 }
 0x23d   :  { %7187 = vmatmul.mubr.msk.f32.gmra.mrb[6].mxu1 %vm190_vm1, %v8744_v32 }
 0x23e   :  { %7892 = vmatpush3.bf16.msra.mxu1 %v7889_v36  ;;  %7197 = vmatprep.mubr.msk.f32.mxu1 %vm190_vm1, %v8720_v13 }
 0x241   :  { %7198 = vmatmul.mubr.msk.f32.vlgmr.msra.gmra.mrb[8].mxu1 %vm190_vm1, %v8730_v23 }
 0x242   :  { %7200 = vmatprep.mubr.msk.f32.mxu1 %vm190_vm1, %v8732_v28 }
 0x245   :  { %7201 = vmatmul.mubr.msk.f32.gmra.mrb[10].mxu1 %vm190_vm1, %v8744_v32 }
 0x304   :  { %v7171_v38 = vpop.f32.mrb[0].mxu1 }
 0x305   :  { %v353_v39 = vpop.f32.mrb[1].mxu1  ;;  %v359_v7 = vadd.f32 %v7171_v38, %v6324_v37 }
 0x306   :  { %v354_v40 = vadd.f32 %v6324_v37, %v353_v39 }
 0x308   :  { %v7174_v41 = vpop.f32.mrb[2].mxu1  ;;  %7211 = vmatprep.mubr.msk.f32.mxu1 %vm564_vm2, %v354_v40 }
 0x309   :  { %v363_v42 = vpop.f32.mrb[3].mxu1  ;;  %v369_v10 = vadd.f32 %v7174_v41, %v6324_v37 }
 0x30a   :  { %v364_v9 = vadd.f32 %v6324_v37, %v363_v42 }
 0x30c   :  { %v7185_v44 = vpop.f32.mrb[4].mxu1 }
 0x30d   :  { %v455_v45 = vadd.f32 %v7185_v44, %v6329_v43  ;;  %v449_v46 = vpop.f32.mrb[5].mxu1 }
 0x30e   :  { %v450_v47 = vadd.f32 %v6329_v43, %v449_v46 }
 0x310   :  { %v7893_v49 = vpack.c.bf16 %v455_v45, %v450_v47  ;;  %v7188_v50 = vpop.f32.mrb[6].mxu1 }
 0x311   :  { %v465_v51 = vadd.f32 %v7188_v50, %v6329_v43  ;;  %v459_v52 = vpop.f32.mrb[7].mxu1 }
 0x312   :  { %v460_v53 = vadd.f32 %v6329_v43, %v459_v52  ;;  %7895 = vmatprep.subr.msk.bf16.mxu1 %vm8779_vm3, %v7893_v49 }
 0x313   :  { %7898 = vmatpush3.bf16.xpose.msk.msra.mxu1 %vm8779_vm3, %v7893_v49 }
 0x314   :  { %v7899_v55 = vpack.c.bf16 %v465_v51, %v460_v53  ;;  %v7199_v56 = vpop.f32.mrb[8].mxu1 }
 0x315   :  { %v551_v57 = vadd.f32 %v7199_v56, %v6334_v54  ;;  %v545_v58 = vpop.f32.mrb[9].mxu1 }
 0x316   :  { %v546_v61 = vadd.f32 %v6334_v54, %v545_v58  ;;  %7901 = vmatprep.subr.msk.bf16.mxu1 %vm8779_vm3, %v7899_v55 }
 0x318   :  { %v7905_v62 = vpack.c.bf16 %v551_v57, %v546_v61  ;;  %v7202_v63 = vpop.f32.mrb[10].mxu1 }
 0x319   :  { %v561_v1 = vadd.f32 %v7202_v63, %v6334_v54  ;;  %v555_v2 = vpop.f32.mrb[11].mxu1 }
 0x31a   :  { %v556_v3 = vadd.f32 %v6334_v54, %v555_v2  ;;  %7906 = vmatprep.subr.bf16.mxu0 %v7905_v62 }
 0x31b   :  { %7904 = vmatpush3.bf16.xpose.msk.msra.mxu1 %vm8779_vm3, %v7899_v55  ;;  %7908 = vmatpush3.bf16.msra.mxu0 %v7905_v62 }
 0x31c   :  { %v7909_v4 = vpack.c.bf16 %v561_v1, %v556_v3  ;;  %7922 = vmatprep.subr.bf16.mxu1 %v7921_v0  ;;  %v6351_v3 = vld [vmem:[%s10062_s4 + $0x20] sm:$0xff] }
 0x31e   :  { %7910 = vmatprep.subr.bf16.mxu0 %v7909_v4 }
 0x31f   :  { %7912 = vmatpush3.bf16.msra.mxu0 %v7909_v4  ;;  %v6352_v4 = vld [vmem:[%s10062_s4 + $0x28] sm:$0xff] }
 0x320   :  { %v7913_v5 = vpack.c.bf16 %v6352_v4, %v6351_v3  ;;  %v6415_v3 = vld [vmem:[%s10030_s8 + $0x58] sm:$0xff] }
 0x322   :  { %7212 = vmatmul.mubr.msk.f32.vlgmr.msra.gmra.mrb[12].mxu1 %vm564_vm2, %v359_v7  ;;  %7914 = vmatprep.subr.bf16.mxu0 %v7913_v5 }
 0x323   :  { %7214 = vmatprep.mubr.msk.f32.mxu1 %vm564_vm2, %v364_v9  ;;  %7924 = vmatpush3.bf16.msra.mxu1 %v7921_v0 }
 0x324   :  { %7926 = vmatprep.subr.bf16.mxu1 %v7925_v8 }
 0x326   :  { %7215 = vmatmul.mubr.msk.f32.gmra.mrb[14].mxu1 %vm564_vm2, %v369_v10 }
 0x327   :  { %7928 = vmatpush3.bf16.msra.mxu1 %v7925_v8  ;;  %7253 = vmatprep.mubr.msk.f32.mxu1 %vm190_vm1, %v8720_v13 }
 0x32a   :  { %7254 = vmatmul.mubr.msk.f32.vlgmr.msra.gmra.mrb[16].mxu1 %vm190_vm1, %v8730_v23 }
 0x32b   :  { %7256 = vmatprep.mubr.msk.f32.mxu1 %vm190_vm1, %v8732_v28 }
 0x32e   :  { %7257 = vmatmul.mubr.msk.f32.gmra.mrb[18].mxu1 %vm190_vm1, %v8744_v32 }
 0x3f5   :  { %v7213_v14 = vpop.f32.mrb[12].mxu1 }
 0x3f6   :  { %v661_v15 = vadd.f32 %v7213_v14, %v8820_v11  ;;  %v655_v16 = vpop.f32.mrb[13].mxu1  ;;  %v6353_v14 = vld [vmem:[%s10062_s4 + $0x30] sm:$0xff] }
 0x3f7   :  { %v656_v18 = vadd.f32 %v655_v16, %v8825_v12 }
 0x3f8   :  { %v677_v21 = vsel %vm190_vm1, %v661_v15, -inf }
 0x3f9   :  { %678 = vmax.xlane.f32.xlu1 %v677_v21  ;;  %v7216_v26 = vpop.f32.mrb[14].mxu1  ;;  %v674_v27 = vsel %vm190_vm1, %v656_v18, -inf }
 0x3fa   :  { %v671_v29 = vadd.f32 %v7216_v26, %v8832_v20  ;;  %675 = vmax.xlane.f32.xlu0 %v674_v27  ;;  %v665_v30 = vpop.f32.mrb[15].mxu1 }
 0x3fb   :  { %v666_v31 = vadd.f32 %v665_v30, %v8838_v22  ;;  %v6372_v30 = vld [vmem:[%s10032_s10 + $0x28] sm:$0xff] }
 0x3fc   :  { %v683_v34 = vsel %vm190_vm1, %v671_v29, -inf }
 0x3fd   :  { %684 = vmax.xlane.f32.xlu1 %v683_v34  ;;  %v7255_v35 = vpop.f32.mrb[16].mxu1  ;;  %v680_v36 = vsel %vm190_vm1, %v666_v31, -inf }
 0x3fe   :  { %v999_v37 = vadd.f32 %v7255_v35, %v6366_v33  ;;  %v993_v38 = vpop.f32.mrb[17].mxu1  ;;  %681 = vmax.xlane.f32.xlu0 %v680_v36  ;;  %v6373_v36 = vld [vmem:[%s10032_s10 + $0x30] sm:$0xff] }
 0x3ff   :  { %v994_v39 = vadd.f32 %v6366_v33, %v993_v38 }
 0x401   :  { %v7937_v40 = vpack.c.bf16 %v999_v37, %v994_v39  ;;  %v7258_v41 = vpop.f32.mrb[18].mxu1  ;;  %v6374_v37 = vld [vmem:[%s10032_s10 + $0x38] sm:$0xff]  ;;  %v6402_v39 = vld [vmem:[%s10062_s4 + $0x40] sm:$0xff] }
 0x402   :  { %v1009_v42 = vadd.f32 %v7258_v41, %v6366_v33  ;;  %v1003_v43 = vpop.f32.mrb[19].mxu1  ;;  %v7933_v38 = vpack.c.bf16 %v6374_v37, %v6373_v36 }
 0x403   :  { %v1004_v44 = vadd.f32 %v6366_v33, %v1003_v43  ;;  %7939 = vmatprep.subr.msk.bf16.mxu1 %vm8779_vm3, %v7937_v40 }
 0x404   :  { %7942 = vmatpush3.bf16.xpose.msk.msra.mxu1 %vm8779_vm3, %v7937_v40  ;;  %v6403_v40 = vld [vmem:[%s10062_s4 + $0x48] sm:$0xff] }
 0x405   :  { %v7943_v45 = vpack.c.bf16 %v1009_v42, %v1004_v44  ;;  %v7957_v41 = vpack.c.bf16 %v6403_v40, %v6402_v39 }
 0x407   :  { %7945 = vmatprep.subr.msk.bf16.mxu1 %vm8779_vm3, %v7943_v45 }
 0x40c   :  { %7948 = vmatpush3.bf16.xpose.msk.msra.mxu1 %vm8779_vm3, %v7943_v45 }
 0x40d   :  { %7958 = vmatprep.subr.bf16.mxu1 %v7957_v41 }
 0x486   :  { %v679_v46 = vpop.xlane.xlu1 %678 }
 0x487   :  { %v687_v47 = vsub.f32 %v661_v15, %v679_v46  ;;  %v676_v49 = vpop.xlane.xlu0 %675  ;;  %v6354_v15 = vld [vmem:[%s10062_s4 + $0x38] sm:$0xff]  ;;  %v6356_v46 = vld [vmem:[%s10029_s7 + $0x1] ss:$0 sm:$0xff] }
 0x488   :  { %v686_v50 = vsub.f32 %v656_v18, %v676_v49  ;;  %v7917_v26 = vpack.c.bf16 %v6354_v15, %v6353_v14  ;;  %v6404_v49 = vld [vmem:[%s10062_s4 + $0x50] sm:$0xff] }
 0x489   :  { %v692_v51 = vmul.f32 1.442695, %v687_v47 }
 0x48a   :  { %v690_v52 = vmul.f32 1.442695, %v686_v50  ;;  %v685_v53 = vpop.xlane.xlu1 %684  ;;  %v6405_v50 = vld [vmem:[%s10062_s4 + $0x58] sm:$0xff] }
 0x48b   :  { %8304 = vpow2.f32 %v692_v51  ;;  %v689_v54 = vsub.f32 %v671_v29, %v685_v53  ;;  %v682_v55 = vpop.xlane.xlu0 %681  ;;  %v6371_v29 = vld [vmem:[%s10032_s10 + $0x20] sm:$0xff] }
 0x48c   :  { %8306 = vpow2.f32 %v690_v52  ;;  %v688_v56 = vsub.f32 %v666_v31, %v682_v55  ;;  %v7929_v35 = vpack.c.bf16 %v6372_v30, %v6371_v29 }
 0x48d   :  { %v696_v57 = vmul.f32 1.442695, %v689_v54  ;;  %v7961_v54 = vpack.c.bf16 %v6405_v50, %v6404_v49 }
 0x48e   :  { %v694_v58 = vmul.f32 1.442695, %v688_v56  ;;  %v6412_v56 = vld [vmem:[%s10030_s8 + $0x40] sm:$0xff] }
 0x48f   :  { %8308 = vpow2.f32 %v696_v57  ;;  %v6413_v57 = vld [vmem:[%s10030_s8 + $0x48] sm:$0xff] }
 0x490   :  { %8310 = vpow2.f32 %v694_v58 }
 0x495   :  { %v8305_v59 = vpop.eup %8304 }
 0x496   :  { %v8307_v60 = vpop.eup %8306  ;;  %v701_v61 = vsel %vm190_vm1, %v8305_v59, 0.0 }
 0x497   :  { %702 = vadd.xlane.f32.xlu1 %v701_v61  ;;  %v698_v62 = vsel %vm190_vm1, %v8307_v60, 0.0 }
 0x498   :  { %699 = vadd.xlane.f32.xlu0 %v698_v62  ;;  %v7965_v62 = vpack.c.bf16 %v6413_v57, %v6412_v56 }
 0x499   :  { %v8309_v63 = vpop.eup %8308 }
 0x49a   :  { %v8311_v0 = vpop.eup %8310  ;;  %v707_v1 = vsel %vm190_vm1, %v8309_v63, 0.0 }
 0x49b   :  { %708 = vadd.xlane.f32.xlu1 %v707_v1  ;;  %v704_v2 = vsel %vm190_vm1, %v8311_v0, 0.0 }
 0x49c   :  { %705 = vadd.xlane.f32.xlu0 %v704_v2  ;;  %v6414_v2 = vld [vmem:[%s10030_s8 + $0x50] sm:$0xff] }
 0x524   :  { %v703_v6 = vpop.xlane.xlu1 %702 }
 0x525   :  { %8312 = vrcp.f32 %v703_v6  ;;  %v700_v7 = vpop.xlane.xlu0 %699 }
 0x526   :  { %8314 = vrcp.f32 %v700_v7  ;;  %v7969_v7 = vpack.c.bf16 %v6415_v3, %v6414_v2  ;;  %v6469_v2 = vld [vmem:[%s10032_s10 + $0x60] sm:$0xff]  ;;  %v6470_v3 = vld [vmem:[%s10032_s10 + $0x68] sm:$0xff] }
 0x528   :  { %v709_v8 = vpop.xlane.xlu1 %708 }
 0x529   :  { %8316 = vrcp.f32 %v709_v8  ;;  %v706_v9 = vpop.xlane.xlu0 %705 }
 0x52a   :  { %8318 = vrcp.f32 %v706_v9 }
 0x52f   :  { %v8313_v10 = vpop.eup %8312 }
 0x530   :  { %v8315_v16 = vpop.eup %8314  ;;  %v715_v21 = vmul.f32 %v8313_v10, %v8305_v59 }
 0x531   :  { %v714_v18 = vmul.f32 %v8315_v16, %v8307_v60  ;;  %v6376_v60 = vld [vmem:[%s10033_s11 + $0x1] ss:$0 sm:$0xff] }
 0x533   :  { %v8317_v27 = vpop.eup %8316  ;;  %7225 = vmatprep.mubr.msk.f32.mxu0 %vm190_vm1, %v714_v18 }
 0x534   :  { %v8319_v31 = vpop.eup %8318  ;;  %7226 = vmatmul.mubr.msk.f32.vlgmr.msra.gmra.mrb[4].mxu0 %vm190_vm1, %v715_v21  ;;  %v717_v34 = vmul.f32 %v8317_v27, %v8309_v63 }
 0x535   :  { %7916 = vmatpush3.bf16.msra.mxu0 %v7913_v5  ;;  %v716_v33 = vmul.f32 %v8319_v31, %v8311_v0 }
 0x536   :  { %7918 = vmatprep.subr.bf16.mxu0 %v7917_v26 }
 0x537   :  { %7228 = vmatprep.mubr.msk.f32.mxu0 %vm190_vm1, %v716_v33 }
 0x538   :  { %7229 = vmatmul.mubr.msk.f32.gmra.mrb[6].mxu0 %vm190_vm1, %v717_v34 }
 0x539   :  { %7920 = vmatpush3.bf16.msra.mxu0 %v7917_v26  ;;  %7239 = vmatprep.mubr.msk.f32.mxu0 %vm190_vm1, %v8720_v13 }
 0x53a   :  { %7930 = vmatprep.subr.bf16.mxu0 %v7929_v35 }
 0x53c   :  { %7240 = vmatmul.mubr.msk.f32.vlgmr.msra.gmra.mrb[8].mxu0 %vm190_vm1, %v8730_v23 }
 0x53d   :  { %7242 = vmatprep.mubr.msk.f32.mxu0 %vm190_vm1, %v8732_v28  ;;  %7932 = vmatpush3.bf16.msra.mxu0 %v7929_v35  ;;  %v6407_v35 = vld [vmem:[%s10029_s7 + $0x2] ss:$0 sm:$0xff] }
 0x53e   :  { %7934 = vmatprep.subr.bf16.mxu0 %v7933_v38 }
 0x540   :  { %7243 = vmatmul.mubr.msk.f32.gmra.mrb[10].mxu0 %vm190_vm1, %v8744_v32 }
 0x541   :  { %7936 = vmatpush3.bf16.msra.mxu0 %v7933_v38  ;;  %7267 = vmatprep.mubr.msk.f32.mxu0 %vm190_vm1, %v8720_v13 }
 0x544   :  { %7268 = vmatmul.mubr.msk.f32.vlgmr.msra.gmra.mrb[12].mxu0 %vm190_vm1, %v8730_v23 }
 0x545   :  { %7270 = vmatprep.mubr.msk.f32.mxu0 %vm190_vm1, %v8732_v28 }
 0x548   :  { %7271 = vmatmul.mubr.msk.f32.gmra.mrb[14].mxu0 %vm190_vm1, %v8744_v32 }
 0x607   :  { %v8910_v42 = vpop.f32.mrb[4].mxu0 }
 0x608   :  { %v8912_v43 = vpop.f32.mrb[5].mxu0 }
 0x60b   :  { %v8914_v44 = vpop.f32.mrb[6].mxu0 }
 0x60c   :  { %v8916_v45 = vpop.f32.mrb[7].mxu0 }
 0x60f   :  { %v7241_v47 = vpop.f32.mrb[8].mxu0 }
 0x610   :  { %v895_v51 = vpop.f32.mrb[9].mxu0  ;;  %v901_v53 = vadd.f32 %v7241_v47, %v6356_v46 }
 0x611   :  { %v896_v52 = vadd.f32 %v6356_v46, %v895_v51 }
 0x613   :  { %v7244_v55 = vpop.f32.mrb[10].mxu0  ;;  %7281 = vmatprep.mubr.msk.f32.mxu1 %vm564_vm2, %v896_v52 }
 0x614   :  { %v905_v58 = vpop.f32.mrb[11].mxu0  ;;  %7282 = vmatmul.mubr.msk.f32.vlgmr.msra.gmra.mrb[20].mxu1 %vm564_vm2, %v901_v53  ;;  %v911_v61 = vadd.f32 %v7244_v55, %v6356_v46 }
 0x615   :  { %v906_v59 = vadd.f32 %v6356_v46, %v905_v58  ;;  %7960 = vmatpush3.bf16.msra.mxu1 %v7957_v41  ;;  %v6417_v46 = vld [vmem:[%s10031_s9 + $0x2] ss:$0 sm:$0xff] }
 0x616   :  { %7962 = vmatprep.subr.bf16.mxu1 %v7961_v54  ;;  %v6449_v58 = vld [vmem:[%s10062_s4 + $0x60] sm:$0xff] }
 0x617   :  { %v7269_v63 = vpop.f32.mrb[12].mxu0  ;;  %7284 = vmatprep.mubr.msk.f32.mxu1 %vm564_vm2, %v906_v59  ;;  %v6450_v59 = vld [vmem:[%s10062_s4 + $0x68] sm:$0xff] }
 0x618   :  { %v1097_v0 = vadd.f32 %v7269_v63, %v6376_v60  ;;  %v1091_v1 = vpop.f32.mrb[13].mxu0  ;;  %7285 = vmatmul.mubr.msk.f32.gmra.mrb[22].mxu1 %vm564_vm2, %v911_v61  ;;  %v6451_v61 = vld [vmem:[%s10062_s4 + $0x70] sm:$0xff] }
 0x619   :  { %v1092_v4 = vadd.f32 %v6376_v60, %v1091_v1  ;;  %7964 = vmatpush3.bf16.msra.mxu1 %v7961_v54  ;;  %7325 = vmatprep.mubr.msk.f32.mxu1 %vm190_vm1, %v8720_v13 }
 0x61a   :  { %7966 = vmatprep.subr.bf16.mxu1 %v7965_v62 }
 0x61b   :  { %v7949_v5 = vpack.c.bf16 %v1097_v0, %v1092_v4  ;;  %v7272_v6 = vpop.f32.mrb[14].mxu0 }
 0x61c   :  { %v1107_v8 = vadd.f32 %v7272_v6, %v6376_v60  ;;  %v1101_v9 = vpop.f32.mrb[15].mxu0  ;;  %7326 = vmatmul.mubr.msk.f32.vlgmr.msra.gmra.mrb[24].mxu1 %vm190_vm1, %v8730_v23  ;;  %v6471_v6 = vld [vmem:[%s10032_s10 + $0x70] sm:$0xff] }
 0x61d   :  { %v1102_v10 = vadd.f32 %v6376_v60, %v1101_v9  ;;  %7950 = vmatprep.subr.bf16.mxu0 %v7949_v5  ;;  %7328 = vmatprep.mubr.msk.f32.mxu1 %vm190_vm1, %v8732_v28  ;;  %v8001_v60 = vpack.c.bf16 %v6450_v59, %v6449_v58 }
 0x61e   :  { %7968 = vmatpush3.bf16.msra.mxu1 %v7965_v62  ;;  %7952 = vmatpush3.bf16.msra.mxu0 %v7949_v5  ;;  %v6452_v62 = vld [vmem:[%s10062_s4 + $0x78] sm:$0xff]  ;;  %v8017_v5 = vpack.c.bf16 %v6470_v3, %v6469_v2  ;;  %v6474_v2 = vld [vmem:[%s10033_s11 + $0x3] ss:$0 sm:$0xff] }
 0x61f   :  { %v7953_v14 = vpack.c.bf16 %v1107_v8, %v1102_v10  ;;  %7970 = vmatprep.subr.bf16.mxu1 %v7969_v7  ;;  %v8005_v0 = vpack.c.bf16 %v6452_v62, %v6451_v61 }
 0x620   :  { %7329 = vmatmul.mubr.msk.f32.gmra.mrb[26].mxu1 %vm190_vm1, %v8744_v32 }
 0x621   :  { %7954 = vmatprep.subr.bf16.mxu0 %v7953_v14  ;;  %7339 = vmatprep.mubr.msk.f32.mxu1 %vm190_vm1, %v8720_v13 }
 0x622   :  { %7972 = vmatpush3.bf16.msra.mxu1 %v7969_v7  ;;  %7956 = vmatpush3.bf16.msra.mxu0 %v7953_v14  ;;  %v6472_v7 = vld [vmem:[%s10032_s10 + $0x78] sm:$0xff] }
 0x623   :  { %v8021_v8 = vpack.c.bf16 %v6472_v7, %v6471_v6 }
 0x625   :  { %7340 = vmatmul.mubr.msk.f32.vlgmr.msra.gmra.mrb[28].mxu1 %vm190_vm1, %v8730_v23 }
 0x626   :  { %7342 = vmatprep.mubr.msk.f32.mxu1 %vm190_vm1, %v8732_v28 }
 0x629   :  { %7343 = vmatmul.mubr.msk.f32.gmra.mrb[30].mxu1 %vm190_vm1, %v8744_v32 }
 0x6e7   :  { %v7283_v15 = vpop.f32.mrb[20].mxu1 }
 0x6e8   :  { %v8963_v16 = vadd.f32 %v7283_v15, %v8820_v11  ;;  %v1200_v18 = vpop.f32.mrb[21].mxu1 }
 0x6e9   :  { %v8966_v21 = vadd.f32 %v1200_v18, %v8825_v12 }
 0x6ea   :  { %v1222_v26 = vsel %vm190_vm1, %v8963_v16, -inf }
 0x6eb   :  { %1223 = vmax.xlane.f32.xlu1 %v1222_v26  ;;  %v7286_v27 = vpop.f32.mrb[22].mxu1  ;;  %v1219_v29 = vsel %vm190_vm1, %v8966_v21, -inf }
 0x6ec   :  { %v8973_v30 = vadd.f32 %v7286_v27, %v8832_v20  ;;  %v1210_v31 = vpop.f32.mrb[23].mxu1  ;;  %1220 = vmax.xlane.f32.xlu0 %v1219_v29 }
 0x6ed   :  { %v8976_v33 = vadd.f32 %v1210_v31, %v8838_v22 }
 0x6ee   :  { %v1228_v34 = vsel %vm190_vm1, %v8973_v30, -inf }
 0x6ef   :  { %1229 = vmax.xlane.f32.xlu1 %v1228_v34  ;;  %v7327_v36 = vpop.f32.mrb[24].mxu1  ;;  %v1225_v37 = vsel %vm190_vm1, %v8976_v33, -inf }
 0x6f0   :  { %v1635_v38 = vpop.f32.mrb[25].mxu1  ;;  %1226 = vmax.xlane.f32.xlu0 %v1225_v37  ;;  %v1641_v63 = vadd.f32 %v7327_v36, %v6407_v35 }
 0x6f1   :  { %v1636_v39 = vadd.f32 %v6407_v35, %v1635_v38 }
 0x6f3   :  { %v7330_v40 = vpop.f32.mrb[26].mxu1  ;;  %7367 = vmatprep.mubr.msk.f32.mxu1 %vm564_vm2, %v1636_v39 }
 0x6f4   :  { %v1645_v41 = vpop.f32.mrb[27].mxu1  ;;  %v1651_v4 = vadd.f32 %v7330_v40, %v6407_v35 }
 0x6f5   :  { %v1646_v1 = vadd.f32 %v6407_v35, %v1645_v41 }
 0x6f8   :  { %v7341_v47 = vpop.f32.mrb[28].mxu1 }
 0x6f9   :  { %v1739_v49 = vadd.f32 %v7341_v47, %v6417_v46  ;;  %v1733_v50 = vpop.f32.mrb[29].mxu1 }
 0x6fa   :  { %v1734_v51 = vadd.f32 %v6417_v46, %v1733_v50 }
 0x6fc   :  { %v7981_v52 = vpack.c.bf16 %v1739_v49, %v1734_v51  ;;  %v7344_v53 = vpop.f32.mrb[30].mxu1 }
 0x6fd   :  { %v1749_v54 = vadd.f32 %v7344_v53, %v6417_v46  ;;  %v1743_v55 = vpop.f32.mrb[31].mxu1 }
 0x6fe   :  { %v1744_v56 = vadd.f32 %v6417_v46, %v1743_v55  ;;  %7983 = vmatprep.subr.msk.bf16.mxu1 %vm8779_vm3, %v7981_v52 }
 0x6ff   :  { %7986 = vmatpush3.bf16.xpose.msk.msra.mxu1 %vm8779_vm3, %v7981_v52 }
 0x700   :  { %v7987_v57 = vpack.c.bf16 %v1749_v54, %v1744_v56  ;;  %v9073_v56 = vld [vmem:[%s10029_s7 + $0x3] ss:$0 sm:$0xff] }
 0x702   :  { %7989 = vmatprep.subr.msk.bf16.mxu1 %vm8779_vm3, %v7987_v57 }
 0x707   :  { %7992 = vmatpush3.bf16.xpose.msk.msra.mxu1 %vm8779_vm3, %v7987_v57 }
 0x708   :  { %8002 = vmatprep.subr.bf16.mxu1 %v8001_v60 }
 0x70e   :  { %7368 = vmatmul.mubr.msk.f32.vlgmr.msra.gmra.mrb[32].mxu1 %vm564_vm2, %v1641_v63 }
 0x70f   :  { %7370 = vmatprep.mubr.msk.f32.mxu1 %vm564_vm2, %v1646_v1  ;;  %8004 = vmatpush3.bf16.msra.mxu1 %v8001_v60 }
 0x710   :  { %8006 = vmatprep.subr.bf16.mxu1 %v8005_v0 }
 0x712   :  { %7371 = vmatmul.mubr.msk.f32.gmra.mrb[34].mxu1 %vm564_vm2, %v1651_v4 }
 0x713   :  { %8008 = vmatpush3.bf16.msra.mxu1 %v8005_v0  ;;  %7403 = vmatprep.mubr.msk.f32.mxu1 %vm190_vm1, %v8720_v13 }
 0x714   :  { %8018 = vmatprep.subr.bf16.mxu1 %v8017_v5 }
 0x716   :  { %7404 = vmatmul.mubr.msk.f32.vlgmr.msra.gmra.mrb[36].mxu1 %vm190_vm1, %v8730_v23 }
 0x717   :  { %7406 = vmatprep.mubr.msk.f32.mxu1 %vm190_vm1, %v8732_v28  ;;  %8020 = vmatpush3.bf16.msra.mxu1 %v8017_v5 }
 0x718   :  { %8022 = vmatprep.subr.bf16.mxu1 %v8021_v8 }
 0x71a   :  { %7407 = vmatmul.mubr.msk.f32.gmra.mrb[38].mxu1 %vm190_vm1, %v8744_v32 }
 0x71b   :  { %8024 = vmatpush3.bf16.msra.mxu1 %v8021_v8  ;;  %7431 = vmatprep.mubr.msk.f32.mxu1 %vm190_vm1, %v8720_v13 }
 0x71e   :  { %7432 = vmatmul.mubr.msk.f32.vlgmr.msra.gmra.mrb[40].mxu1 %vm190_vm1, %v8730_v23 }
 0x71f   :  { %7434 = vmatprep.mubr.msk.f32.mxu1 %vm190_vm1, %v8732_v28 }
 0x722   :  { %7435 = vmatmul.mubr.msk.f32.gmra.mrb[42].mxu1 %vm190_vm1, %v8744_v32 }
 0x778   :  { %v1224_v9 = vpop.xlane.xlu1 %1223 }
 0x779   :  { %v1232_v10 = vsub.f32 %v8963_v16, %v1224_v9  ;;  %v1221_v14 = vpop.xlane.xlu0 %1220 }
 0x77a   :  { %v1231_v15 = vsub.f32 %v8966_v21, %v1221_v14 }
 0x77b   :  { %v1237_v18 = vmul.f32 1.442695, %v1232_v10 }
 0x77c   :  { %v1235_v26 = vmul.f32 1.442695, %v1231_v15  ;;  %v1230_v27 = vpop.xlane.xlu1 %1229 }
 0x77d   :  { %8320 = vpow2.f32 %v1237_v18  ;;  %v1234_v29 = vsub.f32 %v8973_v30, %v1230_v27  ;;  %v1227_v31 = vpop.xlane.xlu0 %1226  ;;  %v6393_v18 = vld [vmem:[%s10034_s12 + $0x8] sm:$0xff] }
 0x77e   :  { %8322 = vpow2.f32 %v1235_v26  ;;  %v1233_v34 = vsub.f32 %v8976_v33, %v1227_v31  ;;  %7301 = vmatprep.subr.mxu0 %v6393_v18 }
 0x77f   :  { %v1241_v35 = vmul.f32 1.442695, %v1234_v29 }
 0x780   :  { %v1239_v36 = vmul.f32 1.442695, %v1233_v34 }
 0x781   :  { %8324 = vpow2.f32 %v1241_v35 }
 0x782   :  { %8326 = vpow2.f32 %v1239_v36 }
 0x787   :  { %v9044_v37 = vpop.eup %8320 }
 0x788   :  { %v8323_v16 = vpop.eup %8322  ;;  %v1246_v21 = vsel %vm190_vm1, %v9044_v37, 0.0 }
 0x789   :  { %1247 = vadd.xlane.f32.xlu1 %v1246_v21  ;;  %v1243_v38 = vsel %vm190_vm1, %v8323_v16, 0.0 }
 0x78a   :  { %1244 = vadd.xlane.f32.xlu0 %v1243_v38 }
 0x78b   :  { %v9049_v39 = vpop.eup %8324 }
 0x78c   :  { %v8327_v30 = vpop.eup %8326  ;;  %v1252_v33 = vsel %vm190_vm1, %v9049_v39, 0.0 }
 0x78d   :  { %1253 = vadd.xlane.f32.xlu1 %v1252_v33  ;;  %v1249_v40 = vsel %vm190_vm1, %v8327_v30, 0.0 }
 0x78e   :  { %1250 = vadd.xlane.f32.xlu0 %v1249_v40 }
 0x7e1   :  { %v7369_v41 = vpop.f32.mrb[32].mxu1 }
 0x7e2   :  { %v9055_v46 = vadd.f32 %v7369_v41, %v8820_v11  ;;  %v1940_v47 = vpop.f32.mrb[33].mxu1 }
 0x7e3   :  { %v9058_v49 = vadd.f32 %v1940_v47, %v8825_v12 }
 0x7e4   :  { %v1962_v50 = vsel %vm190_vm1, %v9055_v46, -inf }
 0x7e5   :  { %1963 = vmax.xlane.f32.xlu1 %v1962_v50  ;;  %v7372_v51 = vpop.f32.mrb[34].mxu1  ;;  %v1959_v52 = vsel %vm190_vm1, %v9058_v49, -inf }
 0x7e6   :  { %v9065_v53 = vadd.f32 %v7372_v51, %v8832_v20  ;;  %v1950_v54 = vpop.f32.mrb[35].mxu1  ;;  %1960 = vmax.xlane.f32.xlu0 %v1959_v52 }
 0x7e7   :  { %v9068_v55 = vadd.f32 %v1950_v54, %v8838_v22 }
 0x7e8   :  { %v1968_v57 = vsel %vm190_vm1, %v9065_v53, -inf }
 0x7e9   :  { %1969 = vmax.xlane.f32.xlu1 %v1968_v57  ;;  %v7405_v58 = vpop.f32.mrb[36].mxu1  ;;  %v1965_v59 = vsel %vm190_vm1, %v9068_v55, -inf }
 0x7ea   :  { %v9080_v60 = vadd.f32 %v7405_v58, %v9073_v56  ;;  %v9082_v61 = vpop.f32.mrb[37].mxu1  ;;  %1966 = vmax.xlane.f32.xlu0 %v1965_v59 }
 0x7ed   :  { %v7408_v62 = vpop.f32.mrb[38].mxu1 }
 0x7ee   :  { %v9085_v63 = vadd.f32 %v7408_v62, %v9073_v56  ;;  %v2292_v0 = vpop.f32.mrb[39].mxu1 }
 0x7ef   :  { %v9088_v1 = vadd.f32 %v9073_v56, %v2292_v0 }
 0x7f1   :  { %v7433_v3 = vpop.f32.mrb[40].mxu1 }
 0x7f2   :  { %v2484_v4 = vadd.f32 %v7433_v3, %v6474_v2  ;;  %v2478_v5 = vpop.f32.mrb[41].mxu1 }
 0x7f3   :  { %v2479_v6 = vadd.f32 %v6474_v2, %v2478_v5  ;;  %v6422_v5 = vld [vmem:[%s10032_s10 + $0x40] sm:$0xff] }
 0x7f5   :  { %v8037_v7 = vpack.c.bf16 %v2484_v4, %v2479_v6  ;;  %v7436_v8 = vpop.f32.mrb[42].mxu1  ;;  %v6423_v6 = vld [vmem:[%s10032_s10 + $0x48] sm:$0xff] }
 0x7f6   :  { %v2494_v9 = vadd.f32 %v7436_v8, %v6474_v2  ;;  %v2488_v10 = vpop.f32.mrb[43].mxu1 }
 0x7f7   :  { %v2489_v14 = vadd.f32 %v6474_v2, %v2488_v10  ;;  %8038 = vmatprep.subr.bf16.mxu1 %v8037_v7 }
 0x7f8   :  { %8040 = vmatpush3.bf16.msra.mxu1 %v8037_v7 }
 0x7f9   :  { %v8041_v15 = vpack.c.bf16 %v2494_v9, %v2489_v14  ;;  %v7973_v9 = vpack.c.bf16 %v6423_v6, %v6422_v5 }
 0x7fb   :  { %8042 = vmatprep.subr.bf16.mxu1 %v8041_v15 }
 0x7fc   :  { %8044 = vmatpush3.bf16.msra.mxu1 %v8041_v15  ;;  %v6424_v15 = vld [vmem:[%s10032_s10 + $0x50] sm:$0xff] }
 0x816   :  { %v1248_v26 = vpop.xlane.xlu1 %1247 }
 0x817   :  { %8328 = vrcp.f32 %v1248_v26  ;;  %v1245_v27 = vpop.xlane.xlu0 %1244 }
 0x818   :  { %8330 = vrcp.f32 %v1245_v27 }
 0x81a   :  { %v1254_v29 = vpop.xlane.xlu1 %1253 }
 0x81b   :  { %8332 = vrcp.f32 %v1254_v29  ;;  %v1251_v31 = vpop.xlane.xlu0 %1250  ;;  %v6427_v29 = vld [vmem:[%s10033_s11 + $0x2] ss:$0 sm:$0xff] }
 0x81c   :  { %8334 = vrcp.f32 %v1251_v31 }
 0x821   :  { %v8329_v34 = vpop.eup %8328 }
 0x822   :  { %v8331_v35 = vpop.eup %8330  ;;  %v1260_v21 = vmul.f32 %v8329_v34, %v9044_v37 }
 0x823   :  { %v1259_v36 = vmul.f32 %v8331_v35, %v8323_v16 }
 0x825   :  { %v8333_v38 = vpop.eup %8332  ;;  %7295 = vmatprep.mubr.msk.f32.mxu0 %vm190_vm1, %v1259_v36 }
 0x826   :  { %v8335_v33 = vpop.eup %8334  ;;  %7296 = vmatmul.mubr.msk.f32.vlgmr.msra.gmra.mrb[16].mxu0 %vm190_vm1, %v1260_v21  ;;  %v1262_v41 = vmul.f32 %v8333_v38, %v9049_v39 }
 0x827   :  { %v1261_v40 = vmul.f32 %v8335_v33, %v8327_v30  ;;  %7302 = vmatpush3.msra.mxu0 %v6393_v18  ;;  %v6425_v18 = vld [vmem:[%s10032_s10 + $0x58] sm:$0xff] }
 0x828   :  { %v7977_v26 = vpack.c.bf16 %v6425_v18, %v6424_v15 }
 0x829   :  { %7298 = vmatprep.mubr.msk.f32.mxu0 %vm190_vm1, %v1261_v40 }
 0x82a   :  { %7299 = vmatmul.mubr.msk.f32.gmra.mrb[18].mxu0 %vm190_vm1, %v1262_v41 }
 0x872   :  { %v1964_v47 = vpop.xlane.xlu1 %1963 }
 0x873   :  { %v1972_v50 = vsub.f32 %v9055_v46, %v1964_v47  ;;  %v1961_v16 = vpop.xlane.xlu0 %1960  ;;  %v815_v46 = vld [vmem:[%s10034_s12] sm:$0xff] }
 0x874   :  { %v1971_v37 = vsub.f32 %v9058_v49, %v1961_v16  ;;  %7309 = vmatprep.subr.mxu0 %v815_v46 }
 0x875   :  { %v1977_v51 = vmul.f32 1.442695, %v1972_v50 }
 0x876   :  { %v1975_v52 = vmul.f32 1.442695, %v1971_v37  ;;  %v1970_v54 = vpop.xlane.xlu1 %1969  ;;  %v6444_v37 = vld [vmem:[%s10034_s12 + $0x10] sm:$0xff] }
 0x877   :  { %8336 = vpow2.f32 %v1977_v51  ;;  %v1974_v57 = vsub.f32 %v9065_v53, %v1970_v54  ;;  %v1967_v30 = vpop.xlane.xlu0 %1966 }
 0x878   :  { %8338 = vpow2.f32 %v1975_v52  ;;  %v1973_v39 = vsub.f32 %v9068_v55, %v1967_v30 }
 0x879   :  { %v1981_v58 = vmul.f32 1.442695, %v1974_v57 }
 0x87a   :  { %v1979_v59 = vmul.f32 1.442695, %v1973_v39  ;;  %v6459_v39 = vld [vmem:[%s10030_s8 + $0x60] sm:$0xff] }
 0x87b   :  { %8340 = vpow2.f32 %v1981_v58  ;;  %v6460_v58 = vld [vmem:[%s10030_s8 + $0x68] sm:$0xff] }
 0x87c   :  { %8342 = vpow2.f32 %v1979_v59  ;;  %v8009_v59 = vpack.c.bf16 %v6460_v58, %v6459_v39 }
 0x881   :  { %v9109_v49 = vpop.eup %8336 }
 0x882   :  { %v8339_v62 = vpop.eup %8338  ;;  %v1986_v0 = vsel %vm190_vm1, %v9109_v49, 0.0 }
 0x883   :  { %1987 = vadd.xlane.f32.xlu1 %v1986_v0  ;;  %v1983_v53 = vsel %vm190_vm1, %v8339_v62, 0.0 }
 0x884   :  { %1984 = vadd.xlane.f32.xlu0 %v1983_v53 }
 0x885   :  { %v9114_v55 = vpop.eup %8340 }
 0x886   :  { %v9116_v2 = vpop.eup %8342  ;;  %v1992_v3 = vsel %vm190_vm1, %v9114_v55, 0.0 }
 0x887   :  { %1993 = vadd.xlane.f32.xlu1 %v1992_v3  ;;  %v1989_v4 = vsel %vm190_vm1, %v9116_v2, 0.0  ;;  %v2283_v3 = vadd.f32 %v9073_v56, %v9082_v61 }
 0x888   :  { %1990 = vadd.xlane.f32.xlu0 %v1989_v4  ;;  %v6464_v4 = vld [vmem:[%s10031_s9 + $0x3] ss:$0 sm:$0xff] }
 0x8f9   :  { %v7297_v7 = vpop.f32.mrb[16].mxu0 }
 0x8fa   :  { %v1341_v8 = vpop.f32.mrb[17].mxu0 }
 0x8fb   :  { %7303 = vmatprep.mubr.msk.f32.mxu0 %vm564_vm2, %v1341_v8 }
 0x8fc   :  { %7304 = vmatmul.mubr.msk.f32.vlgmr.msra.gmra.mrb[20].mxu0 %vm564_vm2, %v7297_v7 }
 0x8fd   :  { %v7300_v10 = vpop.f32.mrb[18].mxu0  ;;  %7310 = vmatpush3.msra.mxu0 %v815_v46  ;;  %v6461_v46 = vld [vmem:[%s10030_s8 + $0x70] sm:$0xff] }
 0x8fe   :  { %v1351_v14 = vpop.f32.mrb[19].mxu0  ;;  %7974 = vmatprep.subr.bf16.mxu0 %v7973_v9 }
 0x8ff   :  { %7306 = vmatprep.mubr.msk.f32.mxu0 %vm564_vm2, %v1351_v14 }
 0x900   :  { %7307 = vmatmul.mubr.msk.f32.gmra.mrb[22].mxu0 %vm564_vm2, %v7300_v10 }
 0x901   :  { %7311 = vmatprep.mubr.msk.f32.mxu0 %vm564_vm2, %v8912_v43 }
 0x904   :  { %7312 = vmatmul.mubr.msk.f32.vlgmr.msra.gmra.mrb[20].mxu0 %vm564_vm2, %v8910_v42 }
 0x905   :  { %7314 = vmatprep.mubr.msk.f32.mxu0 %vm564_vm2, %v8916_v45  ;;  %7976 = vmatpush3.bf16.msra.mxu0 %v7973_v9 }
 0x906   :  { %7978 = vmatprep.subr.bf16.mxu0 %v7977_v26 }
 0x908   :  { %7315 = vmatmul.mubr.msk.f32.gmra.mrb[22].mxu0 %vm564_vm2, %v8914_v44 }
 0x909   :  { %7980 = vmatpush3.bf16.msra.mxu0 %v7977_v26  ;;  %7353 = vmatprep.mubr.msk.f32.mxu0 %vm190_vm1, %v8720_v13 }
 0x90c   :  { %7354 = vmatmul.mubr.msk.f32.vlgmr.msra.gmra.mrb[24].mxu0 %vm190_vm1, %v8730_v23 }
 0x90d   :  { %7356 = vmatprep.mubr.msk.f32.mxu0 %vm190_vm1, %v8732_v28 }
 0x910   :  { %7357 = vmatmul.mubr.msk.f32.gmra.mrb[26].mxu0 %vm190_vm1, %v8744_v32  ;;  %v1988_v44 = vpop.xlane.xlu1 %1987 }
 0x911   :  { %v1985_v42 = vpop.xlane.xlu0 %1984 }
 0x912   :  { %8344 = vrcp.f32 %v1985_v42 }
 0x913   :  { %8346 = vrcp.f32 %v1988_v44 }
 0x914   :  { %v1994_v31 = vpop.xlane.xlu1 %1993 }
 0x915   :  { %v1991_v27 = vpop.xlane.xlu0 %1990 }
 0x916   :  { %8348 = vrcp.f32 %v1991_v27 }
 0x917   :  { %8350 = vrcp.f32 %v1994_v31 }
 0x91c   :  { %v8345_v43 = vpop.eup %8344 }
 0x91d   :  { %v1999_v45 = vmul.f32 %v8345_v43, %v8339_v62  ;;  %v8347_v16 = vpop.eup %8346 }
 0x91e   :  { %v2000_v52 = vmul.f32 %v8347_v16, %v9109_v49  ;;  %v6462_v49 = vld [vmem:[%s10030_s8 + $0x78] sm:$0xff] }
 0x91f   :  { %7381 = vmatprep.mubr.msk.f32.mxu0 %vm190_vm1, %v1999_v45  ;;  %v8013_v53 = vpack.c.bf16 %v6462_v49, %v6461_v46 }
 0x920   :  { %v8349_v51 = vpop.eup %8348 }
 0x921   :  { %v8351_v54 = vpop.eup %8350  ;;  %v2001_v57 = vmul.f32 %v8349_v51, %v9116_v2  ;;  %v6491_v51 = vld [vmem:[%s10034_s12 + $0x18] sm:$0xff] }
 0x922   :  { %v2002_v30 = vmul.f32 %v8351_v54, %v9114_v55 }
 0x9df   :  { %v7355_v34 = vpop.f32.mrb[24].mxu0 }
 0x9e0   :  { %v1837_v35 = vadd.f32 %v7355_v34, %v6427_v29  ;;  %v1831_v36 = vpop.f32.mrb[25].mxu0 }
 0x9e1   :  { %v1832_v21 = vadd.f32 %v6427_v29, %v1831_v36 }
 0x9e3   :  { %v7993_v38 = vpack.c.bf16 %v1837_v35, %v1832_v21  ;;  %v7358_v33 = vpop.f32.mrb[26].mxu0 }
 0x9e4   :  { %v1847_v40 = vadd.f32 %v7358_v33, %v6427_v29  ;;  %v1841_v41 = vpop.f32.mrb[27].mxu0 }
 0x9e5   :  { %v1842_v47 = vadd.f32 %v6427_v29, %v1841_v41  ;;  %7994 = vmatprep.subr.bf16.mxu0 %v7993_v38 }
 0x9e6   :  { %7996 = vmatpush3.bf16.msra.mxu0 %v7993_v38 }
 0x9e7   :  { %v7997_v50 = vpack.c.bf16 %v1847_v40, %v1842_v47 }
 0x9e9   :  { %7998 = vmatprep.subr.bf16.mxu0 %v7997_v50 }
 0x9ea   :  { %8000 = vmatpush3.bf16.msra.mxu0 %v7997_v50 }
 0x9eb   :  { %7387 = vmatprep.subr.mxu0 %v6444_v37 }
 0x9ed   :  { %7382 = vmatmul.mubr.msk.f32.vlgmr.msra.gmra.mrb[28].mxu0 %vm190_vm1, %v2000_v52 }
 0x9ee   :  { %7384 = vmatprep.mubr.msk.f32.mxu0 %vm190_vm1, %v2001_v57  ;;  %7388 = vmatpush3.msra.mxu0 %v6444_v37 }
 0x9ef   :  { %8010 = vmatprep.subr.bf16.mxu0 %v8009_v59 }
 0x9f1   :  { %7385 = vmatmul.mubr.msk.f32.gmra.mrb[30].mxu0 %vm190_vm1, %v2002_v30 }
 0xac0   :  { %v7383_v62 = vpop.f32.mrb[28].mxu0 }
 0xac1   :  { %v2081_v0 = vpop.f32.mrb[29].mxu0 }
 0xac2   :  { %7389 = vmatprep.mubr.msk.f32.mxu0 %vm564_vm2, %v2081_v0 }
 0xac3   :  { %7390 = vmatmul.mubr.msk.f32.vlgmr.msra.gmra.mrb[20].mxu0 %vm564_vm2, %v7383_v62 }
 0xac4   :  { %v7386_v55 = vpop.f32.mrb[30].mxu0  ;;  %8012 = vmatpush3.bf16.msra.mxu0 %v8009_v59 }
 0xac5   :  { %v2091_v2 = vpop.f32.mrb[31].mxu0  ;;  %8014 = vmatprep.subr.bf16.mxu0 %v8013_v53 }
 0xac6   :  { %7392 = vmatprep.mubr.msk.f32.mxu0 %vm564_vm2, %v2091_v2 }
 0xac7   :  { %7393 = vmatmul.mubr.msk.f32.gmra.mrb[22].mxu0 %vm564_vm2, %v7386_v55 }
 0xac8   :  { %8016 = vmatpush3.bf16.msra.mxu0 %v8013_v53  ;;  %7417 = vmatprep.mubr.msk.f32.mxu0 %vm190_vm1, %v8720_v13 }
 0xacb   :  { %7418 = vmatmul.mubr.msk.f32.vlgmr.msra.gmra.mrb[32].mxu0 %vm190_vm1, %v8730_v23 }
 0xacc   :  { %7420 = vmatprep.mubr.msk.f32.mxu0 %vm190_vm1, %v8732_v28 }
 0xacf   :  { %7421 = vmatmul.mubr.msk.f32.gmra.mrb[34].mxu0 %vm190_vm1, %v8744_v32 }
 0xad0   :  { %7445 = vmatprep.mubr.msk.f32.mxu0 %vm564_vm2, %v2283_v3 }
 0xb9e   :  { %v7419_v5 = vpop.f32.mrb[32].mxu0 }
 0xb9f   :  { %v2386_v13 = vadd.f32 %v7419_v5, %v6464_v4  ;;  %v2380_v6 = vpop.f32.mrb[33].mxu0 }
 0xba0   :  { %v2381_v7 = vadd.f32 %v6464_v4, %v2380_v6 }
 0xba2   :  { %v8025_v23 = vpack.c.bf16 %v2386_v13, %v2381_v7  ;;  %v7422_v8 = vpop.f32.mrb[34].mxu0  ;;  %v6496_v13 = vld [vmem:[%s10035_s13] ss:$0 sm:$0xff] }
 0xba3   :  { %v2396_v9 = vadd.f32 %v7422_v8, %v6464_v4  ;;  %v2390_v28 = vpop.f32.mrb[35].mxu0 }
 0xba4   :  { %v2391_v10 = vadd.f32 %v6464_v4, %v2390_v28  ;;  %8027 = vmatprep.subr.msk.bf16.mxu0 %vm8779_vm3, %v8025_v23 }
 0xba5   :  { %8030 = vmatpush3.bf16.xpose.msk.msra.mxu0 %vm8779_vm3, %v8025_v23 }
 0xba6   :  { %v8031_v32 = vpack.c.bf16 %v2396_v9, %v2391_v10 }
 0xba8   :  { %8033 = vmatprep.subr.msk.bf16.mxu0 %vm8779_vm3, %v8031_v32 }
 0xbad   :  { %8036 = vmatpush3.bf16.xpose.msk.msra.mxu0 %vm8779_vm3, %v8031_v32 }
 0xbae   :  { %7465 = vmatprep.subr.mxu0 %v6491_v51 }
 0xbb4   :  { %7446 = vmatmul.mubr.msk.f32.vlgmr.msra.gmra.mrb[36].mxu0 %vm564_vm2, %v9080_v60 }
 0xbb5   :  { %7448 = vmatprep.mubr.msk.f32.mxu0 %vm564_vm2, %v9088_v1  ;;  %7466 = vmatpush3.msra.mxu0 %v6491_v51 }
 0xbb8   :  { %7449 = vmatmul.mubr.msk.f32.gmra.mrb[38].mxu0 %vm564_vm2, %v9085_v63 }
 0xc87   :  { %v7447_v56 = vpop.f32.mrb[36].mxu0 }
 0xc88   :  { %v2593_v61 = vadd.f32 %v7447_v56, %v8820_v11  ;;  %v2587_v14 = vpop.f32.mrb[37].mxu0 }
 0xc89   :  { %v2588_v15 = vadd.f32 %v2587_v14, %v8825_v12 }
 0xc8a   :  { %v2609_v18 = vsel %vm190_vm1, %v2593_v61, -inf }
 0xc8b   :  { %2610 = vmax.xlane.f32.xlu1 %v2609_v18  ;;  %v7450_v26 = vpop.f32.mrb[38].mxu0  ;;  %v2606_v42 = vsel %vm190_vm1, %v2588_v15, -inf }
 0xc8c   :  { %v2603_v60 = vadd.f32 %v7450_v26, %v8832_v20  ;;  %v2597_v43 = vpop.f32.mrb[39].mxu0  ;;  %2607 = vmax.xlane.f32.xlu0 %v2606_v42 }
 0xc8d   :  { %v2598_v1 = vadd.f32 %v2597_v43, %v8838_v22 }
 0xc8e   :  { %v2615_v63 = vsel %vm190_vm1, %v2603_v60, -inf }
 0xc8f   :  { %2616 = vmax.xlane.f32.xlu1 %v2615_v63  ;;  %v2612_v11 = vsel %vm190_vm1, %v2598_v1, -inf }
 0xc90   :  { %2613 = vmax.xlane.f32.xlu0 %v2612_v11 }
 0xd18   :  { %v2611_v45 = vpop.xlane.xlu1 %2610 }
 0xd19   :  { %v2619_v12 = vsub.f32 %v2593_v61, %v2611_v45  ;;  %v2608_v44 = vpop.xlane.xlu0 %2607 }
 0xd1a   :  { %v2618_v27 = vsub.f32 %v2588_v15, %v2608_v44 }
 0xd1b   :  { %v2624_v29 = vmul.f32 1.442695, %v2619_v12 }
 0xd1c   :  { %v2622_v31 = vmul.f32 1.442695, %v2618_v27  ;;  %v2617_v34 = vpop.xlane.xlu1 %2616 }
 0xd1d   :  { %8352 = vpow2.f32 %v2624_v29  ;;  %v2621_v35 = vsub.f32 %v2603_v60, %v2617_v34  ;;  %v2614_v20 = vpop.xlane.xlu0 %2613 }
 0xd1e   :  { %8354 = vpow2.f32 %v2622_v31  ;;  %v2620_v36 = vsub.f32 %v2598_v1, %v2614_v20 }
 0xd1f   :  { %v2628_v21 = vmul.f32 1.442695, %v2621_v35 }
 0xd20   :  { %v2626_v22 = vmul.f32 1.442695, %v2620_v36 }
 0xd21   :  { %8356 = vpow2.f32 %v2628_v21 }
 0xd22   :  { %8358 = vpow2.f32 %v2626_v22  ;;  %v2939_v22 = vld [vmem:[%s10038_s16] sm:$0xff] }
 0xd27   :  { %v8353_v38 = vpop.eup %8352 }
 0xd28   :  { %v8355_v33 = vpop.eup %8354  ;;  %v2633_v40 = vsel %vm190_vm1, %v8353_v38, 0.0 }
 0xd29   :  { %2634 = vadd.xlane.f32.xlu1 %v2633_v40  ;;  %v2630_v41 = vsel %vm190_vm1, %v8355_v33, 0.0  ;;  %v2941_v40 = vld [vmem:[%s10038_s16 + $0x10] sm:$0xff] }
 0xd2a   :  { %2631 = vadd.xlane.f32.xlu0 %v2630_v41  ;;  %v2942_v41 = vld [vmem:[%s10038_s16 + $0x18] sm:$0xff] }
 0xd2b   :  { %v8357_v47 = vpop.eup %8356 }
 0xd2c   :  { %v8359_v50 = vpop.eup %8358  ;;  %v2639_v16 = vsel %vm190_vm1, %v8357_v47, 0.0 }
 0xd2d   :  { %2640 = vadd.xlane.f32.xlu1 %v2639_v16  ;;  %v2636_v37 = vsel %vm190_vm1, %v8359_v50, 0.0 }
 0xd2e   :  { %2637 = vadd.xlane.f32.xlu0 %v2636_v37 }
 0xdb6   :  { %v2635_v52 = vpop.xlane.xlu1 %2634 }
 0xdb7   :  { %8360 = vrcp.f32 %v2635_v52  ;;  %v2632_v54 = vpop.xlane.xlu0 %2631 }
 0xdb8   :  { %8362 = vrcp.f32 %v2632_v54 }
 0xdba   :  { %v2641_v57 = vpop.xlane.xlu1 %2640 }
 0xdbb   :  { %8364 = vrcp.f32 %v2641_v57  ;;  %v2638_v30 = vpop.xlane.xlu0 %2637 }
 0xdbc   :  { %8366 = vrcp.f32 %v2638_v30 }
 0xdc1   :  { %v8361_v39 = vpop.eup %8360 }
 0xdc2   :  { %v8363_v58 = vpop.eup %8362  ;;  %v2647_v46 = vmul.f32 %v8361_v39, %v8353_v38  ;;  %v2940_v38 = vld [vmem:[%s10038_s16 + $0x8] sm:$0xff] }
 0xdc3   :  { %v2646_v59 = vmul.f32 %v8363_v58, %v8355_v33  ;;  %v8045_v33 = vpack.c.bf16 %v2940_v38, %v2939_v22 }
 0xdc5   :  { %v8365_v49 = vpop.eup %8364  ;;  %7459 = vmatprep.mubr.msk.f32.mxu1 %vm190_vm1, %v2646_v59  ;;  %8046 = vmatprep.subr.bf16.mxu1 %v8045_v33 }
 0xdc6   :  { %v8367_v62 = vpop.eup %8366  ;;  %7460 = vmatmul.mubr.msk.f32.vlgmr.msra.gmra.mrb[44].mxu1 %vm190_vm1, %v2647_v46  ;;  %v2649_v53 = vmul.f32 %v8365_v49, %v8357_v47  ;;  %v8049_v47 = vpack.c.bf16 %v2942_v41, %v2941_v40 }
 0xdc7   :  { %v2648_v0 = vmul.f32 %v8367_v62, %v8359_v50  ;;  %8048 = vmatpush3.bf16.msra.mxu1 %v8045_v33  ;;  %v6497_v62 = vld [vmem:[%s10036_s14] ss:$0 sm:$0xff] }
 0xdc8   :  { %8050 = vmatprep.subr.bf16.mxu1 %v8049_v47 }
 0xdc9   :  { %7462 = vmatprep.mubr.msk.f32.mxu1 %vm190_vm1, %v2648_v0 }
 0xdca   :  { %7463 = vmatmul.mubr.msk.f32.gmra.mrb[46].mxu1 %vm190_vm1, %v2649_v53 }
 0xdcb   :  { %8052 = vmatpush3.bf16.msra.mxu1 %v8049_v47 }
 0xe99   :  { %v7461_v55 = vpop.f32.mrb[44].mxu1 }
 0xe9a   :  { %v2728_v2 = vpop.f32.mrb[45].mxu1 }
 0xe9b   :  { %7467 = vmatprep.mubr.msk.f32.mxu0 %vm564_vm2, %v2728_v2  ;;  %v6498_v2 = vld [vmem:[%s10037_s15] ss:$0 sm:$0xff] }
 0xe9c   :  { %7468 = vmatmul.mubr.msk.f32.vlgmr.msra.gmra.mrb[20].mxu0 %vm564_vm2, %v7461_v55 }
 0xe9d   :  { %v7464_v3 = vpop.f32.mrb[46].mxu1 }
 0xe9e   :  { %v2738_v4 = vpop.f32.mrb[47].mxu1 }
 0xe9f   :  { %7470 = vmatprep.mubr.msk.f32.mxu0 %vm564_vm2, %v2738_v4 }
 0xea0   :  { %7471 = vmatmul.mubr.msk.f32.gmra.mrb[22].mxu0 %vm564_vm2, %v7464_v3 }
 0xf6f   :  { %v7469_v5 = vpop.f32.mrb[20].mxu0 }
 0xf70   :  { %v2851_v6 = vadd.f32 %v7469_v5, %v8671_v19  ;;  %v2827_v7 = vpop.f32.mrb[21].mxu0 }
 0xf71   :  { %v2850_v23 = vadd.f32 %v2827_v7, %v8666_v17 }
 0xf72   :  { %v9239_v8 = vadd.f32 %v6496_v13, %v2851_v6 }
 0xf73   :  { %v9241_v9 = vadd.f32 %v6496_v13, %v2850_v23  ;;  %v7472_v28 = vpop.f32.mrb[22].mxu0 }
 0xf74   :  { %v2853_v10 = vadd.f32 %v7472_v28, %v8680_v25  ;;  %v2837_v32 = vpop.f32.mrb[23].mxu0  ;;  %v2870_v56 = vsel %vm190_vm1, %v9239_v8, 0.0 }
 0xf75   :  { %v2852_v61 = vadd.f32 %v2837_v32, %v8678_v24  ;;  %2871 = vadd.xlane.f32.xlu1 %v2870_v56  ;;  %v2867_v19 = vsel %vm190_vm1, %v9241_v9, 0.0 }
 0xf76   :  { %v9249_v14 = vadd.f32 %v6496_v13, %v2853_v10  ;;  %2868 = vadd.xlane.f32.xlu0 %v2867_v19  ;;  %v3083_v19 = vld [vmem:[%s10040_s18] sm:$0xff] }
 0xf77   :  { %v9251_v17 = vadd.f32 %v6496_v13, %v2852_v61 }
 0xf78   :  { %v2876_v15 = vsel %vm190_vm1, %v9249_v14, 0.0 }
 0xf79   :  { %2877 = vadd.xlane.f32.xlu1 %v2876_v15  ;;  %v2873_v25 = vsel %vm190_vm1, %v9251_v17, 0.0  ;;  %v3084_v15 = vld [vmem:[%s10040_s18 + $0x8] sm:$0xff] }
 0xf7a   :  { %2874 = vadd.xlane.f32.xlu0 %v2873_v25  ;;  %v8053_v25 = vpack.c.bf16 %v3084_v15, %v3083_v19 }
 0xf7c   :  { %8054 = vmatprep.subr.bf16.mxu1 %v8053_v25 }
0x1002   :  { %v2872_v18 = vpop.xlane.xlu1 %2871 }
0x1003   :  { %v2880_v26 = vmul.f32 0.03125, %v2872_v18  ;;  %v2869_v24 = vpop.xlane.xlu0 %2868  ;;  %v3085_v18 = vld [vmem:[%s10040_s18 + $0x10] sm:$0xff] }
0x1004   :  { %v2879_v42 = vmul.f32 0.03125, %v2869_v24 }
0x1005   :  { %v2884_v60 = vsub.f32 %v9239_v8, %v2880_v26  ;;  %v3086_v26 = vld [vmem:[%s10040_s18 + $0x18] sm:$0xff] }
0x1006   :  { %v2883_v43 = vsub.f32 %v9241_v9, %v2879_v42  ;;  %v2878_v1 = vpop.xlane.xlu1 %2877  ;;  %v8057_v24 = vpack.c.bf16 %v3086_v26, %v3085_v18  ;;  %v3087_v42 = vld [vmem:[%s10040_s18 + $0x20] sm:$0xff] }
0x1007   :  { %v2882_v63 = vmul.f32 0.03125, %v2878_v1  ;;  %v2875_v11 = vpop.xlane.xlu0 %2874  ;;  %v2888_v45 = vmul.f32 %v2884_v60, %v2884_v60  ;;  %v3089_v1 = vld [vmem:[%s10040_s18 + $0x30] sm:$0xff] }
0x1008   :  { %v2881_v12 = vmul.f32 0.03125, %v2875_v11  ;;  %v2887_v44 = vmul.f32 %v2883_v43, %v2883_v43 }
0x1009   :  { %v2886_v27 = vsub.f32 %v9249_v14, %v2882_v63  ;;  %v2894_v29 = vsel %vm190_vm1, %v2888_v45, 0.0  ;;  %v3090_v63 = vld [vmem:[%s10040_s18 + $0x38] sm:$0xff]  ;;  %v6499_v45 = vld [vmem:[%s10039_s17] ss:$0 sm:$0xff] }
0x100a   :  { %v2885_v31 = vsub.f32 %v9251_v17, %v2881_v12  ;;  %2895 = vadd.xlane.f32.xlu1 %v2894_v29  ;;  %v2891_v34 = vsel %vm190_vm1, %v2887_v44, 0.0  ;;  %v8065_v11 = vpack.c.bf16 %v3090_v63, %v3089_v1 }
0x100b   :  { %2892 = vadd.xlane.f32.xlu0 %v2891_v34  ;;  %v2890_v35 = vmul.f32 %v2886_v27, %v2886_v27 }
0x100c   :  { %v2889_v20 = vmul.f32 %v2885_v31, %v2885_v31 }
0x100d   :  { %v2900_v36 = vsel %vm190_vm1, %v2890_v35, 0.0 }
0x100e   :  { %2901 = vadd.xlane.f32.xlu1 %v2900_v36  ;;  %v2897_v21 = vsel %vm190_vm1, %v2889_v20, 0.0 }
0x100f   :  { %2898 = vadd.xlane.f32.xlu0 %v2897_v21 }
0x1097   :  { %v2896_v50 = vpop.xlane.xlu1 %2895 }
0x1098   :  { %v2904_v16 = vmul.f32 0.03125, %v2896_v50  ;;  %v2893_v37 = vpop.xlane.xlu0 %2892 }
0x1099   :  { %v2903_v51 = vmul.f32 0.03125, %v2893_v37 }
0x109a   :  { %v2908_v52 = vadd.f32 1e-06, %v2904_v16 }
0x109b   :  { %v2907_v54 = vadd.f32 1e-06, %v2903_v51  ;;  %v2902_v57 = vpop.xlane.xlu1 %2901 }
0x109c   :  { %8368 = vrsqrt.f32 %v2908_v52  ;;  %v2906_v30 = vmul.f32 0.03125, %v2902_v57  ;;  %v2899_v39 = vpop.xlane.xlu0 %2898 }
0x109d   :  { %8370 = vrsqrt.f32 %v2907_v54  ;;  %v2905_v58 = vmul.f32 0.03125, %v2899_v39 }
0x109e   :  { %v2910_v59 = vadd.f32 1e-06, %v2906_v30 }
0x109f   :  { %v2909_v46 = vadd.f32 1e-06, %v2905_v58 }
0x10a0   :  { %8372 = vrsqrt.f32 %v2910_v59 }
0x10a1   :  { %8374 = vrsqrt.f32 %v2909_v46 }
0x10a6   :  { %v8369_v49 = vpop.eup %8368 }
0x10a7   :  { %v8371_v0 = vpop.eup %8370  ;;  %v2916_v53 = vmul.f32 %v8369_v49, %v2884_v60  ;;  %v3088_v60 = vld [vmem:[%s10040_s18 + $0x28] sm:$0xff] }
0x10a8   :  { %v2915_v55 = vmul.f32 %v8371_v0, %v2883_v43  ;;  %v8061_v43 = vpack.c.bf16 %v3088_v60, %v3087_v42 }
0x10a9   :  { %v2926_v3 = vmul.f32 %v6497_v62, %v2916_v53 }
0x10aa   :  { %v8373_v4 = vpop.eup %8372  ;;  %v2925_v5 = vmul.f32 %v6497_v62, %v2915_v55 }
0x10ab   :  { %v8375_v13 = vpop.eup %8374  ;;  %v2918_v6 = vmul.f32 %v8373_v4, %v2886_v27  ;;  %v2936_v28 = vadd.f32 %v6498_v2, %v2926_v3 }
0x10ac   :  { %v2935_v7 = vadd.f32 %v6498_v2, %v2925_v5  ;;  %v2917_v23 = vmul.f32 %v8375_v13, %v2885_v31 }
0x10ad   :  { %v2928_v10 = vmul.f32 %v6497_v62, %v2918_v6 }
0x10ae   :  { %7481 = vmatprep.mubr.msk.f32.mxu1 %vm190_vm1, %v2935_v7  ;;  %v2927_v32 = vmul.f32 %v6497_v62, %v2917_v23 }
0x10af   :  { %7482 = vmatmul.mubr.msk.f32.vlgmr.msra.gmra.mrb[48].mxu1 %vm190_vm1, %v2936_v28  ;;  %v2938_v61 = vadd.f32 %v6498_v2, %v2928_v10 }
0x10b0   :  { %v2937_v56 = vadd.f32 %v6498_v2, %v2927_v32  ;;  %8056 = vmatpush3.bf16.msra.mxu1 %v8053_v25 }
0x10b1   :  { %8058 = vmatprep.subr.bf16.mxu1 %v8057_v24 }
0x10b2   :  { %7484 = vmatprep.mubr.msk.f32.mxu1 %vm190_vm1, %v2937_v56  ;;  %v6504_v56 = vld [vmem:[%s10041_s19] ss:$0 sm:$0xff] }
0x10b3   :  { %7485 = vmatmul.mubr.msk.f32.gmra.mrb[50].mxu1 %vm190_vm1, %v2938_v61 }
0x10b4   :  { %8060 = vmatpush3.bf16.msra.mxu1 %v8057_v24 }
0x10b5   :  { %8062 = vmatprep.subr.bf16.mxu1 %v8061_v43 }
0x10b8   :  { %8064 = vmatpush3.bf16.msra.mxu1 %v8061_v43 }
0x10b9   :  { %8066 = vmatprep.subr.bf16.mxu1 %v8065_v11 }
0x10bc   :  { %8068 = vmatpush3.bf16.msra.mxu1 %v8065_v11 }
0x1182   :  { %v7483_v12 = vpop.f32.mrb[48].mxu1 }
0x1183   :  { %v3034_v44 = vadd.f32 %v7483_v12, %v6499_v45  ;;  %v3028_v27 = vpop.f32.mrb[49].mxu1 }
0x1184   :  { %v3029_v29 = vadd.f32 %v6499_v45, %v3028_v27 }
0x1185   :  { %v3052_v31 = vmul.f32 0.044715, %v3034_v44  ;;  %v3048_v2 = vmul.f32 0.5, %v3034_v44 }
0x1186   :  { %v3051_v34 = vmul.f32 0.044715, %v3029_v29  ;;  %v7486_v35 = vpop.f32.mrb[50].mxu1  ;;  %v3047_v53 = vmul.f32 0.5, %v3029_v29 }
0x1187   :  { %v3056_v20 = vmul.f32 %v3052_v31, %v3034_v44  ;;  %v3044_v36 = vadd.f32 %v7486_v35, %v6499_v45  ;;  %v3038_v21 = vpop.f32.mrb[51].mxu1 }
0x1188   :  { %v3055_v22 = vmul.f32 %v3051_v34, %v3029_v29  ;;  %v3039_v38 = vadd.f32 %v6499_v45, %v3038_v21 }
0x1189   :  { %v3060_v33 = vmul.f32 %v3056_v20, %v3034_v44  ;;  %v3054_v40 = vmul.f32 0.044715, %v3044_v36  ;;  %v3050_v28 = vmul.f32 0.5, %v3044_v36 }
0x118a   :  { %v3059_v41 = vmul.f32 %v3055_v22, %v3029_v29  ;;  %v3053_v47 = vmul.f32 0.044715, %v3039_v38  ;;  %v3049_v7 = vmul.f32 0.5, %v3039_v38 }
0x118b   :  { %v3064_v50 = vadd.f32 %v3060_v33, %v3034_v44  ;;  %v3058_v16 = vmul.f32 %v3054_v40, %v3044_v36 }
0x118c   :  { %v3063_v37 = vadd.f32 %v3059_v41, %v3029_v29  ;;  %v3057_v51 = vmul.f32 %v3053_v47, %v3039_v38 }
0x118d   :  { %v3068_v52 = vmul.f32 0.7978846, %v3064_v50  ;;  %v3062_v54 = vmul.f32 %v3058_v16, %v3044_v36 }
0x118e   :  { %v3061_v57 = vmul.f32 %v3057_v51, %v3039_v38  ;;  %v3067_v30 = vmul.f32 0.7978846, %v3063_v37  ;;  %v6513_v37 = vld [vmem:[%s10062_s4 + $0x80] sm:$0xff]  ;;  %v6514_v51 = vld [vmem:[%s10062_s4 + $0x88] sm:$0xff] }
0x118f   :  { %8376 = vtanh.f32 %v3068_v52  ;;  %v3066_v39 = vadd.f32 %v3062_v54, %v3044_v36  ;;  %v6533_v52 = vld [vmem:[%s10032_s10 + $0x80] sm:$0xff]  ;;  %v8069_v54 = vpack.c.bf16 %v6514_v51, %v6513_v37 }
0x1190   :  { %v3065_v58 = vadd.f32 %v3061_v57, %v3039_v38  ;;  %8378 = vtanh.f32 %v3067_v30  ;;  %v6534_v57 = vld [vmem:[%s10032_s10 + $0x88] sm:$0xff] }
0x1191   :  { %v3070_v59 = vmul.f32 0.7978846, %v3066_v39  ;;  %v8085_v30 = vpack.c.bf16 %v6534_v57, %v6533_v52  ;;  %8070 = vmatprep.subr.bf16.mxu0 %v8069_v54  ;;  %v6515_v39 = vld [vmem:[%s10062_s4 + $0x90] sm:$0xff] }
0x1192   :  { %v3069_v46 = vmul.f32 0.7978846, %v3065_v58  ;;  %8072 = vmatpush3.bf16.msra.mxu0 %v8069_v54  ;;  %v6516_v58 = vld [vmem:[%s10062_s4 + $0x98] sm:$0xff] }
0x1193   :  { %8380 = vtanh.f32 %v3070_v59  ;;  %8086 = vmatprep.subr.bf16.mxu1 %v8085_v30  ;;  %v6535_v59 = vld [vmem:[%s10032_s10 + $0x90] sm:$0xff] }
0x1194   :  { %8382 = vtanh.f32 %v3069_v46  ;;  %v8073_v46 = vpack.c.bf16 %v6516_v58, %v6515_v39 }
0x1196   :  { %8074 = vmatprep.subr.bf16.mxu0 %v8073_v46 }
0x1197   :  { %8076 = vmatpush3.bf16.msra.mxu0 %v8073_v46 }
0x1199   :  { %v8377_v49 = vpop.eup %8376 }
0x119a   :  { %v8379_v62 = vpop.eup %8378  ;;  %v3076_v0 = vadd.f32 1.0, %v8377_v49  ;;  %v6536_v49 = vld [vmem:[%s10032_s10 + $0x98] sm:$0xff] }
0x119b   :  { %v3075_v55 = vadd.f32 1.0, %v8379_v62  ;;  %v8089_v62 = vpack.c.bf16 %v6536_v49, %v6535_v59 }
0x119c   :  { %v3080_v13 = vmul.f32 %v3076_v0, %v3048_v2  ;;  %v6523_v0 = vld [vmem:[%s10030_s8 + $0x80] sm:$0xff] }
0x119d   :  { %v8381_v3 = vpop.eup %8380  ;;  %v3079_v4 = vmul.f32 %v3075_v55, %v3047_v53  ;;  %v6524_v53 = vld [vmem:[%s10030_s8 + $0x88] sm:$0xff] }
0x119e   :  { %v8383_v5 = vpop.eup %8382  ;;  %v3078_v6 = vadd.f32 1.0, %v8381_v3  ;;  %v8077_v55 = vpack.c.bf16 %v6524_v53, %v6523_v0 }
0x119f   :  { %7503 = vmatprep.mubr.msk.f32.mxu1 %vm3098_vm4, %v3079_v4  ;;  %v3077_v23 = vadd.f32 1.0, %v8383_v5 }
0x11a0   :  { %7504 = vmatmul.mubr.msk.f32.vlgmr.msra.gmra.mrb[52].mxu1 %vm3098_vm4, %v3080_v13  ;;  %v3082_v32 = vmul.f32 %v3078_v6, %v3050_v28  ;;  %8078 = vmatprep.subr.bf16.mxu0 %v8077_v55 }
0x11a1   :  { %v3081_v10 = vmul.f32 %v3077_v23, %v3049_v7  ;;  %8088 = vmatpush3.bf16.msra.mxu1 %v8085_v30  ;;  %v6528_v30 = vld [vmem:[%s10031_s9 + $0x4] ss:$0 sm:$0xff] }
0x11a2   :  { %8090 = vmatprep.subr.bf16.mxu1 %v8089_v62 }
0x11a3   :  { %7506 = vmatprep.mubr.msk.f32.mxu1 %vm3098_vm4, %v3081_v10 }
0x11a4   :  { %7507 = vmatmul.mubr.msk.f32.gmra.mrb[54].mxu1 %vm3098_vm4, %v3082_v32 }
0x11a5   :  { %8092 = vmatpush3.bf16.msra.mxu1 %v8089_v62 }
0x1273   :  { %v7505_v61 = vpop.f32.mrb[52].mxu1 }
0x1274   :  { %v3183_v19 = vadd.f32 %v7505_v61, %v6504_v56  ;;  %v3177_v15 = vpop.f32.mrb[53].mxu1 }
0x1275   :  { %v3178_v25 = vadd.f32 %v6504_v56, %v3177_v15 }
0x1276   :  { %v9322_v18 = vadd.f32 %v3183_v19, %v9239_v8  ;;  %v6511_v19 = vld [vmem:[%s10063_s28 + $0x1] ss:$0 sm:$0xff] }
0x1277   :  { %v9325_v26 = vadd.f32 %v3178_v25, %v9241_v9  ;;  %v7508_v24 = vpop.f32.mrb[54].mxu1 }
0x1278   :  { %v3193_v42 = vadd.f32 %v7508_v24, %v6504_v56  ;;  %v3187_v60 = vpop.f32.mrb[55].mxu1  ;;  %v3207_v43 = vsel %vm190_vm1, %v9322_v18, 0.0 }
0x1279   :  { %v3188_v1 = vadd.f32 %v6504_v56, %v3187_v60  ;;  %3208 = vadd.xlane.f32.xlu1 %v3207_v43  ;;  %v3204_v63 = vsel %vm190_vm1, %v9325_v26, 0.0 }
0x127a   :  { %v9332_v11 = vadd.f32 %v3193_v42, %v9249_v14  ;;  %3205 = vadd.xlane.f32.xlu0 %v3204_v63  ;;  %v6512_v42 = vld [vmem:[%s10064_s0 + $0x1] ss:$0 sm:$0xff]  ;;  %v6525_v63 = vld [vmem:[%s10030_s8 + $0x90] sm:$0xff] }
0x127b   :  { %v9335_v8 = vadd.f32 %v3188_v1, %v9251_v17 }
0x127c   :  { %v3213_v9 = vsel %vm190_vm1, %v9332_v11, 0.0 }
0x127d   :  { %3214 = vadd.xlane.f32.xlu1 %v3213_v9  ;;  %v3210_v45 = vsel %vm190_vm1, %v9335_v8, 0.0  ;;  %v6526_v9 = vld [vmem:[%s10030_s8 + $0x98] sm:$0xff] }
0x127e   :  { %3211 = vadd.xlane.f32.xlu0 %v3210_v45 }
0x1306   :  { %v3209_v12 = vpop.xlane.xlu1 %3208 }
0x1307   :  { %v3217_v44 = vmul.f32 0.03125, %v3209_v12  ;;  %v3206_v27 = vpop.xlane.xlu0 %3205 }
0x1308   :  { %v3216_v29 = vmul.f32 0.03125, %v3206_v27 }
0x1309   :  { %v9342_v31 = vsub.f32 %v9322_v18, %v3217_v44 }
0x130a   :  { %v9345_v14 = vsub.f32 %v9325_v26, %v3216_v29  ;;  %v3215_v17 = vpop.xlane.xlu1 %3214 }
0x130b   :  { %v3219_v34 = vmul.f32 0.03125, %v3215_v17  ;;  %v3212_v35 = vpop.xlane.xlu0 %3211  ;;  %v3225_v20 = vmul.f32 %v9342_v31, %v9342_v31 }
0x130c   :  { %v3218_v36 = vmul.f32 0.03125, %v3212_v35  ;;  %v3224_v21 = vmul.f32 %v9345_v14, %v9345_v14 }
0x130d   :  { %v9352_v22 = vsub.f32 %v9332_v11, %v3219_v34  ;;  %v3231_v38 = vsel %vm190_vm1, %v3225_v20, 0.0  ;;  %v6538_v20 = vld [vmem:[%s10033_s11 + $0x4] ss:$0 sm:$0xff] }
0x130e   :  { %v9356_v33 = vsub.f32 %v9335_v8, %v3218_v36  ;;  %3232 = vadd.xlane.f32.xlu1 %v3231_v38  ;;  %v3228_v40 = vsel %vm190_vm1, %v3224_v21, 0.0  ;;  %v6518_v36 = vld [vmem:[%s10029_s7 + $0x4] ss:$0 sm:$0xff] }
0x130f   :  { %3229 = vadd.xlane.f32.xlu0 %v3228_v40  ;;  %v3227_v41 = vmul.f32 %v9352_v22, %v9352_v22 }
0x1310   :  { %v3226_v47 = vmul.f32 %v9356_v33, %v9356_v33 }
0x1311   :  { %v3237_v50 = vsel %vm190_vm1, %v3227_v41, 0.0 }
0x1312   :  { %3238 = vadd.xlane.f32.xlu1 %v3237_v50  ;;  %v3234_v16 = vsel %vm190_vm1, %v3226_v47, 0.0 }
0x1313   :  { %3235 = vadd.xlane.f32.xlu0 %v3234_v16 }
0x139b   :  { %v3233_v2 = vpop.xlane.xlu1 %3232 }
0x139c   :  { %v3241_v3 = vmul.f32 0.03125, %v3233_v2  ;;  %v3230_v4 = vpop.xlane.xlu0 %3229 }
0x139d   :  { %v3240_v5 = vmul.f32 0.03125, %v3230_v4  ;;  %v6566_v4 = vld [vmem:[%s10030_s8 + $0xa0] sm:$0xff] }
0x139e   :  { %v3245_v13 = vadd.f32 1e-06, %v3241_v3 }
0x139f   :  { %v3244_v6 = vadd.f32 1e-06, %v3240_v5  ;;  %v3239_v7 = vpop.xlane.xlu1 %3238  ;;  %v6567_v5 = vld [vmem:[%s10030_s8 + $0xa8] sm:$0xff] }
0x13a0   :  { %8384 = vrsqrt.f32 %v3245_v13  ;;  %v3243_v23 = vmul.f32 0.03125, %v3239_v7  ;;  %v3236_v28 = vpop.xlane.xlu0 %3235  ;;  %v8121_v13 = vpack.c.bf16 %v6567_v5, %v6566_v4  ;;  %v6569_v7 = vld [vmem:[%s10030_s8 + $0xb8] sm:$0xff]  ;;  %v6556_v5 = vld [vmem:[%s10062_s4 + $0xa0] sm:$0xff] }
0x13a1   :  { %8386 = vrsqrt.f32 %v3244_v6  ;;  %v3242_v10 = vmul.f32 0.03125, %v3236_v28  ;;  %v6568_v6 = vld [vmem:[%s10030_s8 + $0xb0] sm:$0xff] }
0x13a2   :  { %v3247_v32 = vadd.f32 1e-06, %v3243_v23  ;;  %v8125_v28 = vpack.c.bf16 %v6569_v7, %v6568_v6 }
0x13a3   :  { %v3246_v56 = vadd.f32 1e-06, %v3242_v10 }
0x13a4   :  { %8388 = vrsqrt.f32 %v3247_v32 }
0x13a5   :  { %8390 = vrsqrt.f32 %v3246_v56 }
0x13aa   :  { %v8385_v61 = vpop.eup %8384 }
0x13ab   :  { %v8387_v15 = vpop.eup %8386  ;;  %v3253_v25 = vmul.f32 %v8385_v61, %v9342_v31  ;;  %v9487_v61 = vld [vmem:[%s10067_s6 + $0x8] sm:$0xff] }
0x13ac   :  { %v3252_v24 = vmul.f32 %v8387_v15, %v9345_v14  ;;  %v8081_v14 = vpack.c.bf16 %v6526_v9, %v6525_v63 }
0x13ad   :  { %v3263_v60 = vmul.f32 %v6511_v19, %v3253_v25  ;;  %v9493_v25 = vld [vmem:[%s10067_s6] sm:$0xff] }
0x13ae   :  { %v8389_v43 = vpop.eup %8388  ;;  %v3262_v1 = vmul.f32 %v6511_v19, %v3252_v24 }
0x13af   :  { %v8391_v45 = vpop.eup %8390  ;;  %v3255_v12 = vmul.f32 %v8389_v43, %v9352_v22  ;;  %v9413_v29 = vadd.f32 %v6512_v42, %v3263_v60 }
0x13b0   :  { %v9410_v44 = vadd.f32 %v6512_v42, %v3262_v1  ;;  %v3254_v27 = vmul.f32 %v8391_v45, %v9356_v33  ;;  %v9501_v1 = vld [vmem:[%s10067_s6 + $0x18] sm:$0xff]  ;;  %v9507_v45 = vld [vmem:[%s10067_s6 + $0x10] sm:$0xff] }
0x13b1   :  { %v3265_v31 = vmul.f32 %v6511_v19, %v3255_v12 }
0x13b2   :  { %v3264_v17 = vmul.f32 %v6511_v19, %v3254_v27  ;;  %7517 = vmatprep.mubr.msk.f32.mxu0 %vm190_vm1, %v9410_v44  ;;  %7545 = vmatprep.mubr.msk.f32.mxu1 %vm190_vm1, %v9410_v44  ;;  %v6571_v27 = vld [vmem:[%s10031_s9 + $0x5] ss:$0 sm:$0xff] }
0x13b3   :  { %7518 = vmatmul.mubr.msk.f32.vlgmr.msra.gmra.mrb[40].mxu0 %vm190_vm1, %v9413_v29  ;;  %7546 = vmatmul.mubr.msk.f32.vlgmr.msra.gmra.mrb[56].mxu1 %vm190_vm1, %v9413_v29  ;;  %v9425_v35 = vadd.f32 %v6512_v42, %v3265_v31 }
0x13b4   :  { %v9423_v34 = vadd.f32 %v6512_v42, %v3264_v17  ;;  %8080 = vmatpush3.bf16.msra.mxu0 %v8077_v55 }
0x13b5   :  { %8082 = vmatprep.subr.bf16.mxu0 %v8081_v14 }
0x13b6   :  { %7520 = vmatprep.mubr.msk.f32.mxu0 %vm190_vm1, %v9423_v34  ;;  %7548 = vmatprep.mubr.msk.f32.mxu1 %vm190_vm1, %v9423_v34 }
0x13b7   :  { %7521 = vmatmul.mubr.msk.f32.gmra.mrb[42].mxu0 %vm190_vm1, %v9425_v35  ;;  %7549 = vmatmul.mubr.msk.f32.gmra.mrb[58].mxu1 %vm190_vm1, %v9425_v35 }
0x13b8   :  { %8084 = vmatpush3.bf16.msra.mxu0 %v8081_v14  ;;  %7531 = vmatprep.mubr.msk.f32.mxu0 %vm190_vm1, %v9410_v44 }
0x13bb   :  { %7532 = vmatmul.mubr.msk.f32.vlgmr.msra.gmra.mrb[44].mxu0 %vm190_vm1, %v9413_v29 }
0x13bc   :  { %7534 = vmatprep.mubr.msk.f32.mxu0 %vm190_vm1, %v9423_v34 }
0x13bf   :  { %7535 = vmatmul.mubr.msk.f32.gmra.mrb[46].mxu0 %vm190_vm1, %v9425_v35 }
0x1486   :  { %v7519_v21 = vpop.f32.mrb[40].mxu0  ;;  %v7547_v22 = vpop.f32.mrb[56].mxu1 }
0x1487   :  { %v3569_v38 = vadd.f32 %v7547_v22, %v6538_v20  ;;  %v3367_v33 = vpop.f32.mrb[41].mxu0  ;;  %v3563_v40 = vpop.f32.mrb[57].mxu1  ;;  %v3373_v23 = vadd.f32 %v7519_v21, %v6518_v36 }
0x1488   :  { %v3368_v41 = vadd.f32 %v6518_v36, %v3367_v33  ;;  %v3564_v47 = vadd.f32 %v6538_v20, %v3563_v40 }
0x148a   :  { %v8105_v50 = vpack.c.bf16 %v3569_v38, %v3564_v47  ;;  %v7522_v16 = vpop.f32.mrb[42].mxu0  ;;  %v7550_v37 = vpop.f32.mrb[58].mxu1  ;;  %7559 = vmatprep.mubr.msk.f32.mxu0 %vm564_vm2, %v3368_v41 }
0x148b   :  { %v3579_v51 = vadd.f32 %v7550_v37, %v6538_v20  ;;  %v3377_v52 = vpop.f32.mrb[43].mxu0  ;;  %v3573_v54 = vpop.f32.mrb[59].mxu1  ;;  %v3383_v32 = vadd.f32 %v7522_v16, %v6518_v36 }
0x148c   :  { %v3574_v57 = vadd.f32 %v6538_v20, %v3573_v54  ;;  %8106 = vmatprep.subr.bf16.mxu1 %v8105_v50  ;;  %v3378_v10 = vadd.f32 %v6518_v36, %v3377_v52 }
0x148d   :  { %8108 = vmatpush3.bf16.msra.mxu1 %v8105_v50 }
0x148e   :  { %v8109_v39 = vpack.c.bf16 %v3579_v51, %v3574_v57  ;;  %v7533_v58 = vpop.f32.mrb[44].mxu0 }
0x148f   :  { %v3471_v59 = vadd.f32 %v7533_v58, %v6528_v30  ;;  %v3465_v46 = vpop.f32.mrb[45].mxu0 }
0x1490   :  { %v3466_v49 = vadd.f32 %v6528_v30, %v3465_v46  ;;  %8110 = vmatprep.subr.bf16.mxu1 %v8109_v39 }
0x1491   :  { %8112 = vmatpush3.bf16.msra.mxu1 %v8109_v39 }
0x1492   :  { %v8093_v62 = vpack.c.bf16 %v3471_v59, %v3466_v49  ;;  %v7536_v0 = vpop.f32.mrb[46].mxu0 }
0x1493   :  { %v3481_v53 = vadd.f32 %v7536_v0, %v6528_v30  ;;  %v3475_v55 = vpop.f32.mrb[47].mxu0 }
0x1494   :  { %v3476_v2 = vadd.f32 %v6528_v30, %v3475_v55  ;;  %8095 = vmatprep.subr.msk.bf16.mxu0 %vm8779_vm3, %v8093_v62 }
0x1495   :  { %8098 = vmatpush3.bf16.xpose.msk.msra.mxu0 %vm8779_vm3, %v8093_v62 }
0x1496   :  { %v8099_v3 = vpack.c.bf16 %v3481_v53, %v3476_v2 }
0x1498   :  { %8101 = vmatprep.subr.msk.bf16.mxu0 %vm8779_vm3, %v8099_v3 }
0x149d   :  { %8104 = vmatpush3.bf16.xpose.msk.msra.mxu0 %vm8779_vm3, %v8099_v3 }
0x149e   :  { %8122 = vmatprep.subr.bf16.mxu0 %v8121_v13 }
0x14a4   :  { %7560 = vmatmul.mubr.msk.f32.vlgmr.msra.gmra.mrb[48].mxu0 %vm564_vm2, %v3373_v23 }
0x14a5   :  { %7562 = vmatprep.mubr.msk.f32.mxu0 %vm564_vm2, %v3378_v10  ;;  %8124 = vmatpush3.bf16.msra.mxu0 %v8121_v13  ;;  %v6557_v13 = vld [vmem:[%s10062_s4 + $0xa8] sm:$0xff] }
0x14a6   :  { %8126 = vmatprep.subr.bf16.mxu0 %v8125_v28  ;;  %v8113_v6 = vpack.c.bf16 %v6557_v13, %v6556_v5  ;;  %v6620_v5 = vld [vmem:[%s10030_s8 + $0xd8] sm:$0xff] }
0x14a8   :  { %7563 = vmatmul.mubr.msk.f32.gmra.mrb[50].mxu0 %vm564_vm2, %v3383_v32  ;;  %8114 = vmatprep.subr.bf16.mxu1 %v8113_v6 }
0x14a9   :  { %8128 = vmatpush3.bf16.msra.mxu0 %v8125_v28  ;;  %7601 = vmatprep.mubr.msk.f32.mxu0 %vm190_vm1, %v9410_v44 }
0x14ac   :  { %7602 = vmatmul.mubr.msk.f32.vlgmr.msra.gmra.mrb[52].mxu0 %vm190_vm1, %v9413_v29 }
0x14ad   :  { %7604 = vmatprep.mubr.msk.f32.mxu0 %vm190_vm1, %v9423_v34 }
0x14b0   :  { %7605 = vmatmul.mubr.msk.f32.gmra.mrb[54].mxu0 %vm190_vm1, %v9425_v35 }
0x1577   :  { %v7561_v56 = vpop.f32.mrb[48].mxu0 }
0x1578   :  { %v3678_v19 = vadd.f32 %v9487_v61, %v7561_v56  ;;  %v3672_v15 = vpop.f32.mrb[49].mxu0  ;;  %v6558_v56 = vld [vmem:[%s10062_s4 + $0xb0] sm:$0xff] }
0x1579   :  { %v3673_v24 = vadd.f32 %v9493_v25, %v3672_v15 }
0x157a   :  { %v3694_v42 = vsel %vm190_vm1, %v3678_v19, -inf }
0x157b   :  { %3695 = vmax.xlane.f32.xlu1 %v3694_v42  ;;  %v7564_v60 = vpop.f32.mrb[50].mxu0  ;;  %v3691_v43 = vsel %vm190_vm1, %v3673_v24, -inf }
0x157c   :  { %v3688_v63 = vadd.f32 %v9501_v1, %v7564_v60  ;;  %3692 = vmax.xlane.f32.xlu0 %v3691_v43  ;;  %v3682_v9 = vpop.f32.mrb[51].mxu0 }
0x157d   :  { %v3683_v12 = vadd.f32 %v9507_v45, %v3682_v9  ;;  %v6577_v9 = vld [vmem:[%s10032_s10 + $0xa8] sm:$0xff] }
0x157e   :  { %v3700_v31 = vsel %vm190_vm1, %v3688_v63, -inf }
0x157f   :  { %3701 = vmax.xlane.f32.xlu1 %v3700_v31  ;;  %v7603_v14 = vpop.f32.mrb[52].mxu0  ;;  %v3697_v17 = vsel %vm190_vm1, %v3683_v12, -inf }
0x1580   :  { %v4017_v20 = vadd.f32 %v7603_v14, %v6571_v27  ;;  %v4011_v36 = vpop.f32.mrb[53].mxu0  ;;  %3698 = vmax.xlane.f32.xlu0 %v3697_v17  ;;  %v6578_v17 = vld [vmem:[%s10032_s10 + $0xb0] sm:$0xff] }
0x1581   :  { %v4012_v21 = vadd.f32 %v6571_v27, %v4011_v36 }
0x1583   :  { %v8137_v22 = vpack.c.bf16 %v4017_v20, %v4012_v21  ;;  %v7606_v38 = vpop.f32.mrb[54].mxu0  ;;  %v6579_v20 = vld [vmem:[%s10032_s10 + $0xb8] sm:$0xff]  ;;  %v6607_v21 = vld [vmem:[%s10062_s4 + $0xc0] sm:$0xff] }
0x1584   :  { %v4027_v33 = vadd.f32 %v7606_v38, %v6571_v27  ;;  %v4021_v40 = vpop.f32.mrb[55].mxu0  ;;  %v8133_v36 = vpack.c.bf16 %v6579_v20, %v6578_v17 }
0x1585   :  { %v4022_v41 = vadd.f32 %v6571_v27, %v4021_v40  ;;  %8139 = vmatprep.subr.msk.bf16.mxu0 %vm8779_vm3, %v8137_v22 }
0x1586   :  { %8142 = vmatpush3.bf16.xpose.msk.msra.mxu0 %vm8779_vm3, %v8137_v22  ;;  %v6608_v22 = vld [vmem:[%s10062_s4 + $0xc8] sm:$0xff] }
0x1587   :  { %v8143_v47 = vpack.c.bf16 %v4027_v33, %v4022_v41  ;;  %v8157_v38 = vpack.c.bf16 %v6608_v22, %v6607_v21 }
0x1589   :  { %8145 = vmatprep.subr.msk.bf16.mxu0 %vm8779_vm3, %v8143_v47 }
0x158e   :  { %8148 = vmatpush3.bf16.xpose.msk.msra.mxu0 %vm8779_vm3, %v8143_v47 }
0x158f   :  { %8158 = vmatprep.subr.bf16.mxu0 %v8157_v38 }
0x1608   :  { %v3696_v50 = vpop.xlane.xlu1 %3695 }
0x1609   :  { %v3704_v16 = vsub.f32 %v3678_v19, %v3696_v50  ;;  %v3693_v37 = vpop.xlane.xlu0 %3692  ;;  %v6559_v19 = vld [vmem:[%s10062_s4 + $0xb8] sm:$0xff]  ;;  %v6561_v50 = vld [vmem:[%s10029_s7 + $0x5] ss:$0 sm:$0xff] }
0x160a   :  { %v3703_v51 = vsub.f32 %v3673_v24, %v3693_v37  ;;  %v8117_v60 = vpack.c.bf16 %v6559_v19, %v6558_v56  ;;  %v6609_v37 = vld [vmem:[%s10062_s4 + $0xd0] sm:$0xff] }
0x160b   :  { %v3709_v52 = vmul.f32 1.442695, %v3704_v16 }
0x160c   :  { %v3707_v54 = vmul.f32 1.442695, %v3703_v51  ;;  %v3702_v57 = vpop.xlane.xlu1 %3701  ;;  %v6610_v51 = vld [vmem:[%s10062_s4 + $0xd8] sm:$0xff] }
0x160d   :  { %8392 = vpow2.f32 %v3709_v52  ;;  %v3706_v30 = vsub.f32 %v3688_v63, %v3702_v57  ;;  %v3699_v39 = vpop.xlane.xlu0 %3698  ;;  %v6576_v63 = vld [vmem:[%s10032_s10 + $0xa0] sm:$0xff] }
0x160e   :  { %8394 = vpow2.f32 %v3707_v54  ;;  %v3705_v58 = vsub.f32 %v3683_v12, %v3699_v39  ;;  %v8129_v14 = vpack.c.bf16 %v6577_v9, %v6576_v63 }
0x160f   :  { %v3713_v59 = vmul.f32 1.442695, %v3706_v30  ;;  %v8161_v30 = vpack.c.bf16 %v6610_v51, %v6609_v37 }
0x1610   :  { %v3711_v46 = vmul.f32 1.442695, %v3705_v58  ;;  %v6617_v58 = vld [vmem:[%s10030_s8 + $0xc0] sm:$0xff] }
0x1611   :  { %8396 = vpow2.f32 %v3713_v59  ;;  %v6618_v59 = vld [vmem:[%s10030_s8 + $0xc8] sm:$0xff] }
0x1612   :  { %8398 = vpow2.f32 %v3711_v46 }
0x1617   :  { %v8393_v49 = vpop.eup %8392 }
0x1618   :  { %v8395_v62 = vpop.eup %8394  ;;  %v3718_v0 = vsel %vm190_vm1, %v8393_v49, 0.0 }
0x1619   :  { %3719 = vadd.xlane.f32.xlu1 %v3718_v0  ;;  %v3715_v53 = vsel %vm190_vm1, %v8395_v62, 0.0 }
0x161a   :  { %3716 = vadd.xlane.f32.xlu0 %v3715_v53  ;;  %v8165_v53 = vpack.c.bf16 %v6618_v59, %v6617_v58 }
0x161b   :  { %v8397_v55 = vpop.eup %8396 }
0x161c   :  { %v8399_v2 = vpop.eup %8398  ;;  %v3724_v3 = vsel %vm190_vm1, %v8397_v55, 0.0 }
0x161d   :  { %3725 = vadd.xlane.f32.xlu1 %v3724_v3  ;;  %v3721_v4 = vsel %vm190_vm1, %v8399_v2, 0.0 }
0x161e   :  { %3722 = vadd.xlane.f32.xlu0 %v3721_v4  ;;  %v6619_v4 = vld [vmem:[%s10030_s8 + $0xd0] sm:$0xff] }
0x16a6   :  { %v3720_v7 = vpop.xlane.xlu1 %3719 }
0x16a7   :  { %8400 = vrcp.f32 %v3720_v7  ;;  %v3717_v23 = vpop.xlane.xlu0 %3716 }
0x16a8   :  { %8402 = vrcp.f32 %v3717_v23  ;;  %v8169_v23 = vpack.c.bf16 %v6620_v5, %v6619_v4  ;;  %v6674_v4 = vld [vmem:[%s10032_s10 + $0xe0] sm:$0xff]  ;;  %v6675_v5 = vld [vmem:[%s10032_s10 + $0xe8] sm:$0xff] }
0x16aa   :  { %v3726_v28 = vpop.xlane.xlu1 %3725 }
0x16ab   :  { %8404 = vrcp.f32 %v3726_v28  ;;  %v3723_v10 = vpop.xlane.xlu0 %3722 }
0x16ac   :  { %8406 = vrcp.f32 %v3723_v10 }
0x16b1   :  { %v8401_v32 = vpop.eup %8400 }
0x16b2   :  { %v8403_v15 = vpop.eup %8402  ;;  %v3732_v42 = vmul.f32 %v8401_v32, %v8393_v49 }
0x16b3   :  { %v3731_v24 = vmul.f32 %v8403_v15, %v8395_v62  ;;  %v6581_v62 = vld [vmem:[%s10033_s11 + $0x5] ss:$0 sm:$0xff] }
0x16b5   :  { %v8405_v43 = vpop.eup %8404  ;;  %7573 = vmatprep.mubr.msk.f32.mxu1 %vm190_vm1, %v3731_v24 }
0x16b6   :  { %v8407_v12 = vpop.eup %8406  ;;  %7574 = vmatmul.mubr.msk.f32.vlgmr.msra.gmra.mrb[60].mxu1 %vm190_vm1, %v3732_v42  ;;  %v3734_v31 = vmul.f32 %v8405_v43, %v8397_v55 }
0x16b7   :  { %8116 = vmatpush3.bf16.msra.mxu1 %v8113_v6  ;;  %v3733_v27 = vmul.f32 %v8407_v12, %v8399_v2 }
0x16b8   :  { %8118 = vmatprep.subr.bf16.mxu1 %v8117_v60 }
0x16b9   :  { %7576 = vmatprep.mubr.msk.f32.mxu1 %vm190_vm1, %v3733_v27 }
0x16ba   :  { %7577 = vmatmul.mubr.msk.f32.gmra.mrb[62].mxu1 %vm190_vm1, %v3734_v31 }
0x16bb   :  { %8120 = vmatpush3.bf16.msra.mxu1 %v8117_v60  ;;  %7587 = vmatprep.mubr.msk.f32.mxu1 %vm190_vm1, %v9410_v44 }
0x16bc   :  { %8130 = vmatprep.subr.bf16.mxu1 %v8129_v14 }
0x16be   :  { %7588 = vmatmul.mubr.msk.f32.vlgmr.msra.gmra.mrb[64].mxu1 %vm190_vm1, %v9413_v29 }
0x16bf   :  { %7590 = vmatprep.mubr.msk.f32.mxu1 %vm190_vm1, %v9423_v34  ;;  %8132 = vmatpush3.bf16.msra.mxu1 %v8129_v14  ;;  %v6612_v14 = vld [vmem:[%s10029_s7 + $0x6] ss:$0 sm:$0xff] }
0x16c0   :  { %8134 = vmatprep.subr.bf16.mxu1 %v8133_v36 }
0x16c2   :  { %7591 = vmatmul.mubr.msk.f32.gmra.mrb[66].mxu1 %vm190_vm1, %v9425_v35 }
0x16c3   :  { %8136 = vmatpush3.bf16.msra.mxu1 %v8133_v36  ;;  %7615 = vmatprep.mubr.msk.f32.mxu1 %vm190_vm1, %v9410_v44 }
0x16c6   :  { %7616 = vmatmul.mubr.msk.f32.vlgmr.msra.gmra.mrb[68].mxu1 %vm190_vm1, %v9413_v29 }
0x16c7   :  { %7618 = vmatprep.mubr.msk.f32.mxu1 %vm190_vm1, %v9423_v34 }
0x16ca   :  { %7619 = vmatmul.mubr.msk.f32.gmra.mrb[70].mxu1 %vm190_vm1, %v9425_v35 }
0x1789   :  { %v9577_v33 = vpop.f32.mrb[60].mxu1 }
0x178a   :  { %v9579_v40 = vpop.f32.mrb[61].mxu1 }
0x178d   :  { %v9581_v41 = vpop.f32.mrb[62].mxu1 }
0x178e   :  { %v9583_v47 = vpop.f32.mrb[63].mxu1 }
0x1791   :  { %v7589_v16 = vpop.f32.mrb[64].mxu1 }
0x1792   :  { %v3913_v52 = vpop.f32.mrb[65].mxu1  ;;  %v3919_v57 = vadd.f32 %v7589_v16, %v6561_v50 }
0x1793   :  { %v3914_v54 = vadd.f32 %v6561_v50, %v3913_v52 }
0x1795   :  { %v7592_v39 = vpop.f32.mrb[66].mxu1  ;;  %7629 = vmatprep.mubr.msk.f32.mxu0 %vm564_vm2, %v3914_v54 }
0x1796   :  { %v3923_v46 = vpop.f32.mrb[67].mxu1  ;;  %7630 = vmatmul.mubr.msk.f32.vlgmr.msra.gmra.mrb[56].mxu0 %vm564_vm2, %v3919_v57  ;;  %v3929_v0 = vadd.f32 %v7592_v39, %v6561_v50 }
0x1797   :  { %v3924_v49 = vadd.f32 %v6561_v50, %v3923_v46  ;;  %8160 = vmatpush3.bf16.msra.mxu0 %v8157_v38  ;;  %v6622_v50 = vld [vmem:[%s10031_s9 + $0x6] ss:$0 sm:$0xff] }
0x1798   :  { %8162 = vmatprep.subr.bf16.mxu0 %v8161_v30  ;;  %v6654_v46 = vld [vmem:[%s10062_s4 + $0xe0] sm:$0xff] }
0x1799   :  { %v7617_v55 = vpop.f32.mrb[68].mxu1  ;;  %7632 = vmatprep.mubr.msk.f32.mxu0 %vm564_vm2, %v3924_v49  ;;  %v6655_v49 = vld [vmem:[%s10062_s4 + $0xe8] sm:$0xff] }
0x179a   :  { %v4115_v2 = vadd.f32 %v7617_v55, %v6581_v62  ;;  %v4109_v3 = vpop.f32.mrb[69].mxu1  ;;  %7633 = vmatmul.mubr.msk.f32.gmra.mrb[58].mxu0 %vm564_vm2, %v3929_v0  ;;  %v6656_v0 = vld [vmem:[%s10062_s4 + $0xf0] sm:$0xff] }
0x179b   :  { %v4110_v13 = vadd.f32 %v6581_v62, %v4109_v3  ;;  %8164 = vmatpush3.bf16.msra.mxu0 %v8161_v30  ;;  %7673 = vmatprep.mubr.msk.f32.mxu0 %vm190_vm1, %v9410_v44 }
0x179c   :  { %8166 = vmatprep.subr.bf16.mxu0 %v8165_v53 }
0x179d   :  { %v8149_v6 = vpack.c.bf16 %v4115_v2, %v4110_v13  ;;  %v7620_v7 = vpop.f32.mrb[70].mxu1 }
0x179e   :  { %v4125_v28 = vadd.f32 %v7620_v7, %v6581_v62  ;;  %v4119_v10 = vpop.f32.mrb[71].mxu1  ;;  %7674 = vmatmul.mubr.msk.f32.vlgmr.msra.gmra.mrb[60].mxu0 %vm190_vm1, %v9413_v29  ;;  %v6676_v7 = vld [vmem:[%s10032_s10 + $0xf0] sm:$0xff] }
0x179f   :  { %v4120_v32 = vadd.f32 %v6581_v62, %v4119_v10  ;;  %8150 = vmatprep.subr.bf16.mxu1 %v8149_v6  ;;  %7676 = vmatprep.mubr.msk.f32.mxu0 %vm190_vm1, %v9423_v34  ;;  %v8201_v62 = vpack.c.bf16 %v6655_v49, %v6654_v46 }
0x17a0   :  { %8168 = vmatpush3.bf16.msra.mxu0 %v8165_v53  ;;  %8152 = vmatpush3.bf16.msra.mxu1 %v8149_v6  ;;  %v6657_v53 = vld [vmem:[%s10062_s4 + $0xf8] sm:$0xff]  ;;  %v8217_v6 = vpack.c.bf16 %v6675_v5, %v6674_v4  ;;  %v6679_v4 = vld [vmem:[%s10033_s11 + $0x7] ss:$0 sm:$0xff] }
0x17a1   :  { %v8153_v56 = vpack.c.bf16 %v4125_v28, %v4120_v32  ;;  %8170 = vmatprep.subr.bf16.mxu0 %v8169_v23  ;;  %v8205_v2 = vpack.c.bf16 %v6657_v53, %v6656_v0 }
0x17a2   :  { %7677 = vmatmul.mubr.msk.f32.gmra.mrb[62].mxu0 %vm190_vm1, %v9425_v35 }
0x17a3   :  { %8154 = vmatprep.subr.bf16.mxu1 %v8153_v56  ;;  %7687 = vmatprep.mubr.msk.f32.mxu0 %vm190_vm1, %v9410_v44 }
0x17a4   :  { %8172 = vmatpush3.bf16.msra.mxu0 %v8169_v23  ;;  %8156 = vmatpush3.bf16.msra.mxu1 %v8153_v56  ;;  %v6677_v23 = vld [vmem:[%s10032_s10 + $0xf8] sm:$0xff] }
0x17a5   :  { %v8221_v28 = vpack.c.bf16 %v6677_v23, %v6676_v7 }
0x17a7   :  { %7688 = vmatmul.mubr.msk.f32.vlgmr.msra.gmra.mrb[64].mxu0 %vm190_vm1, %v9413_v29 }
0x17a8   :  { %7690 = vmatprep.mubr.msk.f32.mxu0 %vm190_vm1, %v9423_v34 }
0x17ab   :  { %7691 = vmatmul.mubr.msk.f32.gmra.mrb[66].mxu0 %vm190_vm1, %v9425_v35 }
0x1869   :  { %v7631_v19 = vpop.f32.mrb[56].mxu0 }
0x186a   :  { %v9630_v15 = vadd.f32 %v9487_v61, %v7631_v19  ;;  %v4218_v24 = vpop.f32.mrb[57].mxu0 }
0x186b   :  { %v9633_v42 = vadd.f32 %v9493_v25, %v4218_v24 }
0x186c   :  { %v4240_v60 = vsel %vm190_vm1, %v9630_v15, -inf }
0x186d   :  { %4241 = vmax.xlane.f32.xlu1 %v4240_v60  ;;  %v7634_v43 = vpop.f32.mrb[58].mxu0  ;;  %v4237_v63 = vsel %vm190_vm1, %v9633_v42, -inf }
0x186e   :  { %v9640_v9 = vadd.f32 %v9501_v1, %v7634_v43  ;;  %v4228_v12 = vpop.f32.mrb[59].mxu0  ;;  %4238 = vmax.xlane.f32.xlu0 %v4237_v63 }
0x186f   :  { %v9643_v27 = vadd.f32 %v9507_v45, %v4228_v12 }
0x1870   :  { %v4246_v31 = vsel %vm190_vm1, %v9640_v9, -inf }
0x1871   :  { %4247 = vmax.xlane.f32.xlu1 %v4246_v31  ;;  %v7675_v17 = vpop.f32.mrb[60].mxu0  ;;  %v4243_v20 = vsel %vm190_vm1, %v9643_v27, -inf }
0x1872   :  { %v4653_v36 = vpop.f32.mrb[61].mxu0  ;;  %4244 = vmax.xlane.f32.xlu0 %v4243_v20  ;;  %v4659_v55 = vadd.f32 %v7675_v17, %v6612_v14 }
0x1873   :  { %v4654_v21 = vadd.f32 %v6612_v14, %v4653_v36 }
0x1875   :  { %v7678_v22 = vpop.f32.mrb[62].mxu0  ;;  %7715 = vmatprep.mubr.msk.f32.mxu0 %vm564_vm2, %v4654_v21 }
0x1876   :  { %v4663_v38 = vpop.f32.mrb[63].mxu0  ;;  %v4669_v13 = vadd.f32 %v7678_v22, %v6612_v14 }
0x1877   :  { %v4664_v3 = vadd.f32 %v6612_v14, %v4663_v38 }
0x187a   :  { %v7689_v16 = vpop.f32.mrb[64].mxu0 }
0x187b   :  { %v4757_v37 = vadd.f32 %v7689_v16, %v6622_v50  ;;  %v4751_v51 = vpop.f32.mrb[65].mxu0 }
0x187c   :  { %v4752_v52 = vadd.f32 %v6622_v50, %v4751_v51 }
0x187e   :  { %v8181_v54 = vpack.c.bf16 %v4757_v37, %v4752_v52  ;;  %v7692_v57 = vpop.f32.mrb[66].mxu0 }
0x187f   :  { %v4767_v30 = vadd.f32 %v7692_v57, %v6622_v50  ;;  %v4761_v39 = vpop.f32.mrb[67].mxu0 }
0x1880   :  { %v4762_v58 = vadd.f32 %v6622_v50, %v4761_v39  ;;  %8183 = vmatprep.subr.msk.bf16.mxu0 %vm8779_vm3, %v8181_v54 }
0x1881   :  { %8186 = vmatpush3.bf16.xpose.msk.msra.mxu0 %vm8779_vm3, %v8181_v54 }
0x1882   :  { %v8187_v59 = vpack.c.bf16 %v4767_v30, %v4762_v58  ;;  %v9740_v58 = vld [vmem:[%s10029_s7 + $0x7] ss:$0 sm:$0xff] }
0x1884   :  { %8189 = vmatprep.subr.msk.bf16.mxu0 %vm8779_vm3, %v8187_v59 }
0x1889   :  { %8192 = vmatpush3.bf16.xpose.msk.msra.mxu0 %vm8779_vm3, %v8187_v59 }
0x188a   :  { %8202 = vmatprep.subr.bf16.mxu0 %v8201_v62 }
0x1890   :  { %7716 = vmatmul.mubr.msk.f32.vlgmr.msra.gmra.mrb[68].mxu0 %vm564_vm2, %v4659_v55 }
0x1891   :  { %7718 = vmatprep.mubr.msk.f32.mxu0 %vm564_vm2, %v4664_v3  ;;  %8204 = vmatpush3.bf16.msra.mxu0 %v8201_v62 }
0x1892   :  { %8206 = vmatprep.subr.bf16.mxu0 %v8205_v2 }
0x1894   :  { %7719 = vmatmul.mubr.msk.f32.gmra.mrb[70].mxu0 %vm564_vm2, %v4669_v13 }
0x1895   :  { %8208 = vmatpush3.bf16.msra.mxu0 %v8205_v2  ;;  %7751 = vmatprep.mubr.msk.f32.mxu0 %vm190_vm1, %v9410_v44 }
0x1896   :  { %8218 = vmatprep.subr.bf16.mxu0 %v8217_v6 }
0x1898   :  { %7752 = vmatmul.mubr.msk.f32.vlgmr.msra.gmra.mrb[72].mxu0 %vm190_vm1, %v9413_v29 }
0x1899   :  { %7754 = vmatprep.mubr.msk.f32.mxu0 %vm190_vm1, %v9423_v34  ;;  %8220 = vmatpush3.bf16.msra.mxu0 %v8217_v6 }
0x189a   :  { %8222 = vmatprep.subr.bf16.mxu0 %v8221_v28 }
0x189c   :  { %7755 = vmatmul.mubr.msk.f32.gmra.mrb[74].mxu0 %vm190_vm1, %v9425_v35 }
0x189d   :  { %8224 = vmatpush3.bf16.msra.mxu0 %v8221_v28  ;;  %7779 = vmatprep.mubr.msk.f32.mxu0 %vm190_vm1, %v9410_v44 }
0x18a0   :  { %7780 = vmatmul.mubr.msk.f32.vlgmr.msra.gmra.mrb[76].mxu0 %vm190_vm1, %v9413_v29 }
0x18a1   :  { %7782 = vmatprep.mubr.msk.f32.mxu0 %vm190_vm1, %v9423_v34 }
0x18a4   :  { %7783 = vmatmul.mubr.msk.f32.gmra.mrb[78].mxu0 %vm190_vm1, %v9425_v35 }
0x18fa   :  { %v4242_v10 = vpop.xlane.xlu1 %4241 }
0x18fb   :  { %v4250_v32 = vsub.f32 %v9630_v15, %v4242_v10  ;;  %v4239_v56 = vpop.xlane.xlu0 %4238 }
0x18fc   :  { %v4249_v19 = vsub.f32 %v9633_v42, %v4239_v56 }
0x18fd   :  { %v4255_v24 = vmul.f32 1.442695, %v4250_v32 }
0x18fe   :  { %v4253_v60 = vmul.f32 1.442695, %v4249_v19  ;;  %v4248_v43 = vpop.xlane.xlu1 %4247 }
0x18ff   :  { %8408 = vpow2.f32 %v4255_v24  ;;  %v4252_v63 = vsub.f32 %v9640_v9, %v4248_v43  ;;  %v4245_v12 = vpop.xlane.xlu0 %4244  ;;  %v6598_v24 = vld [vmem:[%s10034_s12 + $0x28] sm:$0xff] }
0x1900   :  { %8410 = vpow2.f32 %v4253_v60  ;;  %v4251_v31 = vsub.f32 %v9643_v27, %v4245_v12  ;;  %7649 = vmatprep.subr.mxu1 %v6598_v24 }
0x1901   :  { %v4259_v14 = vmul.f32 1.442695, %v4252_v63 }
0x1902   :  { %v4257_v17 = vmul.f32 1.442695, %v4251_v31 }
0x1903   :  { %8412 = vpow2.f32 %v4259_v14 }
0x1904   :  { %8414 = vpow2.f32 %v4257_v17 }
0x1909   :  { %v9711_v20 = vpop.eup %8408 }
0x190a   :  { %v8411_v15 = vpop.eup %8410  ;;  %v4264_v42 = vsel %vm190_vm1, %v9711_v20, 0.0 }
0x190b   :  { %4265 = vadd.xlane.f32.xlu1 %v4264_v42  ;;  %v4261_v36 = vsel %vm190_vm1, %v8411_v15, 0.0 }
0x190c   :  { %4262 = vadd.xlane.f32.xlu0 %v4261_v36 }
0x190d   :  { %v9716_v21 = vpop.eup %8412 }
0x190e   :  { %v8415_v9 = vpop.eup %8414  ;;  %v4270_v27 = vsel %vm190_vm1, %v9716_v21, 0.0 }
0x190f   :  { %4271 = vadd.xlane.f32.xlu1 %v4270_v27  ;;  %v4267_v22 = vsel %vm190_vm1, %v8415_v9, 0.0 }
0x1910   :  { %4268 = vadd.xlane.f32.xlu0 %v4267_v22 }
0x1963   :  { %v7717_v38 = vpop.f32.mrb[68].mxu0 }
0x1964   :  { %v9722_v50 = vadd.f32 %v9487_v61, %v7717_v38  ;;  %v4958_v16 = vpop.f32.mrb[69].mxu0 }
0x1965   :  { %v9725_v37 = vadd.f32 %v9493_v25, %v4958_v16 }
0x1966   :  { %v4980_v51 = vsel %vm190_vm1, %v9722_v50, -inf }
0x1967   :  { %4981 = vmax.xlane.f32.xlu1 %v4980_v51  ;;  %v7720_v52 = vpop.f32.mrb[70].mxu0  ;;  %v4977_v54 = vsel %vm190_vm1, %v9725_v37, -inf }
0x1968   :  { %v9732_v57 = vadd.f32 %v9501_v1, %v7720_v52  ;;  %v4968_v30 = vpop.f32.mrb[71].mxu0  ;;  %4978 = vmax.xlane.f32.xlu0 %v4977_v54 }
0x1969   :  { %v9735_v39 = vadd.f32 %v9507_v45, %v4968_v30 }
0x196a   :  { %v4986_v59 = vsel %vm190_vm1, %v9732_v57, -inf }
0x196b   :  { %4987 = vmax.xlane.f32.xlu1 %v4986_v59  ;;  %v7753_v46 = vpop.f32.mrb[72].mxu0  ;;  %v4983_v49 = vsel %vm190_vm1, %v9735_v39, -inf }
0x196c   :  { %v9747_v62 = vadd.f32 %v7753_v46, %v9740_v58  ;;  %v9749_v0 = vpop.f32.mrb[73].mxu0  ;;  %4984 = vmax.xlane.f32.xlu0 %v4983_v49 }
0x196f   :  { %v7756_v53 = vpop.f32.mrb[74].mxu0 }
0x1970   :  { %v9752_v55 = vadd.f32 %v7756_v53, %v9740_v58  ;;  %v5310_v2 = vpop.f32.mrb[75].mxu0 }
0x1971   :  { %v9755_v3 = vadd.f32 %v9740_v58, %v5310_v2 }
0x1973   :  { %v7781_v5 = vpop.f32.mrb[76].mxu0 }
0x1974   :  { %v5502_v13 = vadd.f32 %v7781_v5, %v6679_v4  ;;  %v5496_v6 = vpop.f32.mrb[77].mxu0 }
0x1975   :  { %v5497_v7 = vadd.f32 %v6679_v4, %v5496_v6  ;;  %v6627_v6 = vld [vmem:[%s10032_s10 + $0xc0] sm:$0xff] }
0x1977   :  { %v8237_v23 = vpack.c.bf16 %v5502_v13, %v5497_v7  ;;  %v7784_v28 = vpop.f32.mrb[78].mxu0  ;;  %v6628_v7 = vld [vmem:[%s10032_s10 + $0xc8] sm:$0xff] }
0x1978   :  { %v5512_v10 = vadd.f32 %v7784_v28, %v6679_v4  ;;  %v5506_v32 = vpop.f32.mrb[79].mxu0 }
0x1979   :  { %v5507_v56 = vadd.f32 %v6679_v4, %v5506_v32  ;;  %8238 = vmatprep.subr.bf16.mxu0 %v8237_v23 }
0x197a   :  { %8240 = vmatpush3.bf16.msra.mxu0 %v8237_v23 }
0x197b   :  { %v8241_v19 = vpack.c.bf16 %v5512_v10, %v5507_v56  ;;  %v8173_v10 = vpack.c.bf16 %v6628_v7, %v6627_v6 }
0x197d   :  { %8242 = vmatprep.subr.bf16.mxu0 %v8241_v19 }
0x197e   :  { %8244 = vmatpush3.bf16.msra.mxu0 %v8241_v19  ;;  %v6629_v19 = vld [vmem:[%s10032_s10 + $0xd0] sm:$0xff] }
0x1998   :  { %v4266_v60 = vpop.xlane.xlu1 %4265 }
0x1999   :  { %8416 = vrcp.f32 %v4266_v60  ;;  %v4263_v43 = vpop.xlane.xlu0 %4262 }
0x199a   :  { %8418 = vrcp.f32 %v4263_v43 }
0x199c   :  { %v4272_v63 = vpop.xlane.xlu1 %4271 }
0x199d   :  { %8420 = vrcp.f32 %v4272_v63  ;;  %v4269_v12 = vpop.xlane.xlu0 %4268  ;;  %v6632_v63 = vld [vmem:[%s10033_s11 + $0x6] ss:$0 sm:$0xff] }
0x199e   :  { %8422 = vrcp.f32 %v4269_v12 }
0x19a3   :  { %v8417_v31 = vpop.eup %8416 }
0x19a4   :  { %v8419_v14 = vpop.eup %8418  ;;  %v4278_v42 = vmul.f32 %v8417_v31, %v9711_v20 }
0x19a5   :  { %v4277_v17 = vmul.f32 %v8419_v14, %v8411_v15 }
0x19a7   :  { %v8421_v36 = vpop.eup %8420  ;;  %7643 = vmatprep.mubr.msk.f32.mxu1 %vm190_vm1, %v4277_v17 }
0x19a8   :  { %v8423_v27 = vpop.eup %8422  ;;  %7644 = vmatmul.mubr.msk.f32.vlgmr.msra.gmra.mrb[72].mxu1 %vm190_vm1, %v4278_v42  ;;  %v4280_v38 = vmul.f32 %v8421_v36, %v9716_v21 }
0x19a9   :  { %v4279_v22 = vmul.f32 %v8423_v27, %v8415_v9  ;;  %7650 = vmatpush3.msra.mxu1 %v6598_v24  ;;  %v6630_v24 = vld [vmem:[%s10032_s10 + $0xd8] sm:$0xff] }
0x19aa   :  { %v8177_v60 = vpack.c.bf16 %v6630_v24, %v6629_v19 }
0x19ab   :  { %7646 = vmatprep.mubr.msk.f32.mxu1 %vm190_vm1, %v4279_v22 }
0x19ac   :  { %7647 = vmatmul.mubr.msk.f32.gmra.mrb[74].mxu1 %vm190_vm1, %v4280_v38 }
0x19f4   :  { %v4982_v16 = vpop.xlane.xlu1 %4981 }
0x19f5   :  { %v4990_v51 = vsub.f32 %v9722_v50, %v4982_v16  ;;  %v4979_v15 = vpop.xlane.xlu0 %4978  ;;  %v6555_v50 = vld [vmem:[%s10034_s12 + $0x20] sm:$0xff] }
0x19f6   :  { %v4989_v20 = vsub.f32 %v9725_v37, %v4979_v15  ;;  %7657 = vmatprep.subr.mxu1 %v6555_v50 }
0x19f7   :  { %v4995_v52 = vmul.f32 1.442695, %v4990_v51 }
0x19f8   :  { %v4993_v54 = vmul.f32 1.442695, %v4989_v20  ;;  %v4988_v30 = vpop.xlane.xlu1 %4987  ;;  %v6649_v20 = vld [vmem:[%s10034_s12 + $0x30] sm:$0xff] }
0x19f9   :  { %8424 = vpow2.f32 %v4995_v52  ;;  %v4992_v59 = vsub.f32 %v9732_v57, %v4988_v30  ;;  %v4985_v9 = vpop.xlane.xlu0 %4984 }
0x19fa   :  { %8426 = vpow2.f32 %v4993_v54  ;;  %v4991_v21 = vsub.f32 %v9735_v39, %v4985_v9 }
0x19fb   :  { %v4999_v46 = vmul.f32 1.442695, %v4992_v59 }
0x19fc   :  { %v4997_v49 = vmul.f32 1.442695, %v4991_v21  ;;  %v6664_v21 = vld [vmem:[%s10030_s8 + $0xe0] sm:$0xff] }
0x19fd   :  { %8428 = vpow2.f32 %v4999_v46  ;;  %v6665_v46 = vld [vmem:[%s10030_s8 + $0xe8] sm:$0xff] }
0x19fe   :  { %8430 = vpow2.f32 %v4997_v49  ;;  %v8209_v49 = vpack.c.bf16 %v6665_v46, %v6664_v21 }
0x1a03   :  { %v9776_v37 = vpop.eup %8424 }
0x1a04   :  { %v8427_v53 = vpop.eup %8426  ;;  %v5004_v2 = vsel %vm190_vm1, %v9776_v37, 0.0 }
0x1a05   :  { %5005 = vadd.xlane.f32.xlu1 %v5004_v2  ;;  %v5001_v57 = vsel %vm190_vm1, %v8427_v53, 0.0 }
0x1a06   :  { %5002 = vadd.xlane.f32.xlu0 %v5001_v57 }
0x1a07   :  { %v9781_v39 = vpop.eup %8428 }
0x1a08   :  { %v9783_v4 = vpop.eup %8430  ;;  %v5010_v5 = vsel %vm190_vm1, %v9781_v39, 0.0 }
0x1a09   :  { %5011 = vadd.xlane.f32.xlu1 %v5010_v5  ;;  %v5007_v13 = vsel %vm190_vm1, %v9783_v4, 0.0  ;;  %v5301_v5 = vadd.f32 %v9740_v58, %v9749_v0 }
0x1a0a   :  { %5008 = vadd.xlane.f32.xlu0 %v5007_v13  ;;  %v6669_v13 = vld [vmem:[%s10031_s9 + $0x7] ss:$0 sm:$0xff] }
0x1a7b   :  { %v7645_v23 = vpop.f32.mrb[72].mxu1 }
0x1a7c   :  { %v4359_v28 = vpop.f32.mrb[73].mxu1 }
0x1a7d   :  { %7651 = vmatprep.mubr.msk.f32.mxu1 %vm564_vm2, %v4359_v28 }
0x1a7e   :  { %7652 = vmatmul.mubr.msk.f32.vlgmr.msra.gmra.mrb[76].mxu1 %vm564_vm2, %v7645_v23 }
0x1a7f   :  { %v7648_v32 = vpop.f32.mrb[74].mxu1  ;;  %7658 = vmatpush3.msra.mxu1 %v6555_v50  ;;  %v6666_v50 = vld [vmem:[%s10030_s8 + $0xf0] sm:$0xff] }
0x1a80   :  { %v4369_v56 = vpop.f32.mrb[75].mxu1  ;;  %8174 = vmatprep.subr.bf16.mxu1 %v8173_v10 }
0x1a81   :  { %7654 = vmatprep.mubr.msk.f32.mxu1 %vm564_vm2, %v4369_v56 }
0x1a82   :  { %7655 = vmatmul.mubr.msk.f32.gmra.mrb[78].mxu1 %vm564_vm2, %v7648_v32 }
0x1a83   :  { %7659 = vmatprep.mubr.msk.f32.mxu1 %vm564_vm2, %v9579_v40 }
0x1a86   :  { %7660 = vmatmul.mubr.msk.f32.vlgmr.msra.gmra.mrb[76].mxu1 %vm564_vm2, %v9577_v33 }
0x1a87   :  { %7662 = vmatprep.mubr.msk.f32.mxu1 %vm564_vm2, %v9583_v47  ;;  %8176 = vmatpush3.bf16.msra.mxu1 %v8173_v10 }
0x1a88   :  { %8178 = vmatprep.subr.bf16.mxu1 %v8177_v60 }
0x1a8a   :  { %7663 = vmatmul.mubr.msk.f32.gmra.mrb[78].mxu1 %vm564_vm2, %v9581_v41 }
0x1a8b   :  { %8180 = vmatpush3.bf16.msra.mxu1 %v8177_v60  ;;  %7701 = vmatprep.mubr.msk.f32.mxu1 %vm190_vm1, %v9410_v44 }
0x1a8e   :  { %7702 = vmatmul.mubr.msk.f32.vlgmr.msra.gmra.mrb[80].mxu1 %vm190_vm1, %v9413_v29 }
0x1a8f   :  { %7704 = vmatprep.mubr.msk.f32.mxu1 %vm190_vm1, %v9423_v34 }
0x1a92   :  { %7705 = vmatmul.mubr.msk.f32.gmra.mrb[82].mxu1 %vm190_vm1, %v9425_v35  ;;  %v5006_v41 = vpop.xlane.xlu1 %5005 }
0x1a93   :  { %v5003_v33 = vpop.xlane.xlu0 %5002 }
0x1a94   :  { %8432 = vrcp.f32 %v5003_v33 }
0x1a95   :  { %8434 = vrcp.f32 %v5006_v41 }
0x1a96   :  { %v5012_v12 = vpop.xlane.xlu1 %5011 }
0x1a97   :  { %v5009_v43 = vpop.xlane.xlu0 %5008 }
0x1a98   :  { %8436 = vrcp.f32 %v5009_v43 }
0x1a99   :  { %8438 = vrcp.f32 %v5012_v12 }
0x1a9e   :  { %v8433_v40 = vpop.eup %8432 }
0x1a9f   :  { %v5017_v47 = vmul.f32 %v8433_v40, %v8427_v53  ;;  %v8435_v15 = vpop.eup %8434 }
0x1aa0   :  { %v5018_v54 = vmul.f32 %v8435_v15, %v9776_v37  ;;  %v6667_v37 = vld [vmem:[%s10030_s8 + $0xf8] sm:$0xff] }
0x1aa1   :  { %7729 = vmatprep.mubr.msk.f32.mxu1 %vm190_vm1, %v5017_v47  ;;  %v8213_v57 = vpack.c.bf16 %v6667_v37, %v6666_v50 }
0x1aa2   :  { %v8437_v52 = vpop.eup %8436 }
0x1aa3   :  { %v8439_v30 = vpop.eup %8438  ;;  %v5019_v59 = vmul.f32 %v8437_v52, %v9783_v4 }
0x1aa4   :  { %v5020_v9 = vmul.f32 %v8439_v30, %v9781_v39 }
0x1b61   :  { %v7703_v31 = vpop.f32.mrb[80].mxu1 }
0x1b62   :  { %v4855_v14 = vadd.f32 %v7703_v31, %v6632_v63  ;;  %v4849_v17 = vpop.f32.mrb[81].mxu1 }
0x1b63   :  { %v4850_v42 = vadd.f32 %v6632_v63, %v4849_v17 }
0x1b65   :  { %v8193_v36 = vpack.c.bf16 %v4855_v14, %v4850_v42  ;;  %v7706_v27 = vpop.f32.mrb[82].mxu1 }
0x1b66   :  { %v4865_v22 = vadd.f32 %v7706_v27, %v6632_v63  ;;  %v4859_v38 = vpop.f32.mrb[83].mxu1 }
0x1b67   :  { %v4860_v16 = vadd.f32 %v6632_v63, %v4859_v38  ;;  %8194 = vmatprep.subr.bf16.mxu1 %v8193_v36 }
0x1b68   :  { %8196 = vmatpush3.bf16.msra.mxu1 %v8193_v36 }
0x1b69   :  { %v8197_v51 = vpack.c.bf16 %v4865_v22, %v4860_v16 }
0x1b6b   :  { %8198 = vmatprep.subr.bf16.mxu1 %v8197_v51 }
0x1b6c   :  { %8200 = vmatpush3.bf16.msra.mxu1 %v8197_v51 }
0x1b6d   :  { %7735 = vmatprep.subr.mxu1 %v6649_v20 }
0x1b6f   :  { %7730 = vmatmul.mubr.msk.f32.vlgmr.msra.gmra.mrb[84].mxu1 %vm190_vm1, %v5018_v54 }
0x1b70   :  { %7732 = vmatprep.mubr.msk.f32.mxu1 %vm190_vm1, %v5019_v59  ;;  %7736 = vmatpush3.msra.mxu1 %v6649_v20  ;;  %v6696_v20 = vld [vmem:[%s10034_s12 + $0x38] sm:$0xff] }
0x1b71   :  { %8210 = vmatprep.subr.bf16.mxu1 %v8209_v49 }
0x1b73   :  { %7733 = vmatmul.mubr.msk.f32.gmra.mrb[86].mxu1 %vm190_vm1, %v5020_v9 }
0x1c42   :  { %v7731_v53 = vpop.f32.mrb[84].mxu1 }
0x1c43   :  { %v5099_v2 = vpop.f32.mrb[85].mxu1 }
0x1c44   :  { %7737 = vmatprep.mubr.msk.f32.mxu1 %vm564_vm2, %v5099_v2 }
0x1c45   :  { %7738 = vmatmul.mubr.msk.f32.vlgmr.msra.gmra.mrb[76].mxu1 %vm564_vm2, %v7731_v53 }
0x1c46   :  { %v7734_v39 = vpop.f32.mrb[86].mxu1  ;;  %8212 = vmatpush3.bf16.msra.mxu1 %v8209_v49 }
0x1c47   :  { %v5109_v4 = vpop.f32.mrb[87].mxu1  ;;  %8214 = vmatprep.subr.bf16.mxu1 %v8213_v57 }
0x1c48   :  { %7740 = vmatprep.mubr.msk.f32.mxu1 %vm564_vm2, %v5109_v4 }
0x1c49   :  { %7741 = vmatmul.mubr.msk.f32.gmra.mrb[78].mxu1 %vm564_vm2, %v7734_v39 }
0x1c4a   :  { %8216 = vmatpush3.bf16.msra.mxu1 %v8213_v57  ;;  %7765 = vmatprep.mubr.msk.f32.mxu1 %vm190_vm1, %v9410_v44 }
0x1c4d   :  { %7766 = vmatmul.mubr.msk.f32.vlgmr.msra.gmra.mrb[88].mxu1 %vm190_vm1, %v9413_v29 }
0x1c4e   :  { %7768 = vmatprep.mubr.msk.f32.mxu1 %vm190_vm1, %v9423_v34 }
0x1c51   :  { %7769 = vmatmul.mubr.msk.f32.gmra.mrb[90].mxu1 %vm190_vm1, %v9425_v35 }
0x1c52   :  { %7793 = vmatprep.mubr.msk.f32.mxu1 %vm564_vm2, %v5301_v5 }
0x1d20   :  { %v7767_v6 = vpop.f32.mrb[88].mxu1 }
0x1d21   :  { %v5404_v44 = vadd.f32 %v7767_v6, %v6669_v13  ;;  %v5398_v7 = vpop.f32.mrb[89].mxu1  ;;  %v6702_v6 = vld [vmem:[%s10035_s13 + $0x1] ss:$0 sm:$0xff] }
0x1d22   :  { %v5399_v23 = vadd.f32 %v6669_v13, %v5398_v7 }
0x1d24   :  { %v8225_v29 = vpack.c.bf16 %v5404_v44, %v5399_v23  ;;  %v7770_v28 = vpop.f32.mrb[90].mxu1 }
0x1d25   :  { %v5414_v10 = vadd.f32 %v7770_v28, %v6669_v13  ;;  %v5408_v34 = vpop.f32.mrb[91].mxu1 }
0x1d26   :  { %v5409_v32 = vadd.f32 %v6669_v13, %v5408_v34  ;;  %8227 = vmatprep.subr.msk.bf16.mxu1 %vm8779_vm3, %v8225_v29 }
0x1d27   :  { %8230 = vmatpush3.bf16.xpose.msk.msra.mxu1 %vm8779_vm3, %v8225_v29 }
0x1d28   :  { %v8231_v35 = vpack.c.bf16 %v5414_v10, %v5409_v32 }
0x1d2a   :  { %8233 = vmatprep.subr.msk.bf16.mxu1 %vm8779_vm3, %v8231_v35 }
0x1d2f   :  { %8236 = vmatpush3.bf16.xpose.msk.msra.mxu1 %vm8779_vm3, %v8231_v35 }
0x1d30   :  { %7813 = vmatprep.subr.mxu1 %v6696_v20 }
0x1d36   :  { %7794 = vmatmul.mubr.msk.f32.vlgmr.msra.gmra.mrb[92].mxu1 %vm564_vm2, %v9747_v62 }
0x1d37   :  { %7796 = vmatprep.mubr.msk.f32.mxu1 %vm564_vm2, %v9755_v3  ;;  %7814 = vmatpush3.msra.mxu1 %v6696_v20 }
0x1d3a   :  { %7797 = vmatmul.mubr.msk.f32.gmra.mrb[94].mxu1 %vm564_vm2, %v9752_v55 }
0x1e09   :  { %v7795_v58 = vpop.f32.mrb[92].mxu1 }
0x1e0a   :  { %v5611_v0 = vadd.f32 %v9487_v61, %v7795_v58  ;;  %v5605_v56 = vpop.f32.mrb[93].mxu1 }
0x1e0b   :  { %v5606_v19 = vadd.f32 %v9493_v25, %v5605_v56 }
0x1e0c   :  { %v5627_v24 = vsel %vm190_vm1, %v5611_v0, -inf }
0x1e0d   :  { %5628 = vmax.xlane.f32.xlu1 %v5627_v24  ;;  %v7798_v48 = vpop.f32.mrb[94].mxu1  ;;  %v5624_v60 = vsel %vm190_vm1, %v5606_v19, -inf }
0x1e0e   :  { %v5621_v62 = vadd.f32 %v9501_v1, %v7798_v48  ;;  %v5615_v33 = vpop.f32.mrb[95].mxu1  ;;  %5625 = vmax.xlane.f32.xlu0 %v5624_v60 }
0x1e0f   :  { %v5616_v3 = vadd.f32 %v9507_v45, %v5615_v33 }
0x1e10   :  { %v5633_v55 = vsel %vm190_vm1, %v5621_v62, -inf }
0x1e11   :  { %5634 = vmax.xlane.f32.xlu1 %v5633_v55  ;;  %v5630_v61 = vsel %vm190_vm1, %v5616_v3, -inf }
0x1e12   :  { %5631 = vmax.xlane.f32.xlu0 %v5630_v61 }
0x1e9a   :  { %v5629_v40 = vpop.xlane.xlu1 %5628 }
0x1e9b   :  { %v5637_v25 = vsub.f32 %v5611_v0, %v5629_v40  ;;  %v5626_v47 = vpop.xlane.xlu0 %5625 }
0x1e9c   :  { %v5636_v41 = vsub.f32 %v5606_v19, %v5626_v47 }
0x1e9d   :  { %v5642_v43 = vmul.f32 1.442695, %v5637_v25 }
0x1e9e   :  { %v5640_v63 = vmul.f32 1.442695, %v5636_v41  ;;  %v5635_v12 = vpop.xlane.xlu1 %5634 }
0x1e9f   :  { %8440 = vpow2.f32 %v5642_v43  ;;  %v5639_v31 = vsub.f32 %v5621_v62, %v5635_v12  ;;  %v5632_v1 = vpop.xlane.xlu0 %5631 }
0x1ea0   :  { %8442 = vpow2.f32 %v5640_v63  ;;  %v5638_v14 = vsub.f32 %v5616_v3, %v5632_v1 }
0x1ea1   :  { %v5646_v17 = vmul.f32 1.442695, %v5639_v31 }
0x1ea2   :  { %v5644_v45 = vmul.f32 1.442695, %v5638_v14 }
0x1ea3   :  { %8444 = vpow2.f32 %v5646_v17  ;;  %v6707_v17 = vld [vmem:[%s10038_s16 + $0x20] sm:$0xff] }
0x1ea4   :  { %8446 = vpow2.f32 %v5644_v45  ;;  %v6708_v45 = vld [vmem:[%s10038_s16 + $0x28] sm:$0xff] }
0x1ea9   :  { %v8441_v42 = vpop.eup %8440 }
0x1eaa   :  { %v8443_v36 = vpop.eup %8442  ;;  %v5651_v27 = vsel %vm190_vm1, %v8441_v42, 0.0 }
0x1eab   :  { %5652 = vadd.xlane.f32.xlu1 %v5651_v27  ;;  %v5648_v22 = vsel %vm190_vm1, %v8443_v36, 0.0  ;;  %v6710_v27 = vld [vmem:[%s10038_s16 + $0x38] sm:$0xff] }
0x1eac   :  { %5649 = vadd.xlane.f32.xlu0 %v5648_v22 }
0x1ead   :  { %v8445_v38 = vpop.eup %8444 }
0x1eae   :  { %v8447_v16 = vpop.eup %8446  ;;  %v5657_v51 = vsel %vm190_vm1, %v8445_v38, 0.0 }
0x1eaf   :  { %5658 = vadd.xlane.f32.xlu1 %v5657_v51  ;;  %v5654_v15 = vsel %vm190_vm1, %v8447_v16, 0.0 }
0x1eb0   :  { %5655 = vadd.xlane.f32.xlu0 %v5654_v15 }
0x1f38   :  { %v5653_v52 = vpop.xlane.xlu1 %5652 }
0x1f39   :  { %8448 = vrcp.f32 %v5653_v52  ;;  %v5650_v54 = vpop.xlane.xlu0 %5649 }
0x1f3a   :  { %8450 = vrcp.f32 %v5650_v54 }
0x1f3c   :  { %v5659_v30 = vpop.xlane.xlu1 %5658 }
0x1f3d   :  { %8452 = vrcp.f32 %v5659_v30  ;;  %v5656_v59 = vpop.xlane.xlu0 %5655 }
0x1f3e   :  { %8454 = vrcp.f32 %v5656_v59 }
0x1f43   :  { %v8449_v9 = vpop.eup %8448 }
0x1f44   :  { %v8451_v21 = vpop.eup %8450  ;;  %v5665_v49 = vmul.f32 %v8449_v9, %v8441_v42  ;;  %v8245_v42 = vpack.c.bf16 %v6708_v45, %v6707_v17 }
0x1f45   :  { %v5664_v46 = vmul.f32 %v8451_v21, %v8443_v36  ;;  %v6709_v36 = vld [vmem:[%s10038_s16 + $0x30] sm:$0xff]  ;;  %s8508_s16 = smov [#allocation2]  }
0x1f46   :  { %8246 = vmatprep.subr.bf16.mxu0 %v8245_v42  ;;  %v8249_v22 = vpack.c.bf16 %v6710_v27, %v6709_v36 }
0x1f47   :  { %v8453_v50 = vpop.eup %8452  ;;  %7807 = vmatprep.mubr.msk.f32.mxu0 %vm190_vm1, %v5664_v46 }
0x1f48   :  { %v8455_v37 = vpop.eup %8454  ;;  %7808 = vmatmul.mubr.msk.f32.vlgmr.msra.gmra.mrb[80].mxu0 %vm190_vm1, %v5665_v49  ;;  %v5667_v2 = vmul.f32 %v8453_v50, %v8445_v38  ;;  %v6705_v50 = vld [vmem:[%s10036_s14 + $0x1] ss:$0 sm:$0xff] }
0x1f49   :  { %v5666_v53 = vmul.f32 %v8455_v37, %v8447_v16  ;;  %8248 = vmatpush3.bf16.msra.mxu0 %v8245_v42 }
0x1f4a   :  { %8250 = vmatprep.subr.bf16.mxu0 %v8249_v22 }
0x1f4b   :  { %7810 = vmatprep.mubr.msk.f32.mxu0 %vm190_vm1, %v5666_v53 }
0x1f4c   :  { %7811 = vmatmul.mubr.msk.f32.gmra.mrb[82].mxu0 %vm190_vm1, %v5667_v2 }
0x1f4d   :  { %8252 = vmatpush3.bf16.msra.mxu0 %v8249_v22 }
0x201b   :  { %v7809_v57 = vpop.f32.mrb[80].mxu0 }
0x201c   :  { %v5746_v39 = vpop.f32.mrb[81].mxu0 }
0x201d   :  { %7815 = vmatprep.mubr.msk.f32.mxu1 %vm564_vm2, %v5746_v39 }
0x201e   :  { %7816 = vmatmul.mubr.msk.f32.vlgmr.msra.gmra.mrb[76].mxu1 %vm564_vm2, %v7809_v57  ;;  %v6706_v57 = vld [vmem:[%s10037_s15 + $0x1] ss:$0 sm:$0xff] }
0x201f   :  { %v7812_v4 = vpop.f32.mrb[82].mxu0 }
0x2020   :  { %v5756_v5 = vpop.f32.mrb[83].mxu0 }
0x2021   :  { %7818 = vmatprep.mubr.msk.f32.mxu1 %vm564_vm2, %v5756_v5 }
0x2022   :  { %7819 = vmatmul.mubr.msk.f32.gmra.mrb[78].mxu1 %vm564_vm2, %v7812_v4 }
0x20f1   :  { %v7817_v13 = vpop.f32.mrb[76].mxu1 }
0x20f2   :  { %v5869_v44 = vadd.f32 %v7817_v13, %v9322_v18  ;;  %v5845_v7 = vpop.f32.mrb[77].mxu1 }
0x20f3   :  { %v5868_v23 = vadd.f32 %v5845_v7, %v9325_v26 }
0x20f4   :  { %v9906_v29 = vadd.f32 %v6702_v6, %v5869_v44 }
0x20f5   :  { %v9908_v28 = vadd.f32 %v6702_v6, %v5868_v23  ;;  %v7820_v10 = vpop.f32.mrb[78].mxu1 }
0x20f6   :  { %v5871_v34 = vadd.f32 %v7820_v10, %v9332_v11  ;;  %v5855_v32 = vpop.f32.mrb[79].mxu1  ;;  %v5891_v35 = vsel %vm190_vm1, %v9906_v29, 0.0 }
0x20f7   :  { %v5870_v58 = vadd.f32 %v5855_v32, %v9335_v8  ;;  %5892 = vadd.xlane.f32.xlu1 %v5891_v35  ;;  %v5888_v18 = vsel %vm190_vm1, %v9908_v28, 0.0 }
0x20f8   :  { %v9916_v0 = vadd.f32 %v6702_v6, %v5871_v34  ;;  %5889 = vadd.xlane.f32.xlu0 %v5888_v18  ;;  %v6718_v18 = vld [vmem:[%s10040_s18 + $0x48] sm:$0xff] }
0x20f9   :  { %v9918_v26 = vadd.f32 %v6702_v6, %v5870_v58  ;;  %v6717_v58 = vld [vmem:[%s10040_s18 + $0x40] sm:$0xff] }
0x20fa   :  { %v5897_v56 = vsel %vm190_vm1, %v9916_v0, 0.0 }
0x20fb   :  { %5898 = vadd.xlane.f32.xlu1 %v5897_v56  ;;  %v5894_v11 = vsel %vm190_vm1, %v9918_v26, 0.0  ;;  %v8253_v56 = vpack.c.bf16 %v6718_v18, %v6717_v58 }
0x20fc   :  { %5895 = vadd.xlane.f32.xlu0 %v5894_v11  ;;  %v6719_v11 = vld [vmem:[%s10040_s18 + $0x50] sm:$0xff] }
0x20fd   :  { %8254 = vmatprep.subr.bf16.mxu0 %v8253_v56 }
0x2184   :  { %v5893_v19 = vpop.xlane.xlu1 %5892 }
0x2185   :  { %v5901_v24 = vmul.f32 0.03125, %v5893_v19  ;;  %v5890_v8 = vpop.xlane.xlu0 %5889  ;;  %v6720_v19 = vld [vmem:[%s10040_s18 + $0x58] sm:$0xff] }
0x2186   :  { %v5900_v48 = vmul.f32 0.03125, %v5890_v8  ;;  %v6721_v8 = vld [vmem:[%s10040_s18 + $0x60] sm:$0xff] }
0x2187   :  { %v5905_v60 = vsub.f32 %v9906_v29, %v5901_v24  ;;  %v8257_v24 = vpack.c.bf16 %v6720_v19, %v6719_v11 }
0x2188   :  { %v5904_v62 = vsub.f32 %v9908_v28, %v5900_v48  ;;  %v5899_v33 = vpop.xlane.xlu1 %5898  ;;  %v6722_v48 = vld [vmem:[%s10040_s18 + $0x68] sm:$0xff] }
0x2189   :  { %v5903_v3 = vmul.f32 0.03125, %v5899_v33  ;;  %v5896_v55 = vpop.xlane.xlu0 %5895  ;;  %v5909_v61 = vmul.f32 %v5905_v60, %v5905_v60  ;;  %v6724_v33 = vld [vmem:[%s10040_s18 + $0x78] sm:$0xff] }
0x218a   :  { %v5902_v40 = vmul.f32 0.03125, %v5896_v55  ;;  %v5908_v25 = vmul.f32 %v5904_v62, %v5904_v62  ;;  %v6712_v55 = vld [vmem:[%s10039_s17 + $0x1] ss:$0 sm:$0xff] }
0x218b   :  { %v5907_v47 = vsub.f32 %v9916_v0, %v5903_v3  ;;  %v5915_v41 = vsel %vm190_vm1, %v5909_v61, 0.0 }
0x218c   :  { %v5906_v43 = vsub.f32 %v9918_v26, %v5902_v40  ;;  %5916 = vadd.xlane.f32.xlu1 %v5915_v41  ;;  %v5912_v63 = vsel %vm190_vm1, %v5908_v25, 0.0 }
0x218d   :  { %5913 = vadd.xlane.f32.xlu0 %v5912_v63  ;;  %v5911_v12 = vmul.f32 %v5907_v47, %v5907_v47 }
0x218e   :  { %v5910_v31 = vmul.f32 %v5906_v43, %v5906_v43 }
0x218f   :  { %v5921_v1 = vsel %vm190_vm1, %v5911_v12, 0.0 }
0x2190   :  { %5922 = vadd.xlane.f32.xlu1 %v5921_v1  ;;  %v5918_v14 = vsel %vm190_vm1, %v5910_v31, 0.0 }
0x2191   :  { %5919 = vadd.xlane.f32.xlu0 %v5918_v14 }
0x2219   :  { %v5917_v38 = vpop.xlane.xlu1 %5916 }
0x221a   :  { %v5925_v16 = vmul.f32 0.03125, %v5917_v38  ;;  %v5914_v51 = vpop.xlane.xlu0 %5913 }
0x221b   :  { %v5924_v15 = vmul.f32 0.03125, %v5914_v51 }
0x221c   :  { %v5929_v20 = vadd.f32 1e-06, %v5925_v16 }
0x221d   :  { %v5928_v52 = vadd.f32 1e-06, %v5924_v15  ;;  %v5923_v54 = vpop.xlane.xlu1 %5922 }
0x221e   :  { %8456 = vrsqrt.f32 %v5929_v20  ;;  %v5927_v30 = vmul.f32 0.03125, %v5923_v54  ;;  %v5920_v59 = vpop.xlane.xlu0 %5919 }
0x221f   :  { %8458 = vrsqrt.f32 %v5928_v52  ;;  %v5926_v9 = vmul.f32 0.03125, %v5920_v59 }
0x2220   :  { %v5931_v21 = vadd.f32 1e-06, %v5927_v30 }
0x2221   :  { %v5930_v46 = vadd.f32 1e-06, %v5926_v9 }
0x2222   :  { %8460 = vrsqrt.f32 %v5931_v21 }
0x2223   :  { %8462 = vrsqrt.f32 %v5930_v46 }
0x2228   :  { %v8457_v49 = vpop.eup %8456 }
0x2229   :  { %v8459_v37 = vpop.eup %8458  ;;  %v5937_v53 = vmul.f32 %v8457_v49, %v5905_v60  ;;  %v8261_v60 = vpack.c.bf16 %v6722_v48, %v6721_v8 }
0x222a   :  { %v5936_v2 = vmul.f32 %v8459_v37, %v5904_v62  ;;  %v6723_v62 = vld [vmem:[%s10040_s18 + $0x70] sm:$0xff] }
0x222b   :  { %v5947_v39 = vmul.f32 %v6705_v50, %v5937_v53  ;;  %v8265_v3 = vpack.c.bf16 %v6724_v33, %v6723_v62 }
0x222c   :  { %v8461_v4 = vpop.eup %8460  ;;  %v5946_v5 = vmul.f32 %v6705_v50, %v5936_v2 }
0x222d   :  { %v8463_v13 = vpop.eup %8462  ;;  %v5939_v6 = vmul.f32 %v8461_v4, %v5907_v47  ;;  %v5957_v23 = vadd.f32 %v6706_v57, %v5947_v39 }
0x222e   :  { %v5956_v44 = vadd.f32 %v6706_v57, %v5946_v5  ;;  %v5938_v7 = vmul.f32 %v8463_v13, %v5906_v43 }
0x222f   :  { %v5949_v10 = vmul.f32 %v6705_v50, %v5939_v6 }
0x2230   :  { %7829 = vmatprep.mubr.msk.f32.mxu0 %vm190_vm1, %v5956_v44  ;;  %v5948_v34 = vmul.f32 %v6705_v50, %v5938_v7 }
0x2231   :  { %7830 = vmatmul.mubr.msk.f32.vlgmr.msra.gmra.mrb[84].mxu0 %vm190_vm1, %v5957_v23  ;;  %v5959_v35 = vadd.f32 %v6706_v57, %v5949_v10 }
0x2232   :  { %v5958_v32 = vadd.f32 %v6706_v57, %v5948_v34  ;;  %8256 = vmatpush3.bf16.msra.mxu0 %v8253_v56  ;;  %v6726_v34 = vld [vmem:[%s10041_s19 + $0x1] ss:$0 sm:$0xff] }
0x2233   :  { %8258 = vmatprep.subr.bf16.mxu0 %v8257_v24 }
0x2234   :  { %7832 = vmatprep.mubr.msk.f32.mxu0 %vm190_vm1, %v5958_v32 }
0x2235   :  { %7833 = vmatmul.mubr.msk.f32.gmra.mrb[86].mxu0 %vm190_vm1, %v5959_v35 }
0x2236   :  { %8260 = vmatpush3.bf16.msra.mxu0 %v8257_v24 }
0x2237   :  { %8262 = vmatprep.subr.bf16.mxu0 %v8261_v60 }
0x223a   :  { %8264 = vmatpush3.bf16.msra.mxu0 %v8261_v60 }
0x223b   :  { %8266 = vmatprep.subr.bf16.mxu0 %v8265_v3 }
0x223e   :  { %8268 = vmatpush3.bf16.msra.mxu0 %v8265_v3 }
0x2304   :  { %v7831_v61 = vpop.f32.mrb[84].mxu0 }
0x2305   :  { %v6057_v40 = vadd.f32 %v7831_v61, %v6712_v55  ;;  %v6051_v25 = vpop.f32.mrb[85].mxu0 }
0x2306   :  { %v6052_v47 = vadd.f32 %v6712_v55, %v6051_v25 }
0x2307   :  { %v6075_v41 = vmul.f32 0.044715, %v6057_v40  ;;  %v6071_v2 = vmul.f32 0.5, %v6057_v40 }
0x2308   :  { %v6074_v43 = vmul.f32 0.044715, %v6052_v47  ;;  %v7834_v63 = vpop.f32.mrb[86].mxu0  ;;  %v6070_v37 = vmul.f32 0.5, %v6052_v47 }
0x2309   :  { %v6079_v12 = vmul.f32 %v6075_v41, %v6057_v40  ;;  %v6067_v31 = vadd.f32 %v7834_v63, %v6712_v55  ;;  %v6061_v1 = vpop.f32.mrb[87].mxu0 }
0x230a   :  { %v6078_v14 = vmul.f32 %v6074_v43, %v6052_v47  ;;  %v6062_v17 = vadd.f32 %v6712_v55, %v6061_v1 }
0x230b   :  { %v6083_v45 = vmul.f32 %v6079_v12, %v6057_v40  ;;  %v6077_v42 = vmul.f32 0.044715, %v6067_v31  ;;  %v6073_v7 = vmul.f32 0.5, %v6067_v31 }
0x230c   :  { %v6082_v36 = vmul.f32 %v6078_v14, %v6052_v47  ;;  %v6076_v27 = vmul.f32 0.044715, %v6062_v17  ;;  %v6072_v6 = vmul.f32 0.5, %v6062_v17 }
0x230d   :  { %v6087_v22 = vadd.f32 %v6083_v45, %v6057_v40  ;;  %v6081_v38 = vmul.f32 %v6077_v42, %v6067_v31 }
0x230e   :  { %v6086_v16 = vadd.f32 %v6082_v36, %v6052_v47  ;;  %v6080_v51 = vmul.f32 %v6076_v27, %v6062_v17 }
0x230f   :  { %v6091_v15 = vmul.f32 0.7978846, %v6087_v22  ;;  %v6085_v20 = vmul.f32 %v6081_v38, %v6067_v31 }
0x2310   :  { %v6084_v52 = vmul.f32 %v6080_v51, %v6062_v17  ;;  %v6090_v54 = vmul.f32 0.7978846, %v6086_v16 }
0x2311   :  { %8464 = vtanh.f32 %v6091_v15  ;;  %v6089_v30 = vadd.f32 %v6085_v20, %v6067_v31 }
0x2312   :  { %v6088_v59 = vadd.f32 %v6084_v52, %v6062_v17  ;;  %8466 = vtanh.f32 %v6090_v54 }
0x2313   :  { %v6093_v9 = vmul.f32 0.7978846, %v6089_v30 }
0x2314   :  { %v6092_v21 = vmul.f32 0.7978846, %v6088_v59 }
0x2315   :  { %8468 = vtanh.f32 %v6093_v9 }
0x2316   :  { %8470 = vtanh.f32 %v6092_v21 }
0x231b   :  { %v8465_v46 = vpop.eup %8464 }
0x231c   :  { %v8467_v49 = vpop.eup %8466  ;;  %v6099_v50 = vadd.f32 1.0, %v8465_v46 }
0x231d   :  { %v6098_v53 = vadd.f32 1.0, %v8467_v49 }
0x231e   :  { %v6103_v5 = vmul.f32 %v6099_v50, %v6071_v2  ;;  %v6731_v50 = vld [vmem:[%s10042_s20] ss:$0 sm:$0xff]  ;;  %s6307_s20 = sshll.u32 %s8508_s16, 4  ;;  %s6308_s20 = int_to_ptr.vmem [resolvable:$true] %s6307_s20 }
0x231f   :  { %v8469_v57 = vpop.eup %8468  ;;  %v6102_v39 = vmul.f32 %v6098_v53, %v6070_v37  ;;  %v6732_v2 = vld [vmem:[%s10043_s21] ss:$0 sm:$0xff]  ;;  %s8484_s21 = scalar_lea.vmem %s6308_s20, 512  ;;  %p8489_p1 = scmp.lt.s32.totalorder %s6308_s20, %s6308_s20 }
0x2320   :  { %v8471_v4 = vpop.eup %8470  ;;  %v6101_v13 = vadd.f32 1.0, %v8469_v57  ;;  %p8485_p0 = scmp.ne.s32.totalorder %s6308_s20, %s8484_s21  ;;  %p8490_p2 = scmp.lt.s32.totalorder %s8484_s21, %s8484_s21 }
0x2321   :  { %7851 = vmatprep.mubr.msk.f32.mxu0 %vm3098_vm4, %v6102_v39  ;;  %v6100_v44 = vadd.f32 1.0, %v8471_v4 }
0x2322   :  { %7852 = vmatmul.mubr.msk.f32.vlgmr.msra.gmra.mrb[88].mxu0 %vm3098_vm4, %v6103_v5  ;;  %v6105_v10 = vmul.f32 %v6101_v13, %v6073_v7  ;;  %p8491_p3 = por %p8490_p2, %p8489_p1 }
0x2323   :  { %v6104_v23 = vmul.f32 %v6100_v44, %v6072_v6 }
0x2324   :  { %p8492_p4 = pnand %p8491_p3, %p8485_p0 }
0x2325   :  { %7854 = vmatprep.mubr.msk.f32.mxu0 %vm3098_vm4, %v6104_v23 }
0x2326   :  { %7855 = vmatmul.mubr.msk.f32.gmra.mrb[90].mxu0 %vm3098_vm4, %v6105_v10 }
0x23f5   :  { %v7853_v32 = vpop.f32.mrb[88].mxu0 }
0x23f6   :  { %v6207_v35 = vadd.f32 %v7853_v32, %v6726_v34  ;;  %v6201_v58 = vpop.f32.mrb[89].mxu0 }
0x23f7   :  { %v6202_v18 = vadd.f32 %v6726_v34, %v6201_v58 }
0x23f8   :  { %v6221_v56 = vadd.f32 %v6207_v35, %v9906_v29 }
0x23f9   :  { %v7856_v11 = vpop.f32.mrb[90].mxu0  ;;  %v6220_v19 = vadd.f32 %v6202_v18, %v9908_v28 }
0x23fa   :  { %v6217_v24 = vadd.f32 %v7856_v11, %v6726_v34  ;;  %v6211_v8 = vpop.f32.mrb[91].mxu0  ;;  %v6229_v48 = vsel %vm190_vm1, %v6221_v56, 0.0 }
0x23fb   :  { %v6212_v60 = vadd.f32 %v6726_v34, %v6211_v8  ;;  %6230 = vadd.xlane.f32.xlu1 %v6229_v48  ;;  %v6226_v62 = vsel %vm190_vm1, %v6220_v19, 0.0 }
0x23fc   :  { %v6223_v33 = vadd.f32 %v6217_v24, %v9916_v0  ;;  %6227 = vadd.xlane.f32.xlu0 %v6226_v62 }
0x23fd   :  { %v6222_v3 = vadd.f32 %v6212_v60, %v9918_v26 }
0x23fe   :  { %v6235_v55 = vsel %vm190_vm1, %v6223_v33, 0.0 }
0x23ff   :  { %6236 = vadd.xlane.f32.xlu1 %v6235_v55  ;;  %v6232_v29 = vsel %vm190_vm1, %v6222_v3, 0.0 }
0x2400   :  { %6233 = vadd.xlane.f32.xlu0 %v6232_v29 }
0x2488   :  { %v6231_v28 = vpop.xlane.xlu1 %6230 }
0x2489   :  { %v6239_v61 = vmul.f32 0.03125, %v6231_v28  ;;  %v6228_v40 = vpop.xlane.xlu0 %6227 }
0x248a   :  { %v6238_v25 = vmul.f32 0.03125, %v6228_v40 }
0x248b   :  { %v6243_v47 = vsub.f32 %v6221_v56, %v6239_v61 }
0x248c   :  { %v6242_v41 = vsub.f32 %v6220_v19, %v6238_v25  ;;  %v6237_v43 = vpop.xlane.xlu1 %6236 }
0x248d   :  { %v6241_v63 = vmul.f32 0.03125, %v6237_v43  ;;  %v6234_v12 = vpop.xlane.xlu0 %6233  ;;  %v6247_v31 = vmul.f32 %v6243_v47, %v6243_v47 }
0x248e   :  { %v6240_v0 = vmul.f32 0.03125, %v6234_v12  ;;  %v6246_v1 = vmul.f32 %v6242_v41, %v6242_v41 }
0x248f   :  { %v6245_v14 = vsub.f32 %v6223_v33, %v6241_v63  ;;  %v6253_v26 = vsel %vm190_vm1, %v6247_v31, 0.0 }
0x2490   :  { %v6244_v17 = vsub.f32 %v6222_v3, %v6240_v0  ;;  %6254 = vadd.xlane.f32.xlu1 %v6253_v26  ;;  %v6250_v45 = vsel %vm190_vm1, %v6246_v1, 0.0 }
0x2491   :  { %6251 = vadd.xlane.f32.xlu0 %v6250_v45  ;;  %v6249_v42 = vmul.f32 %v6245_v14, %v6245_v14 }
0x2492   :  { %v6248_v36 = vmul.f32 %v6244_v17, %v6244_v17 }
0x2493   :  { %v6259_v27 = vsel %vm190_vm1, %v6249_v42, 0.0 }
0x2494   :  { %6260 = vadd.xlane.f32.xlu1 %v6259_v27  ;;  %v6256_v22 = vsel %vm190_vm1, %v6248_v36, 0.0 }
0x2495   :  { %6257 = vadd.xlane.f32.xlu0 %v6256_v22 }
0x251d   :  { %v6255_v38 = vpop.xlane.xlu1 %6254 }
0x251e   :  { %v6263_v16 = vmul.f32 0.03125, %v6255_v38  ;;  %v6252_v51 = vpop.xlane.xlu0 %6251 }
0x251f   :  { %v6262_v15 = vmul.f32 0.03125, %v6252_v51 }
0x2520   :  { %v6267_v20 = vadd.f32 1e-06, %v6263_v16 }
0x2521   :  { %v6266_v52 = vadd.f32 1e-06, %v6262_v15  ;;  %v6261_v54 = vpop.xlane.xlu1 %6260 }
0x2522   :  { %8472 = vrsqrt.f32 %v6267_v20  ;;  %v6265_v30 = vmul.f32 0.03125, %v6261_v54  ;;  %v6258_v59 = vpop.xlane.xlu0 %6257 }
0x2523   :  { %8474 = vrsqrt.f32 %v6266_v52  ;;  %v6264_v9 = vmul.f32 0.03125, %v6258_v59 }
0x2524   :  { %v6269_v21 = vadd.f32 1e-06, %v6265_v30 }
0x2525   :  { %v6268_v46 = vadd.f32 1e-06, %v6264_v9 }
0x2526   :  { %8476 = vrsqrt.f32 %v6269_v21 }
0x2527   :  { %8478 = vrsqrt.f32 %v6268_v46 }
0x252c   :  { %v8473_v49 = vpop.eup %8472 }
0x252d   :  { %v8475_v37 = vpop.eup %8474  ;;  %v6275_v53 = vmul.f32 %v8473_v49, %v6243_v47 }
0x252e   :  { %v6274_v57 = vmul.f32 %v8475_v37, %v6242_v41 }
0x252f   :  { %v6285_v39 = vmul.f32 %v6731_v50, %v6275_v53 }
0x2530   :  { %v8477_v4 = vpop.eup %8476  ;;  %v6284_v5 = vmul.f32 %v6731_v50, %v6274_v57 }
0x2531   :  { %v8479_v13 = vpop.eup %8478  ;;  %v6295_v6 = vadd.f32 %v6732_v2, %v6285_v39  ;;  %v6277_v44 = vmul.f32 %v8477_v4, %v6245_v14 }
0x2532   :  { %v6294_v7 = vadd.f32 %v6732_v2, %v6284_v5  ;;  %v6276_v23 = vmul.f32 %v8479_v13, %v6244_v17 }
0x2533   :  { %6299 = vst.msk [vmem:[#allocation2 + $0x8] sm:$0xff] %vm190_vm1, %v6295_v6  ;;  %v6287_v10 = vmul.f32 %v6731_v50, %v6277_v44 }
0x2534   :  { %6298 = vst.msk [vmem:[#allocation2] sm:$0xff] %vm190_vm1, %v6294_v7  ;;  %v6286_v34 = vmul.f32 %v6731_v50, %v6276_v23 }
0x2535   :  { %v6297_v32 = vadd.f32 %v6732_v2, %v6287_v10 }
0x2536   :  { %v6296_v35 = vadd.f32 %v6732_v2, %v6286_v34 }
0x2537   :  { %6301 = vst.msk [vmem:[#allocation2 + $0x18] sm:$0xff] %vm190_vm1, %v6297_v32 }
0x2538   :  { %6300 = vst.msk [vmem:[#allocation2 + $0x10] sm:$0xff] %vm190_vm1, %v6296_v35 }
0x2539   :  { %8495 = shalt.err (!%p8492_p4)
}
0x253a   :  { %s8496_s27 = scalar_lea.hbm %s10044_s22, 512 }
0x253b   :  { %p8497_p5 = scmp.ne.s32.totalorder %s10044_s22, %s8496_s27  ;;  %p8500_p6 = scmp.lt.u32.totalorder %s8496_s27, %s10044_s22 }
0x253d   :  { %p8502_p7 = pnand %p8500_p6, %p8497_p5 }
0x253f   :  { %8505 = shalt.err (!%p8502_p7)
}
0x2540   :  { %s8509_s3 = smov 128   ;;  %s8510_s30 = smov 8  }
0x2541   :  { %6313 = dma.vmem_to_hbm [thread:$0]  %s6308_s20, 512, %s10044_s22, [#allocation3], %s8509_s3, %s8509_s3, %s8510_s30  }
0x2542   :  { %8506 = dma.done.wait [#allocation3], 512  }
0x2543   :  { %8507 = vsyncadd [#allocation3], 4294966784 }
0x2544   :  { %6317 = vsyncpa [#allocation3], 1 }

</bundles_post_ra>
